<compile_context>
chip_gen: v7x
topology: tpu7x:2x2x1
jax: 0.10.0
libtpu: 0.0.40
codegen_flags: <defaults>
</compile_context>

<pallas_src>
import functools

import jax
import jax.numpy as jnp
from jax.experimental import pallas as pl
from jax.experimental.pallas import tpu as pltpu


def _round_up(x, m):
    return (x + m - 1) // m * m


def _choose_tile(batch, cap):
    """Pick a sublane-aligned batch tile.

    Small batch -> one padded tile.  Large batch -> biggest tile <= cap that
    divides the batch exactly (avoids wrapper-side pad / output slice); fall
    back to `cap` with padding only if no divisor exists.
    """
    if batch <= cap:
        return max(8, _round_up(batch, 8))
    for t in range(cap, 63, -8):
        if batch % t == 0:
            return t
    return cap


def _generator_kernel(noise_ref, ctx_ref,
                      w1z_ref, b1z_ref,
                      w1c_ref, b1c_ref,
                      w2a_ref, w2b_ref, b2_ref,
                      w3_ref, b3_ref,
                      out_ref, *, compute_dtype):
    # hidden1_z: Linear(latent, 200) -> Dropout (identity, eval) -> ReLU
    h_z = jnp.dot(noise_ref[...].astype(compute_dtype), w1z_ref[...],
                  preferred_element_type=jnp.float32) + b1z_ref[...]
    h_z = jnp.maximum(h_z, 0.0).astype(compute_dtype)

    # hidden1_context: Linear(context, 1000) -> Dropout (identity) -> ReLU
    h_c = jnp.dot(ctx_ref[...].astype(compute_dtype), w1c_ref[...],
                  preferred_element_type=jnp.float32) + b1c_ref[...]
    h_c = jnp.maximum(h_c, 0.0).astype(compute_dtype)

    # hidden2: Linear(1200, 1200) on cat([h_z, h_c], dim=1) -> Dropout -> ReLU
    # The concat is realized with the pre-split weight:
    #   cat([hz, hc]) @ W2 == hz @ W2a + hc @ W2b      (W2a = W2[:200], W2b = W2[200:])
    h2 = (jnp.dot(h_z, w2a_ref[...], preferred_element_type=jnp.float32)
          + jnp.dot(h_c, w2b_ref[...], preferred_element_type=jnp.float32)
          + b2_ref[...])
    h2 = jnp.maximum(h2, 0.0).astype(compute_dtype)

    # out_layer: Linear(1200, output_dim) -> Sigmoid
    logits = jnp.dot(h2, w3_ref[...],
                     preferred_element_type=jnp.float32) + b3_ref[...]
    out_ref[...] = jax.nn.sigmoid(logits).astype(out_ref.dtype)


def generator_forward(noise, context, params, *,
                      batch_tile=512, weight_dtype=jnp.bfloat16):
    """noise: (B, latent_dim), context: (B, context_dim) -> (B, output_dim)."""
    w1z, b1z, w1c, b1c, w2, b2, w3, b3 = params
    B, latent_dim = noise.shape
    context_dim = context.shape[1]
    n_z = w1z.shape[1]       # 200
    n_c = w1c.shape[1]       # 1000
    hidden = w2.shape[1]     # 1200
    out_dim = w3.shape[1]    # 784

    # Weights to bf16 (MXU-native, halves HBM weight traffic).  w2 is split
    # along its input rows here (fused with the cast by XLA) so the kernel
    # never slices a bf16 array at a sublane-misaligned row.
    w1z = w1z.astype(weight_dtype)
    w1c = w1c.astype(weight_dtype)
    w2a = w2[:n_z].astype(weight_dtype)
    w2b = w2[n_z:].astype(weight_dtype)
    w3 = w3.astype(weight_dtype)
    b1z = b1z.astype(jnp.float32)
    b1c = b1c.astype(jnp.float32)
    b2 = b2.astype(jnp.float32)
    b3 = b3.astype(jnp.float32)
    noise = noise.astype(jnp.float32)
    context = context.astype(jnp.float32)

    # Batch tiling: tile chosen to divide B when possible; pad only as a
    # fallback (pad + out[:B] are extra HBM round-trips outside the kernel).
    TB = _choose_tile(B, batch_tile)
    Bp = _round_up(B, TB)
    if Bp != B:
        noise = jnp.pad(noise, ((0, Bp - B), (0, 0)))
        context = jnp.pad(context, ((0, Bp - B), (0, 0)))
    grid = (Bp // TB,)

    weight_arrays = (w1z, w1c, w2a, w2b, w3, b1z, b1c, b2, b3)
    weight_bytes = sum(int(a.size) * a.dtype.itemsize for a in weight_arrays)
    io_bytes = Bp * (latent_dim + context_dim + out_dim) * 4
    cost = pl.CostEstimate(
        flops=2 * Bp * (latent_dim * n_z + context_dim * n_c
                        + (n_z + n_c) * hidden + hidden * out_dim),
        transcendentals=Bp * out_dim,          # sigmoid exp
        bytes_accessed=weight_bytes + io_bytes,
    )

    kernel = functools.partial(_generator_kernel, compute_dtype=weight_dtype)

    # Weights/biases: whole-array blocks, constant index_map -> DMA'd once and
    # VMEM-resident.  Single-buffered (Buffered(1)) since they never change,
    # halving their VMEM footprint vs the default double-buffering.
    def resident(a):
        shape = a.shape
        idx = lambda i: (0,) * len(shape)
        try:
            return pl.BlockSpec(shape, idx, pipeline_mode=pl.Buffered(1))
        except TypeError:
            # Older Pallas without pipeline_mode: fall back to default buffering.
            return pl.BlockSpec(shape, idx)

    out = pl.pallas_call(
        kernel,
        out_shape=jax.ShapeDtypeStruct((Bp, out_dim), jnp.float32),
        grid=grid,
        in_specs=[
            pl.BlockSpec((TB, latent_dim), lambda i: (i, 0)),
            pl.BlockSpec((TB, context_dim), lambda i: (i, 0)),
            resident(w1z), resident(b1z),
            resident(w1c), resident(b1c),
            resident(w2a), resident(w2b), resident(b2),
            resident(w3), resident(b3),
        ],
        out_specs=pl.BlockSpec((TB, out_dim), lambda i: (i, 0)),
        compiler_params=pltpu.CompilerParams(
            dimension_semantics=("parallel",),
            vmem_limit_bytes=40 * 1024 * 1024,
        ),
        cost_estimate=cost,
    )(noise, context, w1z, b1z, w1c, b1c, w2a, w2b, b2, w3, b3)

    return out[:B] if Bp != B else out


def init_params(key, latent_dim=100, context_dim=10, output_dim=28 * 28):
    """Deterministic init mimicking nn.Linear's U(-1/sqrt(fan_in), 1/sqrt(fan_in)).
    Weights stored as (in_features, out_features)."""
    def linear(key, fan_in, fan_out):
        kw, kb = jax.random.split(key)
        bound = 1.0 / jnp.sqrt(fan_in)
        w = jax.random.uniform(kw, (fan_in, fan_out), jnp.float32, -bound, bound)
        b = jax.random.uniform(kb, (1, fan_out), jnp.float32, -bound, bound)
        return w, b

    k1, k2, k3, k4 = jax.random.split(key, 4)
    w1z, b1z = linear(k1, latent_dim, 200)
    w1c, b1c = linear(k2, context_dim, 1000)
    w2, b2 = linear(k3, 1200, 1200)
    w3, b3 = linear(k4, 1200, output_dim)
    return (w1z, b1z, w1c, b1c, w2, b2, w3, b3)


def generator_reference(noise, context, params, weight_dtype=jnp.bfloat16):
    """Pure-JAX reference (Dropout = identity / eval) using the same
    bf16-rounded weights the kernel consumes, with f32 math.
    NOTE: the kernel additionally rounds intermediate activations to bf16 at
    each MXU input; the 1e-2 tolerance below absorbs that divergence."""
    w1z, b1z, w1c, b1c, w2, b2, w3, b3 = params

    def q(w):
        return w.astype(weight_dtype).astype(jnp.float32)

    h_z = jax.nn.relu(noise @ q(w1z) + b1z)
    h_c = jax.nn.relu(context @ q(w1c) + b1c)
    h = jnp.concatenate([h_z, h_c], axis=1)
    h = jax.nn.relu(h @ q(w2) + b2)
    return jax.nn.sigmoid(h @ q(w3) + b3)


if __name__ == "__main__":
    # TODO(synk): Dropout(p=0.5) is stochastic in training mode; implemented
    # here with eval-mode (identity) semantics.
    key = jax.random.PRNGKey(0)
    kp, kn, kc = jax.random.split(key, 3)

    B, latent_dim, context_dim, output_dim = 4, 100, 10, 28 * 28
    params = init_params(kp, latent_dim, context_dim, output_dim)
    noise = jax.random.normal(kn, (B, latent_dim), jnp.float32)
    context = jax.random.normal(kc, (B, context_dim), jnp.float32)

    out = generator_forward(noise, context, params)
    out = jax.block_until_ready(out)

    ref = generator_reference(noise, context, params)
    assert out.shape == (B, output_dim)
    max_err = float(jnp.max(jnp.abs(out - ref)))
    assert max_err < 1e-2, f"mismatch vs JAX reference: max abs err {max_err}"

    print("KERNEL_OK")
</pallas_src>

<mosaic_0001>
module attributes {stable_mosaic.version = 11 : i64} {
  func.func @_generator_kernel(%arg0: i32, %arg1: memref<8x100xf32, #tpu.memory_space<vmem>>, %arg2: memref<8x10xf32, #tpu.memory_space<vmem>>, %arg3: memref<100x200xbf16, #tpu.memory_space<vmem>>, %arg4: memref<1x200xf32, #tpu.memory_space<vmem>>, %arg5: memref<10x1000xbf16, #tpu.memory_space<vmem>>, %arg6: memref<1x1000xf32, #tpu.memory_space<vmem>>, %arg7: memref<200x1200xbf16, #tpu.memory_space<vmem>>, %arg8: memref<1000x1200xbf16, #tpu.memory_space<vmem>>, %arg9: memref<1x1200xf32, #tpu.memory_space<vmem>>, %arg10: memref<1200x784xbf16, #tpu.memory_space<vmem>>, %arg11: memref<1x784xf32, #tpu.memory_space<vmem>>, %arg12: memref<8x784xf32, #tpu.memory_space<vmem>>) attributes {dimension_semantics = [#tpu.dimension_semantics<parallel>], iteration_bounds = array<i64: 1>, scalar_prefetch = 0 : i64, scratch_operands = 0 : i64, tpu.core_type = #tpu.core_type<tc>, window_params = [{transform_indices = @transform_0, window_bounds = array<i64: 8, 100>}, {transform_indices = @transform_1, window_bounds = array<i64: 8, 10>}, {pipeline_mode = #tpu.pipeline_mode<synchronous>, transform_indices = @transform_2, window_bounds = array<i64: 100, 200>}, {pipeline_mode = #tpu.pipeline_mode<synchronous>, transform_indices = @transform_3, window_bounds = array<i64: 1, 200>}, {pipeline_mode = #tpu.pipeline_mode<synchronous>, transform_indices = @transform_4, window_bounds = array<i64: 10, 1000>}, {pipeline_mode = #tpu.pipeline_mode<synchronous>, transform_indices = @transform_5, window_bounds = array<i64: 1, 1000>}, {pipeline_mode = #tpu.pipeline_mode<synchronous>, transform_indices = @transform_6, window_bounds = array<i64: 200, 1200>}, {pipeline_mode = #tpu.pipeline_mode<synchronous>, transform_indices = @transform_7, window_bounds = array<i64: 1000, 1200>}, {pipeline_mode = #tpu.pipeline_mode<synchronous>, transform_indices = @transform_8, window_bounds = array<i64: 1, 1200>}, {pipeline_mode = #tpu.pipeline_mode<synchronous>, transform_indices = @transform_9, window_bounds = array<i64: 1200, 784>}, {pipeline_mode = #tpu.pipeline_mode<synchronous>, transform_indices = @transform_10, window_bounds = array<i64: 1, 784>}, {transform_indices = @transform_11, window_bounds = array<i64: 8, 784>}]} {
    %c0 = arith.constant 0 : index
    %c0_0 = arith.constant 0 : index
    %0 = vector.load %arg1[%c0, %c0_0] : memref<8x100xf32, #tpu.memory_space<vmem>>, vector<8x100xf32>
    %1 = arith.truncf %0 : vector<8x100xf32> to vector<8x100xbf16>
    %c0_1 = arith.constant 0 : index
    %c0_2 = arith.constant 0 : index
    %2 = vector.load %arg3[%c0_1, %c0_2] : memref<100x200xbf16, #tpu.memory_space<vmem>>, vector<100x200xbf16>
    %cst = arith.constant dense<0.000000e+00> : vector<8x200xf32>
    %3 = tpu.matmul %1, %2, %cst {dimension_numbers = #tpu.dot_dimension_numbers<[1], [0], [0], [1], [0, 0, 1, 1], [], []>} : vector<8x100xbf16>, vector<100x200xbf16>, vector<8x200xf32> -> vector<8x200xf32>
    %c0_3 = arith.constant 0 : index
    %c0_4 = arith.constant 0 : index
    %4 = vector.load %arg4[%c0_3, %c0_4] : memref<1x200xf32, #tpu.memory_space<vmem>>, vector<1x200xf32>
    %5 = vector.broadcast %4 : vector<1x200xf32> to vector<8x200xf32>
    %6 = arith.addf %3, %5 : vector<8x200xf32>
    %cst_5 = arith.constant 0.000000e+00 : f32
    %7 = vector.broadcast %cst_5 : f32 to vector<8x200xf32>
    %8 = arith.maximumf %6, %7 : vector<8x200xf32>
    %9 = arith.truncf %8 : vector<8x200xf32> to vector<8x200xbf16>
    %c0_6 = arith.constant 0 : index
    %c0_7 = arith.constant 0 : index
    %10 = vector.load %arg2[%c0_6, %c0_7] : memref<8x10xf32, #tpu.memory_space<vmem>>, vector<8x10xf32>
    %11 = arith.truncf %10 : vector<8x10xf32> to vector<8x10xbf16>
    %c0_8 = arith.constant 0 : index
    %c0_9 = arith.constant 0 : index
    %12 = vector.load %arg5[%c0_8, %c0_9] : memref<10x1000xbf16, #tpu.memory_space<vmem>>, vector<10x1000xbf16>
    %cst_10 = arith.constant dense<0.000000e+00> : vector<8x1000xf32>
    %13 = tpu.matmul %11, %12, %cst_10 {dimension_numbers = #tpu.dot_dimension_numbers<[1], [0], [0], [1], [0, 0, 1, 1], [], []>} : vector<8x10xbf16>, vector<10x1000xbf16>, vector<8x1000xf32> -> vector<8x1000xf32>
    %c0_11 = arith.constant 0 : index
    %c0_12 = arith.constant 0 : index
    %14 = vector.load %arg6[%c0_11, %c0_12] : memref<1x1000xf32, #tpu.memory_space<vmem>>, vector<1x1000xf32>
    %15 = vector.broadcast %14 : vector<1x1000xf32> to vector<8x1000xf32>
    %16 = arith.addf %13, %15 : vector<8x1000xf32>
    %cst_13 = arith.constant 0.000000e+00 : f32
    %17 = vector.broadcast %cst_13 : f32 to vector<8x1000xf32>
    %18 = arith.maximumf %16, %17 : vector<8x1000xf32>
    %19 = arith.truncf %18 : vector<8x1000xf32> to vector<8x1000xbf16>
    %c0_14 = arith.constant 0 : index
    %c0_15 = arith.constant 0 : index
    %20 = vector.load %arg7[%c0_14, %c0_15] : memref<200x1200xbf16, #tpu.memory_space<vmem>>, vector<200x1200xbf16>
    %cst_16 = arith.constant dense<0.000000e+00> : vector<8x1200xf32>
    %21 = tpu.matmul %9, %20, %cst_16 {dimension_numbers = #tpu.dot_dimension_numbers<[1], [0], [0], [1], [0, 0, 1, 1], [], []>} : vector<8x200xbf16>, vector<200x1200xbf16>, vector<8x1200xf32> -> vector<8x1200xf32>
    %c0_17 = arith.constant 0 : index
    %c0_18 = arith.constant 0 : index
    %22 = vector.load %arg8[%c0_17, %c0_18] : memref<1000x1200xbf16, #tpu.memory_space<vmem>>, vector<1000x1200xbf16>
    %cst_19 = arith.constant dense<0.000000e+00> : vector<8x1200xf32>
    %23 = tpu.matmul %19, %22, %cst_19 {dimension_numbers = #tpu.dot_dimension_numbers<[1], [0], [0], [1], [0, 0, 1, 1], [], []>} : vector<8x1000xbf16>, vector<1000x1200xbf16>, vector<8x1200xf32> -> vector<8x1200xf32>
    %24 = arith.addf %21, %23 : vector<8x1200xf32>
    %c0_20 = arith.constant 0 : index
    %c0_21 = arith.constant 0 : index
    %25 = vector.load %arg9[%c0_20, %c0_21] : memref<1x1200xf32, #tpu.memory_space<vmem>>, vector<1x1200xf32>
    %26 = vector.broadcast %25 : vector<1x1200xf32> to vector<8x1200xf32>
    %27 = arith.addf %24, %26 : vector<8x1200xf32>
    %cst_22 = arith.constant 0.000000e+00 : f32
    %28 = vector.broadcast %cst_22 : f32 to vector<8x1200xf32>
    %29 = arith.maximumf %27, %28 : vector<8x1200xf32>
    %30 = arith.truncf %29 : vector<8x1200xf32> to vector<8x1200xbf16>
    %c0_23 = arith.constant 0 : index
    %c0_24 = arith.constant 0 : index
    %31 = vector.load %arg10[%c0_23, %c0_24] : memref<1200x784xbf16, #tpu.memory_space<vmem>>, vector<1200x784xbf16>
    %cst_25 = arith.constant dense<0.000000e+00> : vector<8x784xf32>
    %32 = tpu.matmul %30, %31, %cst_25 {dimension_numbers = #tpu.dot_dimension_numbers<[1], [0], [0], [1], [0, 0, 1, 1], [], []>} : vector<8x1200xbf16>, vector<1200x784xbf16>, vector<8x784xf32> -> vector<8x784xf32>
    %c0_26 = arith.constant 0 : index
    %c0_27 = arith.constant 0 : index
    %33 = vector.load %arg11[%c0_26, %c0_27] : memref<1x784xf32, #tpu.memory_space<vmem>>, vector<1x784xf32>
    %34 = vector.broadcast %33 : vector<1x784xf32> to vector<8x784xf32>
    %35 = arith.addf %32, %34 : vector<8x784xf32>
    %36 = arith.negf %35 : vector<8x784xf32>
    %37 = math.exp %36 : vector<8x784xf32>
    %cst_28 = arith.constant 1.000000e+00 : f32
    %38 = vector.broadcast %cst_28 : f32 to vector<8x784xf32>
    %39 = arith.addf %38, %37 : vector<8x784xf32>
    %40 = arith.divf %38, %39 : vector<8x784xf32>
    %c0_29 = arith.constant 0 : index
    %c0_30 = arith.constant 0 : index
    %41 = vector.load %arg12[%c0_29, %c0_30] : memref<8x784xf32, #tpu.memory_space<vmem>>, vector<8x784xf32>
    tpu.vector_store %arg12[%c0_29, %c0_30], %40 {strides = array<i32>} : memref<8x784xf32, #tpu.memory_space<vmem>>, vector<8x784xf32>,
    return
  }
  func.func @transform_0(%arg0: i32) -> (i32, i32) {
    %c0_i32 = arith.constant 0 : i32
    %c0_i32_0 = arith.constant 0 : i32
    return %arg0, %c0_i32 : i32, i32
  }
  func.func @transform_1(%arg0: i32) -> (i32, i32) {
    %c0_i32 = arith.constant 0 : i32
    %c0_i32_0 = arith.constant 0 : i32
    return %arg0, %c0_i32 : i32, i32
  }
  func.func @transform_2(%arg0: i32) -> (i32, i32) {
    %c0_i32 = arith.constant 0 : i32
    %c0_i32_0 = arith.constant 0 : i32
    %c0_i32_1 = arith.constant 0 : i32
    return %c0_i32, %c0_i32_0 : i32, i32
  }
  func.func @transform_3(%arg0: i32) -> (i32, i32) {
    %c0_i32 = arith.constant 0 : i32
    %c0_i32_0 = arith.constant 0 : i32
    %c0_i32_1 = arith.constant 0 : i32
    return %c0_i32, %c0_i32_0 : i32, i32
  }
  func.func @transform_4(%arg0: i32) -> (i32, i32) {
    %c0_i32 = arith.constant 0 : i32
    %c0_i32_0 = arith.constant 0 : i32
    %c0_i32_1 = arith.constant 0 : i32
    return %c0_i32, %c0_i32_0 : i32, i32
  }
  func.func @transform_5(%arg0: i32) -> (i32, i32) {
    %c0_i32 = arith.constant 0 : i32
    %c0_i32_0 = arith.constant 0 : i32
    %c0_i32_1 = arith.constant 0 : i32
    return %c0_i32, %c0_i32_0 : i32, i32
  }
  func.func @transform_6(%arg0: i32) -> (i32, i32) {
    %c0_i32 = arith.constant 0 : i32
    %c0_i32_0 = arith.constant 0 : i32
    %c0_i32_1 = arith.constant 0 : i32
    return %c0_i32, %c0_i32_0 : i32, i32
  }
  func.func @transform_7(%arg0: i32) -> (i32, i32) {
    %c0_i32 = arith.constant 0 : i32
    %c0_i32_0 = arith.constant 0 : i32
    %c0_i32_1 = arith.constant 0 : i32
    return %c0_i32, %c0_i32_0 : i32, i32
  }
  func.func @transform_8(%arg0: i32) -> (i32, i32) {
    %c0_i32 = arith.constant 0 : i32
    %c0_i32_0 = arith.constant 0 : i32
    %c0_i32_1 = arith.constant 0 : i32
    return %c0_i32, %c0_i32_0 : i32, i32
  }
  func.func @transform_9(%arg0: i32) -> (i32, i32) {
    %c0_i32 = arith.constant 0 : i32
    %c0_i32_0 = arith.constant 0 : i32
    %c0_i32_1 = arith.constant 0 : i32
    return %c0_i32, %c0_i32_0 : i32, i32
  }
  func.func @transform_10(%arg0: i32) -> (i32, i32) {
    %c0_i32 = arith.constant 0 : i32
    %c0_i32_0 = arith.constant 0 : i32
    %c0_i32_1 = arith.constant 0 : i32
    return %c0_i32, %c0_i32_0 : i32, i32
  }
  func.func @transform_11(%arg0: i32) -> (i32, i32) {
    %c0_i32 = arith.constant 0 : i32
    %c0_i32_0 = arith.constant 0 : i32
    return %arg0, %c0_i32 : i32, i32
  }
}

</mosaic_0001>

<bundles_post_ra>
// kernel: tpu_custom_call.1
= control target key start
LH: loop header
LB: loop body
LE: loop exit
PB: predicated region body
PF: predicated region fallthrough
CT: control target
= control target key end

     0   :  { %vm276_vm0 = vcmask 1044480   ;;  %v13821_v5 = vmov 0   ;;  %vm272_vm1 = vcmask 80896   ;;  %vm136_vm2 = vcmask 1041408   ;;  %s18172_s0 = inlined_call_operand.vmem [shape: f32[8,100], index: 0, kind: input, shape index: {}]   ;;  %s18173_s1 = inlined_call_operand.vmem [shape: f32[8,10], index: 1, kind: input, shape index: {}]   ;;  %s18174_s2 = inlined_call_operand.vmem [shape: bf16[100,200], index: 2, kind: input, shape index: {}]   ;;  %s18175_s3 = inlined_call_operand.vmem [shape: f32[1,200], index: 3, kind: input, shape index: {}]   ;;  %s18176_s4 = inlined_call_operand.vmem [shape: bf16[10,1000], index: 4, kind: input, shape index: {}]   ;;  %s18177_s5 = inlined_call_operand.vmem [shape: f32[1,1000], index: 5, kind: input, shape index: {}]   ;;  %s18178_s6 = inlined_call_operand.vmem [shape: bf16[200,1200], index: 6, kind: input, shape index: {}]   ;;  %s18179_s7 = inlined_call_operand.vmem [shape: bf16[1000,1200], index: 7, kind: input, shape index: {}]   ;;  %s18180_s8 = inlined_call_operand.vmem [shape: f32[1,1200], index: 8, kind: input, shape index: {}]   ;;  %s18181_s9 = inlined_call_operand.vmem [shape: bf16[1200,784], index: 9, kind: input, shape index: {}]   ;;  %s18182_s10 = inlined_call_operand.vmem [shape: f32[1,784], index: 10, kind: input, shape index: {}]   ;;  %s18183_s11 = inlined_call_operand.hbm [shape: f32[8,784], index: 11, kind: output, shape index: {}]  }
   0x1   :  { %v190_v0 = vld [vmem:[%s18176_s4] sm:$0xff]  ;;  %333 = vmatprep.mubr.bf16.mxu1 %v13821_v5  ;;  %v191_v6 = vld [vmem:[%s18176_s4 + $0x8] sm:$0xff]  ;;  %175 = vmatprep.mubr.bf16.mxu0 %v13821_v5  ;;  %v192_v10 = vld [vmem:[%s18176_s4 + $0x10] sm:$0xff]  ;;  %vm132_vm3 = vcmask 818176   ;;  %vm4356_vm4 = vcmask 850944   ;;  %vm4360_vm5 = vcmask 1043456  }
   0x2   :  { %v194_v1 = vld [vmem:[%s18176_s4 + $0x20] sm:$0x11]  ;;  %v195_v7 = vld [vmem:[%s18176_s4 + $0x28] sm:$0x11]  ;;  %v196_v11 = vld [vmem:[%s18176_s4 + $0x30] sm:$0x11] }
   0x3   :  { %v188_v2 = vld [vmem:[%s18173_s1] sm:$0xff]  ;;  %v10396_v3 = vcombine.high %v190_v0, %v194_v1  ;;  %v10395_v4 = vcombine.low %v190_v0, %v194_v1  ;;  %v10398_v8 = vcombine.high %v191_v6, %v195_v7  ;;  %v10397_v9 = vcombine.low %v191_v6, %v195_v7  ;;  %v11872_v18 = vld [vmem:[%s18174_s2 + $0x14] ss:$8 sps:$4 sm:$0xff]   ;;  %v11874_v19 = vld [vmem:[%s18174_s2 + $0x10] ss:$8 sps:$4 sm:$0xff]  }
   0x4   :  { %v13908_v13 = vpack.c.bf16 %v188_v2, %v188_v2  ;;  %v11869_v14 = vld [vmem:[%s18174_s2 + $0x4] ss:$8 sps:$4 sm:$0xff]   ;;  %v11871_v15 = vld [vmem:[%s18174_s2] ss:$8 sps:$4 sm:$0xff]   ;;  %v10400_v17 = vcombine.high %v192_v10, %v196_v11  ;;  %v10399_v21 = vcombine.low %v192_v10, %v196_v11  ;;  %v193_v22 = vld [vmem:[%s18176_s4 + $0x18] sm:$0xff] }
   0x5   :  { %10403 = vmatprep.subr.msk.bf16.mxu1 %vm276_vm0, %v10396_v3  ;;  %v278_v12 = vsel %vm276_vm0, %v10395_v4, 0  ;;  %v284_v16 = vsel %vm276_vm0, %v10397_v9, 0  ;;  %143 = vmatprep.subr.bf16.mxu0 %v11869_v14  ;;  %v11875_v20 = vld [vmem:[%s18174_s2 + $0x24] ss:$8 sps:$4 sm:$0xff]   ;;  %v197_v23 = vld [vmem:[%s18176_s4 + $0x38] sm:$0x11] }
   0x6   :  { %302 = vmatpush1.bf16.msra.mxu1 %v278_v12  ;;  %144 = vmatpush1.bf16.msra.mxu0 %v11871_v15  ;;  %v11877_v24 = vld [vmem:[%s18174_s2 + $0x20] ss:$8 sps:$4 sm:$0xff]   ;;  %v11878_v25 = vld [vmem:[%s18174_s2 + $0x34] ss:$8 sps:$4 sm:$0xff]   ;;  %v290_v26 = vsel %vm276_vm0, %v10399_v21, 0  ;;  %v10402_v27 = vcombine.high %v193_v22, %v197_v23  ;;  %v10401_v30 = vcombine.low %v193_v22, %v197_v23 }
   0x7   :  { %10405 = vmatprep.subr.msk.bf16.mxu1 %vm276_vm0, %v10398_v8  ;;  %145 = vmatprep.subr.bf16.mxu0 %v11872_v18  ;;  %v11880_v28 = vld [vmem:[%s18174_s2 + $0x30] ss:$8 sps:$4 sm:$0xff]   ;;  %v11881_v29 = vld [vmem:[%s18174_s2 + $0x44] ss:$8 sps:$4 sm:$0xff]   ;;  %v11883_v31 = vld [vmem:[%s18174_s2 + $0x40] ss:$8 sps:$4 sm:$0xff]  }
   0x8   :  { %v11884_v32 = vld [vmem:[%s18174_s2 + $0x54] ss:$8 sps:$4 sm:$0xff]   ;;  %v54_v33 = vld [vmem:[%s18174_s2 + $0x60] sm:$0x33]  ;;  %v296_v34 = vsel %vm276_vm0, %v10401_v30, 0 }
   0x9   :  { %10404 = vmatmul.mubr.msk.bf16.vlgmr.msra.gmra.mrb[0].mxu1 %vm272_vm1, %v13908_v13  ;;  %v11900_v35 = vld [vmem:[%s18179_s7 + $0x504] ss:$40 sps:$4 sm:$0xff]   ;;  %v11886_v36 = vld [vmem:[%s18174_s2 + $0x50] ss:$8 sps:$4 sm:$0xff]   ;;  %v10392_v37 = vcombine.high %v54_v33, %v54_v33  ;;  %v10391_v38 = vcombine.low %v54_v33, %v54_v33  ;;  %v11898_v42 = vld [vmem:[%s18179_s7 + $0x500] ss:$40 sps:$4 sm:$0xff]  }
   0xa   :  { %343 = vmatpush1.bf16.msra.mxu1 %v284_v16  ;;  %374 = vmatprep.mubr.bf16.mxu1 %v13821_v5  ;;  %v40_v39 = vld [vmem:[%s18172_s0] sm:$0xff]  ;;  %v11906_v44 = vld [vmem:[%s18179_s7 + $0x554] ss:$40 sps:$4 sm:$0xff]   ;;  %v11904_v47 = vld [vmem:[%s18179_s7 + $0x550] ss:$40 sps:$4 sm:$0xff]  }
   0xb   :  { %10407 = vmatprep.subr.msk.bf16.mxu1 %vm276_vm0, %v10400_v17  ;;  %146 = vmatpush1.bf16.msra.mxu0 %v11874_v19  ;;  %v138_v40 = vsel %vm136_vm2, %v10391_v38, 0  ;;  %v11891_v41 = vld [vmem:[%s18179_s7 + $0x4] ss:$40 sps:$4 sm:$0xff]   ;;  %v41_v43 = vpack.c.bf16 %v40_v39, %v40_v39  ;;  %v11889_v45 = vld [vmem:[%s18179_s7] ss:$40 sps:$4 sm:$0xff]  }
   0xc   :  { %147 = vmatprep.subr.bf16.mxu0 %v11875_v20  ;;  %v11894_v46 = vld [vmem:[%s18179_s7 + $0x54] ss:$40 sps:$4 sm:$0xff]   ;;  %v11912_v48 = vld [vmem:[%s18179_s7 + $0x5a4] ss:$40 sps:$4 sm:$0xff]   ;;  %v11892_v49 = vld [vmem:[%s18179_s7 + $0x50] ss:$40 sps:$4 sm:$0xff]  }
   0xd   :  { %v11897_v50 = vld [vmem:[%s18179_s7 + $0xa4] ss:$40 sps:$4 sm:$0xff]   ;;  %v11910_v51 = vld [vmem:[%s18179_s7 + $0x5a0] ss:$40 sps:$4 sm:$0xff]   ;;  %v11918_v52 = vld [vmem:[%s18179_s7 + $0x5f4] ss:$40 sps:$4 sm:$0xff]  }
   0xe   :  { %v11895_v53 = vld [vmem:[%s18179_s7 + $0xa0] ss:$40 sps:$4 sm:$0xff]   ;;  %v11903_v54 = vld [vmem:[%s18179_s7 + $0xf4] ss:$40 sps:$4 sm:$0xff]   ;;  %v11916_v55 = vld [vmem:[%s18179_s7 + $0x5f0] ss:$40 sps:$4 sm:$0xff]  }
   0xf   :  { %148 = vmatpush1.bf16.msra.mxu0 %v11877_v24  ;;  %v11924_v56 = vld [vmem:[%s18179_s7 + $0x644] ss:$40 sps:$4 sm:$0xff]   ;;  %v11901_v57 = vld [vmem:[%s18179_s7 + $0xf0] ss:$40 sps:$4 sm:$0xff]   ;;  %v11907_v59 = vld [vmem:[%s18179_s7 + $0x140] ss:$40 sps:$4 sm:$0xff]  }
  0x10   :  { %149 = vmatprep.subr.bf16.mxu0 %v11878_v25  ;;  %v11909_v58 = vld [vmem:[%s18179_s7 + $0x144] ss:$40 sps:$4 sm:$0xff]   ;;  %v11922_v60 = vld [vmem:[%s18179_s7 + $0x640] ss:$40 sps:$4 sm:$0xff]   ;;  %v11930_v61 = vld [vmem:[%s18179_s7 + $0x694] ss:$40 sps:$4 sm:$0xff]  }
  0x11   :  { %10406 = vmatmul.mubr.msk.bf16.vlgmr.msra.gmra.mrb[4].mxu1 %vm272_vm1, %v13908_v13  ;;  %v11915_v62 = vld [vmem:[%s18179_s7 + $0x194] ss:$40 sps:$4 sm:$0xff]   ;;  %v11928_v63 = vld [vmem:[%s18179_s7 + $0x690] ss:$40 sps:$4 sm:$0xff]   ;;  %v11936_v0 = vld [vmem:[%s18179_s7 + $0x6e4] ss:$40 sps:$4 sm:$0xff]  }
  0x12   :  { %384 = vmatpush1.bf16.msra.mxu1 %v290_v26  ;;  %415 = vmatprep.mubr.bf16.mxu1 %v13821_v5  ;;  %v11913_v1 = vld [vmem:[%s18179_s7 + $0x190] ss:$40 sps:$4 sm:$0xff]   ;;  %v11921_v2 = vld [vmem:[%s18179_s7 + $0x1e4] ss:$40 sps:$4 sm:$0xff]   ;;  %v11934_v3 = vld [vmem:[%s18179_s7 + $0x6e0] ss:$40 sps:$4 sm:$0xff]  }
  0x13   :  { %10409 = vmatprep.subr.msk.bf16.mxu1 %vm276_vm0, %v10402_v27  ;;  %150 = vmatpush1.bf16.msra.mxu0 %v11880_v28  ;;  %v11942_v4 = vld [vmem:[%s18179_s7 + $0x734] ss:$40 sps:$4 sm:$0xff]   ;;  %v11919_v6 = vld [vmem:[%s18179_s7 + $0x1e0] ss:$40 sps:$4 sm:$0xff]   ;;  %v11940_v8 = vld [vmem:[%s18179_s7 + $0x730] ss:$40 sps:$4 sm:$0xff]  }
  0x14   :  { %151 = vmatprep.subr.bf16.mxu0 %v11881_v29  ;;  %v11927_v7 = vld [vmem:[%s18179_s7 + $0x234] ss:$40 sps:$4 sm:$0xff]   ;;  %v11948_v9 = vld [vmem:[%s18179_s7 + $0x784] ss:$40 sps:$4 sm:$0xff]   ;;  %v11925_v10 = vld [vmem:[%s18179_s7 + $0x230] ss:$40 sps:$4 sm:$0xff]  }
  0x15   :  { %v11933_v11 = vld [vmem:[%s18179_s7 + $0x284] ss:$40 sps:$4 sm:$0xff]   ;;  %v11946_v12 = vld [vmem:[%s18179_s7 + $0x780] ss:$40 sps:$4 sm:$0xff]   ;;  %v11939_v15 = vld [vmem:[%s18179_s7 + $0x2d4] ss:$40 sps:$4 sm:$0xff]  }
  0x16   :  { %v11931_v14 = vld [vmem:[%s18179_s7 + $0x280] ss:$40 sps:$4 sm:$0xff]   ;;  %v11952_v16 = vld [vmem:[%s18179_s7 + $0x7d0] ss:$40 sps:$4 sm:$0xff]   ;;  %v11960_v17 = vld [vmem:[%s18179_s7 + $0x824] ss:$40 sps:$4 sm:$0xff]  }
  0x17   :  { %152 = vmatpush1.bf16.msra.mxu0 %v11883_v31  ;;  %v11937_v18 = vld [vmem:[%s18179_s7 + $0x2d0] ss:$40 sps:$4 sm:$0xff]   ;;  %v11945_v19 = vld [vmem:[%s18179_s7 + $0x324] ss:$40 sps:$4 sm:$0xff]   ;;  %v11958_v20 = vld [vmem:[%s18179_s7 + $0x820] ss:$40 sps:$4 sm:$0xff]  }
  0x18   :  { %153 = vmatprep.subr.bf16.mxu0 %v11884_v32  ;;  %v11966_v21 = vld [vmem:[%s18179_s7 + $0x874] ss:$40 sps:$4 sm:$0xff]   ;;  %v11943_v22 = vld [vmem:[%s18179_s7 + $0x320] ss:$40 sps:$4 sm:$0xff]   ;;  %v11964_v24 = vld [vmem:[%s18179_s7 + $0x870] ss:$40 sps:$4 sm:$0xff]  }
  0x19   :  { %10408 = vmatmul.mubr.msk.bf16.vlgmr.msra.gmra.mrb[8].mxu1 %vm272_vm1, %v13908_v13  ;;  %v11951_v23 = vld [vmem:[%s18179_s7 + $0x374] ss:$40 sps:$4 sm:$0xff]   ;;  %v11949_v25 = vld [vmem:[%s18179_s7 + $0x370] ss:$40 sps:$4 sm:$0xff]   ;;  %v11957_v26 = vld [vmem:[%s18179_s7 + $0x3c4] ss:$40 sps:$4 sm:$0xff]  }
  0x1a   :  { %425 = vmatpush1.bf16.msra.mxu1 %v296_v34  ;;  %456 = vmatprep.mubr.bf16.mxu1 %v13821_v5  ;;  %v11955_v27 = vld [vmem:[%s18179_s7 + $0x3c0] ss:$40 sps:$4 sm:$0xff]   ;;  %v11963_v28 = vld [vmem:[%s18179_s7 + $0x414] ss:$40 sps:$4 sm:$0xff]   ;;  %v11961_v29 = vld [vmem:[%s18179_s7 + $0x410] ss:$40 sps:$4 sm:$0xff]  }
  0x1b   :  { %4432 = vmatprep.subr.bf16.mxu1 %v11900_v35  ;;  %154 = vmatpush1.bf16.msra.mxu0 %v11886_v36  ;;  %v11969_v30 = vld [vmem:[%s18179_s7 + $0x464] ss:$40 sps:$4 sm:$0xff]   ;;  %v11967_v32 = vld [vmem:[%s18179_s7 + $0x460] ss:$40 sps:$4 sm:$0xff]   ;;  %v11975_v34 = vld [vmem:[%s18179_s7 + $0x4b4] ss:$40 sps:$4 sm:$0xff]  }
  0x1c   :  { %10393 = vmatprep.subr.msk.bf16.mxu0 %vm136_vm2, %v10392_v37  ;;  %v11972_v31 = vld [vmem:[%s18179_s7 + $0x8c4] ss:$40 sps:$4 sm:$0xff]   ;;  %v11970_v33 = vld [vmem:[%s18179_s7 + $0x8c0] ss:$40 sps:$4 sm:$0xff]   ;;  %v11978_v35 = vld [vmem:[%s18179_s7 + $0x914] ss:$40 sps:$4 sm:$0xff]  }
  0x1d   :  { %v11973_v36 = vld [vmem:[%s18179_s7 + $0x4b0] ss:$40 sps:$4 sm:$0xff]   ;;  %v11981_v38 = vld [vmem:[%s18179_s7 + $0x964] ss:$40 sps:$4 sm:$0xff]  }
  0x1e   :  { %v11976_v37 = vld [vmem:[%s18179_s7 + $0x910] ss:$40 sps:$4 sm:$0xff]   ;;  %v11984_v39 = vld [vmem:[%s18179_s7 + $0xa04] ss:$40 sps:$4 sm:$0xff]  }
  0x1f   :  { %156 = vmatpush1.bf16.msra.mxu0 %v138_v40  ;;  %v11979_v40 = vld [vmem:[%s18179_s7 + $0x960] ss:$40 sps:$4 sm:$0xff]  }
  0x20   :  { %4391 = vmatprep.subr.bf16.mxu0 %v11891_v41  ;;  %v11987_v41 = vld [vmem:[%s18179_s7 + $0x9b4] ss:$40 sps:$4 sm:$0xff]  }
  0x21   :  { %10410 = vmatmul.mubr.msk.bf16.vlgmr.msra.gmra.mrb[12].mxu1 %vm272_vm1, %v13908_v13  ;;  %v11954_v13 = vld [vmem:[%s18179_s7 + $0x7d4] ss:$40 sps:$4 sm:$0xff]  }
  0x22   :  { %4433 = vmatpush1.bf16.msra.mxu1 %v11898_v42  ;;  %10394 = vmatmul.mubr.msk.bf16.vlgmr.msra.gmra.mrb[0].mxu0 %vm132_vm3, %v41_v43  ;;  %v11985_v42 = vld [vmem:[%s18179_s7 + $0x9b0] ss:$40 sps:$4 sm:$0xff]   ;;  %v11996_v43 = vld [vmem:[%s18179_s7 + $0xf04] ss:$40 sps:$4 sm:$0xff]  }
  0x23   :  { %4434 = vmatprep.subr.bf16.mxu1 %v11906_v44  ;;  %4392 = vmatpush1.bf16.msra.mxu0 %v11889_v45  ;;  %v57_v44 = vlaneseq }
  0x24   :  { %4393 = vmatprep.subr.bf16.mxu0 %v11894_v46  ;;  %v14178_v46 = vld [vmem:[%s18177_s5] sm:$0xff] }
  0x25   :  { %v14173_v45 = vshrl.u32 %v57_v44, 7 }
  0x26   :  { %4435 = vmatpush1.bf16.msra.mxu1 %v11904_v47 }
  0x27   :  { %4436 = vmatprep.subr.bf16.mxu1 %v11912_v48  ;;  %4394 = vmatpush1.bf16.msra.mxu0 %v11892_v49  ;;  %v14181_v47 = vsub.s32 0, %v14173_v45  ;;  %v14184_v48 = vsub.s32 1, %v14173_v45 }
  0x28   :  { %4395 = vmatprep.subr.bf16.mxu0 %v11897_v50 }
  0x29   :  { %v203_v49 = vrot.slane %v14178_v46, %v14181_v47  ;;  %v207_v50 = vrot.slane %v14178_v46, %v14184_v48 }
  0x2a   :  { %4437 = vmatpush1.bf16.msra.mxu1 %v11910_v51 }
  0x2b   :  { %4438 = vmatprep.subr.bf16.mxu1 %v11918_v52  ;;  %4396 = vmatpush1.bf16.msra.mxu0 %v11895_v53 }
  0x2c   :  { %4397 = vmatprep.subr.bf16.mxu0 %v11903_v54  ;;  %v14191_v54 = vsub.s32 2, %v14173_v45 }
  0x2e   :  { %4439 = vmatpush1.bf16.msra.mxu1 %v11916_v55 }
  0x2f   :  { %4440 = vmatprep.subr.bf16.mxu1 %v11924_v56  ;;  %4398 = vmatpush1.bf16.msra.mxu0 %v11901_v57  ;;  %v14194_v57 = vsub.s32 3, %v14173_v45 }
  0x30   :  { %4399 = vmatprep.subr.bf16.mxu0 %v11909_v58 }
  0x32   :  { %4441 = vmatpush1.bf16.msra.mxu1 %v11922_v60 }
  0x33   :  { %4442 = vmatprep.subr.bf16.mxu1 %v11930_v61  ;;  %4400 = vmatpush1.bf16.msra.mxu0 %v11907_v59  ;;  %v11982_v61 = vld [vmem:[%s18179_s7 + $0xa00] ss:$40 sps:$4 sm:$0xff]  }
  0x34   :  { %4401 = vmatprep.subr.bf16.mxu0 %v11915_v62  ;;  %v211_v62 = vrot.slane %v14178_v46, %v14191_v54 }
  0x36   :  { %4443 = vmatpush1.bf16.msra.mxu1 %v11928_v63 }
  0x37   :  { %4444 = vmatprep.subr.bf16.mxu1 %v11936_v0  ;;  %4402 = vmatpush1.bf16.msra.mxu0 %v11913_v1  ;;  %v215_v0 = vrot.slane %v14178_v46, %v14194_v57 }
  0x38   :  { %4403 = vmatprep.subr.bf16.mxu0 %v11921_v2  ;;  %v11990_v2 = vld [vmem:[%s18179_s7 + $0xa54] ss:$40 sps:$4 sm:$0xff]  }
  0x3a   :  { %4445 = vmatpush1.bf16.msra.mxu1 %v11934_v3 }
  0x3b   :  { %4446 = vmatprep.subr.bf16.mxu1 %v11942_v4  ;;  %4404 = vmatpush1.bf16.msra.mxu0 %v11919_v6  ;;  %v11988_v4 = vld [vmem:[%s18179_s7 + $0xa50] ss:$40 sps:$4 sm:$0xff]  }
  0x3c   :  { %4405 = vmatprep.subr.bf16.mxu0 %v11927_v7 }
  0x3e   :  { %4447 = vmatpush1.bf16.msra.mxu1 %v11940_v8  ;;  %v11993_v8 = vld [vmem:[%s18179_s7 + $0xaa4] ss:$40 sps:$4 sm:$0xff]  }
  0x3f   :  { %4448 = vmatprep.subr.bf16.mxu1 %v11948_v9  ;;  %4406 = vmatpush1.bf16.msra.mxu0 %v11925_v10 }
  0x40   :  { %4407 = vmatprep.subr.bf16.mxu0 %v11933_v11  ;;  %v14219_v11 = vsub.s32 5, %v14173_v45 }
  0x42   :  { %4449 = vmatpush1.bf16.msra.mxu1 %v11946_v12 }
  0x43   :  { %4450 = vmatprep.subr.bf16.mxu1 %v11954_v13  ;;  %4408 = vmatpush1.bf16.msra.mxu0 %v11931_v14 }
  0x44   :  { %4409 = vmatprep.subr.bf16.mxu0 %v11939_v15  ;;  %v11991_v15 = vld [vmem:[%s18179_s7 + $0xaa0] ss:$40 sps:$4 sm:$0xff]  }
  0x46   :  { %4451 = vmatpush1.bf16.msra.mxu1 %v11952_v16  ;;  %v11994_v16 = vld [vmem:[%s18179_s7 + $0xf00] ss:$40 sps:$4 sm:$0xff]  }
  0x47   :  { %4452 = vmatprep.subr.bf16.mxu1 %v11960_v17  ;;  %4410 = vmatpush1.bf16.msra.mxu0 %v11937_v18  ;;  %v223_v18 = vrot.slane %v14178_v46, %v14219_v11 }
  0x48   :  { %4411 = vmatprep.subr.bf16.mxu0 %v11945_v19 }
  0x4a   :  { %4453 = vmatpush1.bf16.msra.mxu1 %v11958_v20  ;;  %v11999_v20 = vld [vmem:[%s18179_s7 + $0xaf4] ss:$40 sps:$4 sm:$0xff]  }
  0x4b   :  { %4454 = vmatprep.subr.bf16.mxu1 %v11966_v21  ;;  %4412 = vmatpush1.bf16.msra.mxu0 %v11943_v22  ;;  %v12002_v21 = vld [vmem:[%s18179_s7 + $0xf54] ss:$40 sps:$4 sm:$0xff]   ;;  %v11997_v22 = vld [vmem:[%s18179_s7 + $0xaf0] ss:$40 sps:$4 sm:$0xff]  }
  0x4c   :  { %4413 = vmatprep.subr.bf16.mxu0 %v11951_v23  ;;  %v12000_v23 = vld [vmem:[%s18179_s7 + $0xf50] ss:$40 sps:$4 sm:$0xff]  }
  0x4e   :  { %4455 = vmatpush1.bf16.msra.mxu1 %v11964_v24 }
  0x4f   :  { %4414 = vmatpush1.bf16.msra.mxu0 %v11949_v25  ;;  %4456 = vmatprep.subr.bf16.mxu1 %v11972_v31 }
  0x50   :  { %4415 = vmatprep.subr.bf16.mxu0 %v11957_v26 }
  0x52   :  { %4457 = vmatpush1.bf16.msra.mxu1 %v11970_v33  ;;  %v12006_v33 = vld [vmem:[%s18179_s7 + $0xfa0] ss:$40 sps:$4 sm:$0xff]  }
  0x53   :  { %4416 = vmatpush1.bf16.msra.mxu0 %v11955_v27  ;;  %4458 = vmatprep.subr.bf16.mxu1 %v11978_v35 }
  0x54   :  { %4417 = vmatprep.subr.bf16.mxu0 %v11963_v28  ;;  %v230_v28 = vsub.s32 7, %v14173_v45 }
  0x56   :  { %4459 = vmatpush1.bf16.msra.mxu1 %v11976_v37  ;;  %v12011_v37 = vld [vmem:[%s18179_s7 + $0xb94] ss:$40 sps:$4 sm:$0xff]  }
  0x57   :  { %4418 = vmatpush1.bf16.msra.mxu0 %v11961_v29  ;;  %4460 = vmatprep.subr.bf16.mxu1 %v11981_v38  ;;  %v12005_v29 = vld [vmem:[%s18179_s7 + $0xb44] ss:$40 sps:$4 sm:$0xff]   ;;  %v12014_v38 = vld [vmem:[%s18179_s7 + $0xff4] ss:$40 sps:$4 sm:$0xff]  }
  0x58   :  { %4419 = vmatprep.subr.bf16.mxu0 %v11969_v30  ;;  %v12008_v30 = vld [vmem:[%s18179_s7 + $0xfa4] ss:$40 sps:$4 sm:$0xff]  }
  0x5a   :  { %4461 = vmatpush1.bf16.msra.mxu1 %v11979_v40  ;;  %v12012_v40 = vld [vmem:[%s18179_s7 + $0xff0] ss:$40 sps:$4 sm:$0xff]  }
  0x5b   :  { %4420 = vmatpush1.bf16.msra.mxu0 %v11967_v32  ;;  %4462 = vmatprep.subr.bf16.mxu1 %v11987_v41  ;;  %v12003_v32 = vld [vmem:[%s18179_s7 + $0xb40] ss:$40 sps:$4 sm:$0xff]  }
  0x5c   :  { %4421 = vmatprep.subr.bf16.mxu0 %v11975_v34 }
  0x5e   :  { %4463 = vmatpush1.bf16.msra.mxu1 %v11985_v42 }
  0x5f   :  { %4422 = vmatpush1.bf16.msra.mxu0 %v11973_v36  ;;  %4514 = vmatprep.subr.bf16.mxu1 %v11996_v43  ;;  %v231_v36 = vrot.slane %v14178_v46, %v230_v28 }
  0x60   :  { %4473 = vmatprep.subr.bf16.mxu0 %v11984_v39  ;;  %v12009_v39 = vld [vmem:[%s18179_s7 + $0xb90] ss:$40 sps:$4 sm:$0xff]  }
  0xdc   :  { %v335_v51 = vpop.f32.mrb[0].mxu1 }
  0xdd   :  { %v336_v52 = vadd.f32 %v335_v51, %v203_v49  ;;  %v337_v53 = vpop.f32.mrb[1].mxu1  ;;  %v12017_v49 = vld [vmem:[%s18179_s7 + $0xbe4] ss:$40 sps:$4 sm:$0xff]  }
  0xde   :  { %v338_v55 = vadd.f32 %v337_v53, %v207_v50  ;;  %v339_v56 = vpop.f32.mrb[2].mxu1  ;;  %v12020_v50 = vld [vmem:[%s18179_s7 + $0x1044] ss:$40 sps:$4 sm:$0xff]   ;;  %v12018_v53 = vld [vmem:[%s18179_s7 + $0x1040] ss:$40 sps:$4 sm:$0xff]  }
  0xdf   :  { %v465_v58 = vmax.f32 %v336_v52, 0.0  ;;  %v340_v59 = vpop.f32.mrb[3].mxu1  ;;  %v12015_v52 = vld [vmem:[%s18179_s7 + $0xbe0] ss:$40 sps:$4 sm:$0xff]  }
  0xe0   :  { %v466_v60 = vmax.f32 %v338_v55, 0.0  ;;  %v12026_v59 = vld [vmem:[%s18179_s7 + $0x1094] ss:$40 sps:$4 sm:$0xff]  }
  0xe1   :  { %v14205_v1 = vpack.c.bf16 %v465_v58, %v465_v58  ;;  %v12023_v58 = vld [vmem:[%s18179_s7 + $0xc34] ss:$40 sps:$4 sm:$0xff]  }
  0xe2   :  { %v14201_v63 = vpack.c.bf16 %v466_v60, %v466_v60  ;;  %v12021_v60 = vld [vmem:[%s18179_s7 + $0xc30] ss:$40 sps:$4 sm:$0xff]  }
  0xe4   :  { %v376_v3 = vpop.f32.mrb[4].mxu1  ;;  %4423 = vmatprep.mubr.bf16.mxu0 %v14201_v63 }
  0xe5   :  { %v377_v6 = vadd.f32 %v376_v3, %v211_v62  ;;  %v378_v7 = vpop.f32.mrb[5].mxu1  ;;  %4424 = vmatmul.mubr.bf16.vlgmr.msra.gmra.mrb[4].mxu0 %v14205_v1  ;;  %v12029_v62 = vld [vmem:[%s18179_s7 + $0xc84] ss:$40 sps:$4 sm:$0xff]   ;;  %v12030_v3 = vld [vmem:[%s18179_s7 + $0x10e0] ss:$40 sps:$4 sm:$0xff]  }
  0xe6   :  { %v379_v9 = vadd.f32 %v378_v7, %v215_v0  ;;  %4474 = vmatpush1.bf16.msra.mxu0 %v11982_v61  ;;  %v380_v10 = vpop.f32.mrb[6].mxu1  ;;  %v12024_v61 = vld [vmem:[%s18179_s7 + $0x1090] ss:$40 sps:$4 sm:$0xff]   ;;  %v12032_v0 = vld [vmem:[%s18179_s7 + $0x10e4] ss:$40 sps:$4 sm:$0xff]  }
  0xe7   :  { %v467_v12 = vmax.f32 %v377_v6, 0.0  ;;  %v381_v13 = vpop.f32.mrb[7].mxu1  ;;  %4475 = vmatprep.subr.bf16.mxu0 %v11990_v2  ;;  %v12027_v2 = vld [vmem:[%s18179_s7 + $0xc80] ss:$40 sps:$4 sm:$0xff]   ;;  %v12038_v6 = vld [vmem:[%s18179_s7 + $0x1134] ss:$40 sps:$4 sm:$0xff]  }
  0xe8   :  { %v468_v14 = vmax.f32 %v379_v9, 0.0  ;;  %v12033_v7 = vld [vmem:[%s18179_s7 + $0xcd0] ss:$40 sps:$4 sm:$0xff]   ;;  %v12041_v9 = vld [vmem:[%s18179_s7 + $0xd24] ss:$40 sps:$4 sm:$0xff]  }
  0xe9   :  { %v14231_v19 = vpack.c.bf16 %v467_v12, %v467_v12  ;;  %v12044_v10 = vld [vmem:[%s18179_s7 + $0x1184] ss:$40 sps:$4 sm:$0xff]   ;;  %v12039_v12 = vld [vmem:[%s18179_s7 + $0xd20] ss:$40 sps:$4 sm:$0xff]  }
  0xea   :  { %v14227_v17 = vpack.c.bf16 %v468_v14, %v468_v14  ;;  %4476 = vmatpush1.bf16.msra.mxu0 %v11988_v4  ;;  %v12035_v4 = vld [vmem:[%s18179_s7 + $0xcd4] ss:$40 sps:$4 sm:$0xff]   ;;  %v12042_v13 = vld [vmem:[%s18179_s7 + $0x1180] ss:$40 sps:$4 sm:$0xff]  }
  0xeb   :  { %4477 = vmatprep.subr.bf16.mxu0 %v11993_v8  ;;  %v12036_v8 = vld [vmem:[%s18179_s7 + $0x1130] ss:$40 sps:$4 sm:$0xff]   ;;  %v12047_v14 = vld [vmem:[%s18179_s7 + $0xd74] ss:$40 sps:$4 sm:$0xff]  }
  0xec   :  { %4464 = vmatprep.mubr.bf16.mxu1 %v14227_v17  ;;  %v14246_v24 = vpop.f32.mrb[8].mxu1 }
  0xed   :  { %4465 = vmatmul.mubr.bf16.vlgmr.msra.gmra.mrb[16].mxu1 %v14231_v19  ;;  %v419_v25 = vpop.f32.mrb[9].mxu1 }
  0xee   :  { %4478 = vmatpush1.bf16.msra.mxu0 %v11991_v15  ;;  %4515 = vmatpush1.bf16.msra.mxu1 %v11994_v16  ;;  %v420_v26 = vadd.f32 %v419_v25, %v223_v18  ;;  %v421_v27 = vpop.f32.mrb[10].mxu1  ;;  %v12050_v15 = vld [vmem:[%s18179_s7 + $0x11d4] ss:$40 sps:$4 sm:$0xff]   ;;  %v12045_v16 = vld [vmem:[%s18179_s7 + $0xd70] ss:$40 sps:$4 sm:$0xff]   ;;  %v14371_v25 = vsub.s32 4, %v14173_v45 }
  0xef   :  { %4479 = vmatprep.subr.bf16.mxu0 %v11999_v20  ;;  %4516 = vmatprep.subr.bf16.mxu1 %v12002_v21  ;;  %v422_v31 = vpop.f32.mrb[11].mxu1  ;;  %v12048_v18 = vld [vmem:[%s18179_s7 + $0x11d0] ss:$40 sps:$4 sm:$0xff]   ;;  %v12053_v20 = vld [vmem:[%s18179_s7 + $0xdc4] ss:$40 sps:$4 sm:$0xff]  }
  0xf0   :  { %v470_v34 = vmax.f32 %v420_v26, 0.0  ;;  %v12056_v21 = vld [vmem:[%s18179_s7 + $0x1224] ss:$40 sps:$4 sm:$0xff]   ;;  %v12059_v26 = vld [vmem:[%s18179_s7 + $0xe14] ss:$40 sps:$4 sm:$0xff]   ;;  %v14386_v31 = vsub.s32 6, %v14173_v45 }
  0xf1   :  { %v12062_v27 = vld [vmem:[%s18179_s7 + $0x1274] ss:$40 sps:$4 sm:$0xff]  }
  0xf2   :  { %4480 = vmatpush1.bf16.msra.mxu0 %v11997_v22  ;;  %4517 = vmatpush1.bf16.msra.mxu1 %v12000_v23  ;;  %v14262_v35 = vpack.c.bf16 %v470_v34, %v470_v34  ;;  %v12051_v22 = vld [vmem:[%s18179_s7 + $0xdc0] ss:$40 sps:$4 sm:$0xff]   ;;  %v12068_v34 = vld [vmem:[%s18179_s7 + $0x12c4] ss:$40 sps:$4 sm:$0xff]  }
  0xf3   :  { %4481 = vmatprep.subr.bf16.mxu0 %v12005_v29  ;;  %4518 = vmatprep.subr.bf16.mxu1 %v12008_v30  ;;  %v12054_v23 = vld [vmem:[%s18179_s7 + $0x1220] ss:$40 sps:$4 sm:$0xff]   ;;  %v12057_v29 = vld [vmem:[%s18179_s7 + $0xe10] ss:$40 sps:$4 sm:$0xff]  }
  0xf4   :  { %v14279_v41 = vpop.f32.mrb[12].mxu1  ;;  %4505 = vmatprep.mubr.bf16.mxu0 %v14262_v35  ;;  %v12060_v30 = vld [vmem:[%s18179_s7 + $0x1270] ss:$40 sps:$4 sm:$0xff]  }
  0xf5   :  { %v460_v42 = vpop.f32.mrb[13].mxu1 }
  0xf6   :  { %4482 = vmatpush1.bf16.msra.mxu0 %v12003_v32  ;;  %4519 = vmatpush1.bf16.msra.mxu1 %v12006_v33  ;;  %v461_v43 = vadd.f32 %v460_v42, %v231_v36  ;;  %v462_v44 = vpop.f32.mrb[14].mxu1  ;;  %v219_v32 = vrot.slane %v14178_v46, %v14371_v25  ;;  %v12065_v33 = vld [vmem:[%s18179_s7 + $0xe64] ss:$40 sps:$4 sm:$0xff]   ;;  %v12063_v36 = vld [vmem:[%s18179_s7 + $0xe60] ss:$40 sps:$4 sm:$0xff]  }
  0xf7   :  { %4483 = vmatprep.subr.bf16.mxu0 %v12011_v37  ;;  %4520 = vmatprep.subr.bf16.mxu1 %v12014_v38  ;;  %v463_v51 = vpop.f32.mrb[15].mxu1  ;;  %v12066_v37 = vld [vmem:[%s18179_s7 + $0x12c0] ss:$40 sps:$4 sm:$0xff]   ;;  %v227_v38 = vrot.slane %v14178_v46, %v14386_v31  ;;  %v12074_v42 = vld [vmem:[%s18179_s7 + $0x1314] ss:$40 sps:$4 sm:$0xff]  }
  0xf8   :  { %v472_v55 = vmax.f32 %v461_v43, 0.0  ;;  %v1226_v43 = vld [vmem:[%s18179_s7 + $0x1360] sm:$0xff]  ;;  %v12069_v46 = vld [vmem:[%s18179_s7 + $0xeb0] ss:$40 sps:$4 sm:$0xff]   ;;  %v12078_v51 = vld [vmem:[%s18179_s7 + $0x50c] ss:$40 sps:$4 sm:$0xff]  }
  0xf9   :  { %v459_v44 = vadd.f32 %v14279_v41, %v227_v38  ;;  %v12119_v38 = vld [vmem:[%s18179_s7 + $0x738] ss:$40 sps:$4 sm:$0xff]  }
  0xfa   :  { %4484 = vmatpush1.bf16.msra.mxu0 %v12009_v39  ;;  %4521 = vmatpush1.bf16.msra.mxu1 %v12012_v40  ;;  %v14294_v56 = vpack.c.bf16 %v472_v55, %v472_v55  ;;  %v418_v39 = vadd.f32 %v14246_v24, %v219_v32  ;;  %v12071_v40 = vld [vmem:[%s18179_s7 + $0xeb4] ss:$40 sps:$4 sm:$0xff]   ;;  %v12072_v24 = vld [vmem:[%s18179_s7 + $0x1310] ss:$40 sps:$4 sm:$0xff]  }
  0xfb   :  { %4485 = vmatprep.subr.bf16.mxu0 %v12017_v49  ;;  %4522 = vmatprep.subr.bf16.mxu1 %v12020_v50  ;;  %v11032_v50 = vcombine.high %v1226_v43, %v1226_v43  ;;  %v12076_v55 = vld [vmem:[%s18179_s7 + $0x508] ss:$40 sps:$4 sm:$0xff]   ;;  %v12110_v32 = vld [vmem:[%s18179_s7 + $0x198] ss:$40 sps:$4 sm:$0xff]  }
  0xfc   :  { %11042 = vmatprep.mubr.msk.bf16.mxu1 %vm4356_vm4, %v14294_v56  ;;  %v469_v49 = vmax.f32 %v418_v39, 0.0  ;;  %v12124_v39 = vld [vmem:[%s18179_s7 + $0x23c] ss:$40 sps:$4 sm:$0xff]  }
  0xfe   :  { %4486 = vmatpush1.bf16.msra.mxu0 %v12015_v52  ;;  %4523 = vmatpush1.bf16.msra.mxu1 %v12018_v53  ;;  %v11031_v52 = vcombine.low %v1226_v43, %v1226_v43  ;;  %v471_v53 = vmax.f32 %v459_v44, 0.0  ;;  %v14427_v41 = vpack.c.bf16 %v469_v49, %v469_v49  ;;  %v12125_v43 = vld [vmem:[%s18179_s7 + $0x788] ss:$40 sps:$4 sm:$0xff]   ;;  %v12133_v44 = vld [vmem:[%s18179_s7 + $0x7dc] ss:$40 sps:$4 sm:$0xff]  }
  0xff   :  { %4487 = vmatprep.subr.bf16.mxu0 %v12023_v58  ;;  %4524 = vmatprep.subr.bf16.mxu1 %v12026_v59  ;;  %v12082_v59 = vld [vmem:[%s18179_s7 + $0xc] ss:$40 sps:$4 sm:$0xff]   ;;  %v12131_v49 = vld [vmem:[%s18179_s7 + $0x7d8] ss:$40 sps:$4 sm:$0xff]  }
 0x100   :  { %v4362_v58 = vsel %vm4360_vm5, %v11031_v52, 0  ;;  %v12139_v52 = vld [vmem:[%s18179_s7 + $0x82c] ss:$40 sps:$4 sm:$0xff]  }
 0x102   :  { %4488 = vmatpush1.bf16.msra.mxu0 %v12021_v60  ;;  %4525 = vmatpush1.bf16.msra.mxu1 %v12024_v61  ;;  %v12080_v60 = vld [vmem:[%s18179_s7 + $0x8] ss:$40 sps:$4 sm:$0xff]   ;;  %v12085_v61 = vld [vmem:[%s18179_s7 + $0x55c] ss:$40 sps:$4 sm:$0xff]  }
 0x103   :  { %4489 = vmatprep.subr.bf16.mxu0 %v12029_v62  ;;  %4526 = vmatprep.subr.bf16.mxu1 %v12032_v0  ;;  %v14440_v62 = vpack.c.bf16 %v471_v53, %v471_v53  ;;  %v12083_v0 = vld [vmem:[%s18179_s7 + $0x558] ss:$40 sps:$4 sm:$0xff]   ;;  %v12137_v53 = vld [vmem:[%s18179_s7 + $0x828] ss:$40 sps:$4 sm:$0xff]  }
 0x106   :  { %4490 = vmatpush1.bf16.msra.mxu0 %v12027_v2  ;;  %4527 = vmatpush1.bf16.msra.mxu1 %v12030_v3  ;;  %v12088_v2 = vld [vmem:[%s18179_s7 + $0x5c] ss:$40 sps:$4 sm:$0xff]   ;;  %v12091_v3 = vld [vmem:[%s18179_s7 + $0x5ac] ss:$40 sps:$4 sm:$0xff]  }
 0x107   :  { %4491 = vmatprep.subr.bf16.mxu0 %v12035_v4  ;;  %4528 = vmatprep.subr.bf16.mxu1 %v12038_v6  ;;  %v12086_v4 = vld [vmem:[%s18179_s7 + $0x58] ss:$40 sps:$4 sm:$0xff]   ;;  %v12089_v6 = vld [vmem:[%s18179_s7 + $0x5a8] ss:$40 sps:$4 sm:$0xff]  }
 0x10a   :  { %4492 = vmatpush1.bf16.msra.mxu0 %v12033_v7  ;;  %4529 = vmatpush1.bf16.msra.mxu1 %v12036_v8  ;;  %v12094_v7 = vld [vmem:[%s18179_s7 + $0xac] ss:$40 sps:$4 sm:$0xff]   ;;  %v12092_v8 = vld [vmem:[%s18179_s7 + $0xa8] ss:$40 sps:$4 sm:$0xff]  }
 0x10b   :  { %4493 = vmatprep.subr.bf16.mxu0 %v12041_v9  ;;  %4530 = vmatprep.subr.bf16.mxu1 %v12044_v10  ;;  %v12097_v9 = vld [vmem:[%s18179_s7 + $0x5fc] ss:$40 sps:$4 sm:$0xff]   ;;  %v12095_v10 = vld [vmem:[%s18179_s7 + $0x5f8] ss:$40 sps:$4 sm:$0xff]  }
 0x10e   :  { %4494 = vmatpush1.bf16.msra.mxu0 %v12039_v12  ;;  %4531 = vmatpush1.bf16.msra.mxu1 %v12042_v13  ;;  %v12100_v12 = vld [vmem:[%s18179_s7 + $0xfc] ss:$40 sps:$4 sm:$0xff]   ;;  %v12098_v13 = vld [vmem:[%s18179_s7 + $0xf8] ss:$40 sps:$4 sm:$0xff]  }
 0x10f   :  { %4495 = vmatprep.subr.bf16.mxu0 %v12047_v14  ;;  %4532 = vmatprep.subr.bf16.mxu1 %v12050_v15  ;;  %v12103_v14 = vld [vmem:[%s18179_s7 + $0x64c] ss:$40 sps:$4 sm:$0xff]   ;;  %v12101_v15 = vld [vmem:[%s18179_s7 + $0x648] ss:$40 sps:$4 sm:$0xff]  }
 0x112   :  { %4496 = vmatpush1.bf16.msra.mxu0 %v12045_v16  ;;  %4533 = vmatpush1.bf16.msra.mxu1 %v12048_v18  ;;  %v12106_v16 = vld [vmem:[%s18179_s7 + $0x14c] ss:$40 sps:$4 sm:$0xff]   ;;  %v14488_v18 = vpop.f32.mrb[0].mxu0 }
 0x113   :  { %4497 = vmatprep.subr.bf16.mxu0 %v12053_v20  ;;  %4534 = vmatprep.subr.bf16.mxu1 %v12056_v21  ;;  %v12104_v20 = vld [vmem:[%s18179_s7 + $0x148] ss:$40 sps:$4 sm:$0xff]   ;;  %v12109_v21 = vld [vmem:[%s18179_s7 + $0x69c] ss:$40 sps:$4 sm:$0xff]  }
 0x116   :  { %4498 = vmatpush1.bf16.msra.mxu0 %v12051_v22  ;;  %4535 = vmatpush1.bf16.msra.mxu1 %v12054_v23  ;;  %v12107_v22 = vld [vmem:[%s18179_s7 + $0x698] ss:$40 sps:$4 sm:$0xff]   ;;  %v12112_v23 = vld [vmem:[%s18179_s7 + $0x19c] ss:$40 sps:$4 sm:$0xff]  }
 0x117   :  { %4499 = vmatprep.subr.bf16.mxu0 %v12059_v26  ;;  %4536 = vmatprep.subr.bf16.mxu1 %v12062_v27  ;;  %v14502_v26 = vpop.f32.mrb[1].mxu0 }
 0x118   :  { %v181_v27 = vpop.f32.mrb[2].mxu0 }
 0x119   :  { %v12173_v27 = vld [vmem:[%s18179_s7 + $0xf08] ss:$40 sps:$4 sm:$0xff]  }
 0x11a   :  { %4500 = vmatpush1.bf16.msra.mxu0 %v12057_v29  ;;  %4537 = vmatpush1.bf16.msra.mxu1 %v12060_v30  ;;  %v182_v29 = vpop.f32.mrb[3].mxu0  ;;  %v12115_v30 = vld [vmem:[%s18179_s7 + $0x6ec] ss:$40 sps:$4 sm:$0xff]  }
 0x11b   :  { %4501 = vmatprep.subr.bf16.mxu0 %v12065_v33  ;;  %4538 = vmatprep.subr.bf16.mxu1 %v12068_v34  ;;  %v12113_v33 = vld [vmem:[%s18179_s7 + $0x6e8] ss:$40 sps:$4 sm:$0xff]   ;;  %v12118_v34 = vld [vmem:[%s18179_s7 + $0x1ec] ss:$40 sps:$4 sm:$0xff]  }
 0x11c   :  { %v12178_v29 = vld [vmem:[%s18179_s7 + $0xa0c] ss:$40 sps:$4 sm:$0xff]  }
 0x11e   :  { %4502 = vmatpush1.bf16.msra.mxu0 %v12063_v36  ;;  %4539 = vmatpush1.bf16.msra.mxu1 %v12066_v37  ;;  %v12116_v36 = vld [vmem:[%s18179_s7 + $0x1e8] ss:$40 sps:$4 sm:$0xff]   ;;  %v12121_v37 = vld [vmem:[%s18179_s7 + $0x73c] ss:$40 sps:$4 sm:$0xff]  }
 0x11f   :  { %4503 = vmatprep.subr.bf16.mxu0 %v12071_v40  ;;  %4540 = vmatprep.subr.bf16.mxu1 %v12074_v42  ;;  %v12127_v40 = vld [vmem:[%s18179_s7 + $0x78c] ss:$40 sps:$4 sm:$0xff]   ;;  %v12122_v42 = vld [vmem:[%s18179_s7 + $0x238] ss:$40 sps:$4 sm:$0xff]  }
 0x122   :  { %4504 = vmatpush1.bf16.msra.mxu0 %v12069_v46  ;;  %4541 = vmatpush1.bf16.msra.mxu1 %v12072_v24  ;;  %v12130_v46 = vld [vmem:[%s18179_s7 + $0x28c] ss:$40 sps:$4 sm:$0xff]   ;;  %v12128_v24 = vld [vmem:[%s18179_s7 + $0x288] ss:$40 sps:$4 sm:$0xff]  }
 0x123   :  { %11041 = vmatprep.subr.msk.bf16.mxu1 %vm4360_vm5, %v11032_v50  ;;  %4596 = vmatprep.subr.bf16.mxu0 %v12078_v51  ;;  %v12136_v50 = vld [vmem:[%s18179_s7 + $0x2dc] ss:$40 sps:$4 sm:$0xff]   ;;  %v12134_v51 = vld [vmem:[%s18179_s7 + $0x2d8] ss:$40 sps:$4 sm:$0xff]  }
 0x125   :  { %4506 = vmatmul.mubr.bf16.vlgmr.msra.gmra.mrb[8].mxu0 %v14427_v41 }
 0x126   :  { %4543 = vmatpush1.bf16.msra.mxu1 %v4362_v58  ;;  %4597 = vmatpush1.bf16.msra.mxu0 %v12076_v55  ;;  %v12142_v55 = vld [vmem:[%s18179_s7 + $0x32c] ss:$40 sps:$4 sm:$0xff]   ;;  %v12140_v58 = vld [vmem:[%s18179_s7 + $0x328] ss:$40 sps:$4 sm:$0xff]  }
 0x127   :  { %4628 = vmatprep.mubr.bf16.mxu0 %v14227_v17  ;;  %4555 = vmatprep.subr.bf16.mxu1 %v12082_v59  ;;  %v12145_v59 = vld [vmem:[%s18179_s7 + $0x87c] ss:$40 sps:$4 sm:$0xff]  }
 0x128   :  { %4598 = vmatprep.subr.bf16.mxu0 %v12085_v61  ;;  %v12148_v61 = vld [vmem:[%s18179_s7 + $0x37c] ss:$40 sps:$4 sm:$0xff]  }
 0x129   :  { %4547 = vmatmul.mubr.bf16.vlgmr.msra.gmra.mrb[20].mxu1 %v14440_v62 }
 0x12a   :  { %4556 = vmatpush1.bf16.msra.mxu1 %v12080_v60  ;;  %4587 = vmatprep.mubr.bf16.mxu1 %v14201_v63  ;;  %v12143_v60 = vld [vmem:[%s18179_s7 + $0x878] ss:$40 sps:$4 sm:$0xff]  }
 0x12b   :  { %4599 = vmatpush1.bf16.msra.mxu0 %v12083_v0  ;;  %4557 = vmatprep.subr.bf16.mxu1 %v12088_v2  ;;  %v12146_v0 = vld [vmem:[%s18179_s7 + $0x378] ss:$40 sps:$4 sm:$0xff]   ;;  %v12151_v2 = vld [vmem:[%s18179_s7 + $0x8cc] ss:$40 sps:$4 sm:$0xff]  }
 0x12c   :  { %4600 = vmatprep.subr.bf16.mxu0 %v12091_v3  ;;  %v12149_v3 = vld [vmem:[%s18179_s7 + $0x8c8] ss:$40 sps:$4 sm:$0xff]  }
 0x12e   :  { %4558 = vmatpush1.bf16.msra.mxu1 %v12086_v4  ;;  %v12154_v4 = vld [vmem:[%s18179_s7 + $0x3cc] ss:$40 sps:$4 sm:$0xff]  }
 0x12f   :  { %4601 = vmatpush1.bf16.msra.mxu0 %v12089_v6  ;;  %4559 = vmatprep.subr.bf16.mxu1 %v12094_v7  ;;  %v12152_v6 = vld [vmem:[%s18179_s7 + $0x3c8] ss:$40 sps:$4 sm:$0xff]   ;;  %v12157_v7 = vld [vmem:[%s18179_s7 + $0x91c] ss:$40 sps:$4 sm:$0xff]  }
 0x130   :  { %4602 = vmatprep.subr.bf16.mxu0 %v12097_v9  ;;  %v12160_v9 = vld [vmem:[%s18179_s7 + $0x41c] ss:$40 sps:$4 sm:$0xff]  }
 0x132   :  { %4560 = vmatpush1.bf16.msra.mxu1 %v12092_v8  ;;  %v12155_v8 = vld [vmem:[%s18179_s7 + $0x918] ss:$40 sps:$4 sm:$0xff]  }
 0x133   :  { %4603 = vmatpush1.bf16.msra.mxu0 %v12095_v10  ;;  %4561 = vmatprep.subr.bf16.mxu1 %v12100_v12  ;;  %v12158_v10 = vld [vmem:[%s18179_s7 + $0x418] ss:$40 sps:$4 sm:$0xff]   ;;  %v12163_v12 = vld [vmem:[%s18179_s7 + $0x96c] ss:$40 sps:$4 sm:$0xff]  }
 0x134   :  { %4604 = vmatprep.subr.bf16.mxu0 %v12103_v14  ;;  %v12166_v14 = vld [vmem:[%s18179_s7 + $0x46c] ss:$40 sps:$4 sm:$0xff]  }
 0x136   :  { %4562 = vmatpush1.bf16.msra.mxu1 %v12098_v13  ;;  %v12161_v13 = vld [vmem:[%s18179_s7 + $0x968] ss:$40 sps:$4 sm:$0xff]  }
 0x137   :  { %4605 = vmatpush1.bf16.msra.mxu0 %v12101_v15  ;;  %4563 = vmatprep.subr.bf16.mxu1 %v12106_v16  ;;  %v12164_v15 = vld [vmem:[%s18179_s7 + $0x468] ss:$40 sps:$4 sm:$0xff]   ;;  %v12169_v16 = vld [vmem:[%s18179_s7 + $0x9bc] ss:$40 sps:$4 sm:$0xff]  }
 0x138   :  { %4606 = vmatprep.subr.bf16.mxu0 %v12109_v21  ;;  %v12172_v21 = vld [vmem:[%s18179_s7 + $0x4bc] ss:$40 sps:$4 sm:$0xff]  }
 0x13a   :  { %4564 = vmatpush1.bf16.msra.mxu1 %v12104_v20  ;;  %v12167_v20 = vld [vmem:[%s18179_s7 + $0x9b8] ss:$40 sps:$4 sm:$0xff]  }
 0x13b   :  { %4607 = vmatpush1.bf16.msra.mxu0 %v12107_v22  ;;  %4565 = vmatprep.subr.bf16.mxu1 %v12112_v23  ;;  %v12175_v22 = vld [vmem:[%s18179_s7 + $0xf0c] ss:$40 sps:$4 sm:$0xff]   ;;  %v12170_v23 = vld [vmem:[%s18179_s7 + $0x4b8] ss:$40 sps:$4 sm:$0xff]  }
 0x13c   :  { %4608 = vmatprep.subr.bf16.mxu0 %v12115_v30  ;;  %v12176_v30 = vld [vmem:[%s18179_s7 + $0xa08] ss:$40 sps:$4 sm:$0xff]  }
 0x13e   :  { %4566 = vmatpush1.bf16.msra.mxu1 %v12110_v32  ;;  %v12181_v32 = vld [vmem:[%s18179_s7 + $0xf5c] ss:$40 sps:$4 sm:$0xff]  }
 0x13f   :  { %4609 = vmatpush1.bf16.msra.mxu0 %v12113_v33  ;;  %4567 = vmatprep.subr.bf16.mxu1 %v12118_v34  ;;  %v12179_v33 = vld [vmem:[%s18179_s7 + $0xf58] ss:$40 sps:$4 sm:$0xff]   ;;  %v12184_v34 = vld [vmem:[%s18179_s7 + $0xa5c] ss:$40 sps:$4 sm:$0xff]  }
 0x140   :  { %4610 = vmatprep.subr.bf16.mxu0 %v12121_v37  ;;  %v12182_v37 = vld [vmem:[%s18179_s7 + $0xa58] ss:$40 sps:$4 sm:$0xff]  }
 0x142   :  { %4568 = vmatpush1.bf16.msra.mxu1 %v12116_v36  ;;  %v12187_v36 = vld [vmem:[%s18179_s7 + $0xfac] ss:$40 sps:$4 sm:$0xff]  }
 0x143   :  { %4611 = vmatpush1.bf16.msra.mxu0 %v12119_v38  ;;  %4569 = vmatprep.subr.bf16.mxu1 %v12124_v39  ;;  %v12185_v38 = vld [vmem:[%s18179_s7 + $0xfa8] ss:$40 sps:$4 sm:$0xff]   ;;  %v12190_v39 = vld [vmem:[%s18179_s7 + $0xaac] ss:$40 sps:$4 sm:$0xff]  }
 0x144   :  { %4612 = vmatprep.subr.bf16.mxu0 %v12127_v40  ;;  %v12188_v40 = vld [vmem:[%s18179_s7 + $0xaa8] ss:$40 sps:$4 sm:$0xff]  }
 0x146   :  { %4570 = vmatpush1.bf16.msra.mxu1 %v12122_v42  ;;  %v12193_v42 = vld [vmem:[%s18179_s7 + $0xffc] ss:$40 sps:$4 sm:$0xff]  }
 0x147   :  { %4613 = vmatpush1.bf16.msra.mxu0 %v12125_v43  ;;  %4571 = vmatprep.subr.bf16.mxu1 %v12130_v46  ;;  %v12191_v43 = vld [vmem:[%s18179_s7 + $0xff8] ss:$40 sps:$4 sm:$0xff]   ;;  %v12196_v46 = vld [vmem:[%s18179_s7 + $0xafc] ss:$40 sps:$4 sm:$0xff]  }
 0x148   :  { %4614 = vmatprep.subr.bf16.mxu0 %v12133_v44  ;;  %v12199_v44 = vld [vmem:[%s18179_s7 + $0x104c] ss:$40 sps:$4 sm:$0xff]  }
 0x14a   :  { %4572 = vmatpush1.bf16.msra.mxu1 %v12128_v24  ;;  %v12194_v24 = vld [vmem:[%s18179_s7 + $0xaf8] ss:$40 sps:$4 sm:$0xff]  }
 0x14b   :  { %4615 = vmatpush1.bf16.msra.mxu0 %v12131_v49  ;;  %4573 = vmatprep.subr.bf16.mxu1 %v12136_v50  ;;  %v12197_v49 = vld [vmem:[%s18179_s7 + $0x1048] ss:$40 sps:$4 sm:$0xff]   ;;  %v12202_v50 = vld [vmem:[%s18179_s7 + $0xb4c] ss:$40 sps:$4 sm:$0xff]  }
 0x14c   :  { %4616 = vmatprep.subr.bf16.mxu0 %v12139_v52  ;;  %v12205_v52 = vld [vmem:[%s18179_s7 + $0x109c] ss:$40 sps:$4 sm:$0xff]  }
 0x14e   :  { %4574 = vmatpush1.bf16.msra.mxu1 %v12134_v51  ;;  %v12200_v51 = vld [vmem:[%s18179_s7 + $0xb48] ss:$40 sps:$4 sm:$0xff]  }
 0x14f   :  { %4617 = vmatpush1.bf16.msra.mxu0 %v12137_v53  ;;  %4575 = vmatprep.subr.bf16.mxu1 %v12142_v55  ;;  %v12203_v53 = vld [vmem:[%s18179_s7 + $0x1098] ss:$40 sps:$4 sm:$0xff]   ;;  %v12208_v55 = vld [vmem:[%s18179_s7 + $0xb9c] ss:$40 sps:$4 sm:$0xff]  }
 0x150   :  { %4618 = vmatprep.subr.bf16.mxu0 %v12145_v59  ;;  %v12211_v59 = vld [vmem:[%s18179_s7 + $0x10ec] ss:$40 sps:$4 sm:$0xff]  }
 0x152   :  { %4576 = vmatpush1.bf16.msra.mxu1 %v12140_v58  ;;  %v12206_v58 = vld [vmem:[%s18179_s7 + $0xb98] ss:$40 sps:$4 sm:$0xff]  }
 0x153   :  { %4619 = vmatpush1.bf16.msra.mxu0 %v12143_v60  ;;  %4577 = vmatprep.subr.bf16.mxu1 %v12148_v61  ;;  %v12209_v60 = vld [vmem:[%s18179_s7 + $0x10e8] ss:$40 sps:$4 sm:$0xff]   ;;  %v12214_v61 = vld [vmem:[%s18179_s7 + $0xbec] ss:$40 sps:$4 sm:$0xff]  }
 0x154   :  { %4620 = vmatprep.subr.bf16.mxu0 %v12151_v2  ;;  %v12212_v2 = vld [vmem:[%s18179_s7 + $0xbe8] ss:$40 sps:$4 sm:$0xff]  }
 0x156   :  { %4578 = vmatpush1.bf16.msra.mxu1 %v12146_v0  ;;  %v12217_v0 = vld [vmem:[%s18179_s7 + $0x113c] ss:$40 sps:$4 sm:$0xff]  }
 0x157   :  { %4621 = vmatpush1.bf16.msra.mxu0 %v12149_v3  ;;  %4579 = vmatprep.subr.bf16.mxu1 %v12154_v4  ;;  %v12215_v3 = vld [vmem:[%s18179_s7 + $0x1138] ss:$40 sps:$4 sm:$0xff]   ;;  %v12220_v4 = vld [vmem:[%s18179_s7 + $0xc3c] ss:$40 sps:$4 sm:$0xff]  }
 0x158   :  { %4622 = vmatprep.subr.bf16.mxu0 %v12157_v7  ;;  %v12223_v7 = vld [vmem:[%s18179_s7 + $0x118c] ss:$40 sps:$4 sm:$0xff]  }
 0x15a   :  { %4580 = vmatpush1.bf16.msra.mxu1 %v12152_v6  ;;  %v12218_v6 = vld [vmem:[%s18179_s7 + $0xc38] ss:$40 sps:$4 sm:$0xff]  }
 0x15b   :  { %4623 = vmatpush1.bf16.msra.mxu0 %v12155_v8  ;;  %4581 = vmatprep.subr.bf16.mxu1 %v12160_v9  ;;  %v12221_v8 = vld [vmem:[%s18179_s7 + $0x1188] ss:$40 sps:$4 sm:$0xff]   ;;  %v12226_v9 = vld [vmem:[%s18179_s7 + $0xc8c] ss:$40 sps:$4 sm:$0xff]  }
 0x15c   :  { %4624 = vmatprep.subr.bf16.mxu0 %v12163_v12  ;;  %v12229_v12 = vld [vmem:[%s18179_s7 + $0x11dc] ss:$40 sps:$4 sm:$0xff]  }
 0x15e   :  { %4582 = vmatpush1.bf16.msra.mxu1 %v12158_v10  ;;  %v12224_v10 = vld [vmem:[%s18179_s7 + $0xc88] ss:$40 sps:$4 sm:$0xff]  }
 0x15f   :  { %4625 = vmatpush1.bf16.msra.mxu0 %v12161_v13  ;;  %4583 = vmatprep.subr.bf16.mxu1 %v12166_v14  ;;  %v12227_v13 = vld [vmem:[%s18179_s7 + $0x11d8] ss:$40 sps:$4 sm:$0xff]   ;;  %v12232_v14 = vld [vmem:[%s18179_s7 + $0xcdc] ss:$40 sps:$4 sm:$0xff]  }
 0x160   :  { %4626 = vmatprep.subr.bf16.mxu0 %v12169_v16  ;;  %v12235_v16 = vld [vmem:[%s18179_s7 + $0x122c] ss:$40 sps:$4 sm:$0xff]  }
 0x162   :  { %4584 = vmatpush1.bf16.msra.mxu1 %v12164_v15  ;;  %v12230_v15 = vld [vmem:[%s18179_s7 + $0xcd8] ss:$40 sps:$4 sm:$0xff]  }
 0x163   :  { %4627 = vmatpush1.bf16.msra.mxu0 %v12167_v20  ;;  %4585 = vmatprep.subr.bf16.mxu1 %v12172_v21  ;;  %v12233_v20 = vld [vmem:[%s18179_s7 + $0x1228] ss:$40 sps:$4 sm:$0xff]   ;;  %v12238_v21 = vld [vmem:[%s18179_s7 + $0xd2c] ss:$40 sps:$4 sm:$0xff]  }
 0x164   :  { %4678 = vmatprep.subr.bf16.mxu0 %v12175_v22  ;;  %v12236_v22 = vld [vmem:[%s18179_s7 + $0xd28] ss:$40 sps:$4 sm:$0xff]  }
 0x166   :  { %4629 = vmatmul.mubr.bf16.vlgmr.msra.gmra.mrb[12].mxu0 %v14231_v19  ;;  %4586 = vmatpush1.bf16.msra.mxu1 %v12170_v23  ;;  %v12241_v23 = vld [vmem:[%s18179_s7 + $0x127c] ss:$40 sps:$4 sm:$0xff]  }
 0x167   :  { %4679 = vmatpush1.bf16.msra.mxu0 %v12173_v27  ;;  %11044 = vmatprep.mubr.msk.bf16.mxu0 %vm4356_vm4, %v14294_v56  ;;  %v12239_v27 = vld [vmem:[%s18179_s7 + $0x1278] ss:$40 sps:$4 sm:$0xff]  }
 0x168   :  { %4637 = vmatprep.subr.bf16.mxu1 %v12178_v29  ;;  %4680 = vmatprep.subr.bf16.mxu0 %v12181_v32  ;;  %v12244_v29 = vld [vmem:[%s18179_s7 + $0xd7c] ss:$40 sps:$4 sm:$0xff]   ;;  %v12247_v32 = vld [vmem:[%s18179_s7 + $0x12cc] ss:$40 sps:$4 sm:$0xff]  }
 0x169   :  { %4588 = vmatmul.mubr.bf16.vlgmr.msra.gmra.mrb[24].mxu1 %v14205_v1 }
 0x16a   :  { %4638 = vmatpush1.bf16.msra.mxu1 %v12176_v30  ;;  %4669 = vmatprep.mubr.bf16.mxu1 %v14262_v35  ;;  %v12242_v30 = vld [vmem:[%s18179_s7 + $0xd78] ss:$40 sps:$4 sm:$0xff]  }
 0x16b   :  { %4681 = vmatpush1.bf16.msra.mxu0 %v12179_v33  ;;  %4639 = vmatprep.subr.bf16.mxu1 %v12184_v34  ;;  %v12245_v33 = vld [vmem:[%s18179_s7 + $0x12c8] ss:$40 sps:$4 sm:$0xff]   ;;  %v12250_v34 = vld [vmem:[%s18179_s7 + $0xdcc] ss:$40 sps:$4 sm:$0xff]  }
 0x16c   :  { %4682 = vmatprep.subr.bf16.mxu0 %v12187_v36  ;;  %v12248_v36 = vld [vmem:[%s18179_s7 + $0xdc8] ss:$40 sps:$4 sm:$0xff]  }
 0x16e   :  { %4640 = vmatpush1.bf16.msra.mxu1 %v12182_v37  ;;  %v12253_v37 = vld [vmem:[%s18179_s7 + $0x131c] ss:$40 sps:$4 sm:$0xff]  }
 0x16f   :  { %4683 = vmatpush1.bf16.msra.mxu0 %v12185_v38  ;;  %4641 = vmatprep.subr.bf16.mxu1 %v12190_v39  ;;  %v1227_v38 = vld [vmem:[%s18179_s7 + $0x1368] sm:$0xff]  ;;  %v12251_v39 = vld [vmem:[%s18179_s7 + $0x1318] ss:$40 sps:$4 sm:$0xff]  }
 0x170   :  { %4684 = vmatprep.subr.bf16.mxu0 %v12193_v42  ;;  %v12254_v42 = vld [vmem:[%s18179_s7 + $0xe18] ss:$40 sps:$4 sm:$0xff]  }
 0x172   :  { %4642 = vmatpush1.bf16.msra.mxu1 %v12188_v40  ;;  %v12256_v40 = vld [vmem:[%s18179_s7 + $0xe1c] ss:$40 sps:$4 sm:$0xff]  }
 0x173   :  { %4685 = vmatpush1.bf16.msra.mxu0 %v12191_v43  ;;  %4643 = vmatprep.subr.bf16.mxu1 %v12196_v46  ;;  %v11034_v43 = vcombine.high %v1227_v38, %v1227_v38  ;;  %v11033_v46 = vcombine.low %v1227_v38, %v1227_v38  ;;  %v12309_v38 = vld [vmem:[%s18179_s7 + $0x294] ss:$40 sps:$4 sm:$0xff]  }
 0x174   :  { %4686 = vmatprep.subr.bf16.mxu0 %v12199_v44 }
 0x175   :  { %v4368_v44 = vsel %vm4360_vm5, %v11033_v46, 0 }
 0x176   :  { %4644 = vmatpush1.bf16.msra.mxu1 %v12194_v24  ;;  %v12261_v24 = vld [vmem:[%s18179_s7 + $0xe6c] ss:$40 sps:$4 sm:$0xff]  }
 0x177   :  { %4687 = vmatpush1.bf16.msra.mxu0 %v12197_v49  ;;  %4645 = vmatprep.subr.bf16.mxu1 %v12202_v50  ;;  %v12259_v49 = vld [vmem:[%s18179_s7 + $0xe68] ss:$40 sps:$4 sm:$0xff]   ;;  %v12264_v50 = vld [vmem:[%s18179_s7 + $0x14] ss:$40 sps:$4 sm:$0xff]  }
 0x178   :  { %4688 = vmatprep.subr.bf16.mxu0 %v12205_v52  ;;  %v12267_v52 = vld [vmem:[%s18179_s7 + $0xebc] ss:$40 sps:$4 sm:$0xff]  }
 0x17a   :  { %4646 = vmatpush1.bf16.msra.mxu1 %v12200_v51  ;;  %v12262_v51 = vld [vmem:[%s18179_s7 + $0x10] ss:$40 sps:$4 sm:$0xff]  }
 0x17b   :  { %4689 = vmatpush1.bf16.msra.mxu0 %v12203_v53  ;;  %4647 = vmatprep.subr.bf16.mxu1 %v12208_v55  ;;  %v12265_v53 = vld [vmem:[%s18179_s7 + $0xeb8] ss:$40 sps:$4 sm:$0xff]   ;;  %v12270_v55 = vld [vmem:[%s18179_s7 + $0x64] ss:$40 sps:$4 sm:$0xff]  }
 0x17c   :  { %4690 = vmatprep.subr.bf16.mxu0 %v12211_v59  ;;  %v12276_v59 = vld [vmem:[%s18179_s7 + $0x514] ss:$40 sps:$4 sm:$0xff]  }
 0x17e   :  { %4648 = vmatpush1.bf16.msra.mxu1 %v12206_v58  ;;  %v12268_v58 = vld [vmem:[%s18179_s7 + $0x60] ss:$40 sps:$4 sm:$0xff]  }
 0x17f   :  { %4691 = vmatpush1.bf16.msra.mxu0 %v12209_v60  ;;  %4649 = vmatprep.subr.bf16.mxu1 %v12214_v61  ;;  %v12273_v60 = vld [vmem:[%s18179_s7 + $0xb4] ss:$40 sps:$4 sm:$0xff]   ;;  %v12274_v61 = vld [vmem:[%s18179_s7 + $0x510] ss:$40 sps:$4 sm:$0xff]  }
 0x180   :  { %4692 = vmatprep.subr.bf16.mxu0 %v12217_v0  ;;  %v12271_v0 = vld [vmem:[%s18179_s7 + $0xb0] ss:$40 sps:$4 sm:$0xff]  }
 0x182   :  { %4650 = vmatpush1.bf16.msra.mxu1 %v12212_v2  ;;  %v12279_v2 = vld [vmem:[%s18179_s7 + $0x104] ss:$40 sps:$4 sm:$0xff]  }
 0x183   :  { %4693 = vmatpush1.bf16.msra.mxu0 %v12215_v3  ;;  %4651 = vmatprep.subr.bf16.mxu1 %v12220_v4  ;;  %v12282_v3 = vld [vmem:[%s18179_s7 + $0x564] ss:$40 sps:$4 sm:$0xff]   ;;  %v12280_v4 = vld [vmem:[%s18179_s7 + $0x560] ss:$40 sps:$4 sm:$0xff]  }
 0x184   :  { %4694 = vmatprep.subr.bf16.mxu0 %v12223_v7  ;;  %v12285_v7 = vld [vmem:[%s18179_s7 + $0x154] ss:$40 sps:$4 sm:$0xff]  }
 0x186   :  { %4652 = vmatpush1.bf16.msra.mxu1 %v12218_v6  ;;  %v12277_v6 = vld [vmem:[%s18179_s7 + $0x100] ss:$40 sps:$4 sm:$0xff]  }
 0x187   :  { %4695 = vmatpush1.bf16.msra.mxu0 %v12221_v8  ;;  %4653 = vmatprep.subr.bf16.mxu1 %v12226_v9  ;;  %v12288_v8 = vld [vmem:[%s18179_s7 + $0x5b4] ss:$40 sps:$4 sm:$0xff]   ;;  %v12286_v9 = vld [vmem:[%s18179_s7 + $0x5b0] ss:$40 sps:$4 sm:$0xff]  }
 0x188   :  { %4696 = vmatprep.subr.bf16.mxu0 %v12229_v12  ;;  %v12291_v12 = vld [vmem:[%s18179_s7 + $0x1a4] ss:$40 sps:$4 sm:$0xff]  }
 0x18a   :  { %4654 = vmatpush1.bf16.msra.mxu1 %v12224_v10  ;;  %v12283_v10 = vld [vmem:[%s18179_s7 + $0x150] ss:$40 sps:$4 sm:$0xff]  }
 0x18b   :  { %4697 = vmatpush1.bf16.msra.mxu0 %v12227_v13  ;;  %4655 = vmatprep.subr.bf16.mxu1 %v12232_v14  ;;  %v12294_v13 = vld [vmem:[%s18179_s7 + $0x604] ss:$40 sps:$4 sm:$0xff]   ;;  %v12292_v14 = vld [vmem:[%s18179_s7 + $0x600] ss:$40 sps:$4 sm:$0xff]  }
 0x18c   :  { %4698 = vmatprep.subr.bf16.mxu0 %v12235_v16  ;;  %v12297_v16 = vld [vmem:[%s18179_s7 + $0x1f4] ss:$40 sps:$4 sm:$0xff]  }
 0x18e   :  { %4656 = vmatpush1.bf16.msra.mxu1 %v12230_v15  ;;  %v12289_v15 = vld [vmem:[%s18179_s7 + $0x1a0] ss:$40 sps:$4 sm:$0xff]  }
 0x18f   :  { %4699 = vmatpush1.bf16.msra.mxu0 %v12233_v20  ;;  %4657 = vmatprep.subr.bf16.mxu1 %v12238_v21  ;;  %v12300_v20 = vld [vmem:[%s18179_s7 + $0x654] ss:$40 sps:$4 sm:$0xff]   ;;  %v12298_v21 = vld [vmem:[%s18179_s7 + $0x650] ss:$40 sps:$4 sm:$0xff]  }
 0x190   :  { %4700 = vmatprep.subr.bf16.mxu0 %v12241_v23  ;;  %v12306_v23 = vld [vmem:[%s18179_s7 + $0x6a4] ss:$40 sps:$4 sm:$0xff]  }
 0x192   :  { %4658 = vmatpush1.bf16.msra.mxu1 %v12236_v22  ;;  %v12295_v22 = vld [vmem:[%s18179_s7 + $0x1f0] ss:$40 sps:$4 sm:$0xff]  }
 0x193   :  { %4701 = vmatpush1.bf16.msra.mxu0 %v12239_v27  ;;  %4659 = vmatprep.subr.bf16.mxu1 %v12244_v29  ;;  %v12303_v29 = vld [vmem:[%s18179_s7 + $0x244] ss:$40 sps:$4 sm:$0xff]  }
 0x194   :  { %4702 = vmatprep.subr.bf16.mxu0 %v12247_v32  ;;  %v12301_v32 = vld [vmem:[%s18179_s7 + $0x240] ss:$40 sps:$4 sm:$0xff]  }
 0x196   :  { %4660 = vmatpush1.bf16.msra.mxu1 %v12242_v30 }
 0x197   :  { %4703 = vmatpush1.bf16.msra.mxu0 %v12245_v33  ;;  %4661 = vmatprep.subr.bf16.mxu1 %v12250_v34  ;;  %v12304_v33 = vld [vmem:[%s18179_s7 + $0x6a0] ss:$40 sps:$4 sm:$0xff]   ;;  %v12312_v34 = vld [vmem:[%s18179_s7 + $0x6f4] ss:$40 sps:$4 sm:$0xff]  }
 0x198   :  { %4704 = vmatprep.subr.bf16.mxu0 %v12253_v37 }
 0x19a   :  { %4662 = vmatpush1.bf16.msra.mxu1 %v12248_v36 }
 0x19b   :  { %4705 = vmatpush1.bf16.msra.mxu0 %v12251_v39  ;;  %4663 = vmatprep.subr.bf16.mxu1 %v12256_v40  ;;  %v12310_v39 = vld [vmem:[%s18179_s7 + $0x6f0] ss:$40 sps:$4 sm:$0xff]  }
 0x19c   :  { %11043 = vmatprep.subr.msk.bf16.mxu0 %vm4360_vm5, %v11034_v43  ;;  %v12307_v40 = vld [vmem:[%s18179_s7 + $0x290] ss:$40 sps:$4 sm:$0xff]   ;;  %v12318_v43 = vld [vmem:[%s18179_s7 + $0x744] ss:$40 sps:$4 sm:$0xff]  }
 0x19e   :  { %4664 = vmatpush1.bf16.msra.mxu1 %v12254_v42  ;;  %v12315_v42 = vld [vmem:[%s18179_s7 + $0x2e4] ss:$40 sps:$4 sm:$0xff]  }
 0x19f   :  { %4707 = vmatpush1.bf16.msra.mxu0 %v4368_v44  ;;  %4665 = vmatprep.subr.bf16.mxu1 %v12261_v24  ;;  %v12316_v24 = vld [vmem:[%s18179_s7 + $0x740] ss:$40 sps:$4 sm:$0xff]  }
 0x1a0   :  { %4719 = vmatprep.subr.bf16.mxu0 %v12264_v50 }
 0x1a2   :  { %4711 = vmatmul.mubr.bf16.vlgmr.msra.gmra.mrb[16].mxu0 %v14440_v62  ;;  %4666 = vmatpush1.bf16.msra.mxu1 %v12259_v49 }
 0x1a3   :  { %4720 = vmatpush1.bf16.msra.mxu0 %v12262_v51  ;;  %4751 = vmatprep.mubr.bf16.mxu0 %v14201_v63 }
 0x1a4   :  { %4667 = vmatprep.subr.bf16.mxu1 %v12267_v52  ;;  %4721 = vmatprep.subr.bf16.mxu0 %v12270_v55  ;;  %v12324_v55 = vld [vmem:[%s18179_s7 + $0x794] ss:$40 sps:$4 sm:$0xff]  }
 0x1a6   :  { %4668 = vmatpush1.bf16.msra.mxu1 %v12265_v53  ;;  %v12313_v53 = vld [vmem:[%s18179_s7 + $0x2e0] ss:$40 sps:$4 sm:$0xff]  }
 0x1a7   :  { %4722 = vmatpush1.bf16.msra.mxu0 %v12268_v58  ;;  %4760 = vmatprep.subr.bf16.mxu1 %v12276_v59  ;;  %v12321_v58 = vld [vmem:[%s18179_s7 + $0x334] ss:$40 sps:$4 sm:$0xff]   ;;  %v12322_v59 = vld [vmem:[%s18179_s7 + $0x790] ss:$40 sps:$4 sm:$0xff]  }
 0x1a8   :  { %4723 = vmatprep.subr.bf16.mxu0 %v12273_v60  ;;  %v12319_v60 = vld [vmem:[%s18179_s7 + $0x330] ss:$40 sps:$4 sm:$0xff]  }
 0x1a9   :  { %4670 = vmatmul.mubr.bf16.vlgmr.msra.gmra.mrb[28].mxu1 %v14427_v41 }
 0x1aa   :  { %4761 = vmatpush1.bf16.msra.mxu1 %v12274_v61  ;;  %4792 = vmatprep.mubr.bf16.mxu1 %v14227_v17  ;;  %v12327_v61 = vld [vmem:[%s18179_s7 + $0x384] ss:$40 sps:$4 sm:$0xff]  }
 0x1ab   :  { %4724 = vmatpush1.bf16.msra.mxu0 %v12271_v0  ;;  %4762 = vmatprep.subr.bf16.mxu1 %v12282_v3  ;;  %v12330_v0 = vld [vmem:[%s18179_s7 + $0x7e4] ss:$40 sps:$4 sm:$0xff]   ;;  %v12325_v3 = vld [vmem:[%s18179_s7 + $0x380] ss:$40 sps:$4 sm:$0xff]  }
 0x1ac   :  { %4725 = vmatprep.subr.bf16.mxu0 %v12279_v2  ;;  %v12328_v2 = vld [vmem:[%s18179_s7 + $0x7e0] ss:$40 sps:$4 sm:$0xff]  }
 0x1ae   :  { %4763 = vmatpush1.bf16.msra.mxu1 %v12280_v4  ;;  %v12333_v4 = vld [vmem:[%s18179_s7 + $0x3d4] ss:$40 sps:$4 sm:$0xff]  }
 0x1af   :  { %4726 = vmatpush1.bf16.msra.mxu0 %v12277_v6  ;;  %4764 = vmatprep.subr.bf16.mxu1 %v12288_v8  ;;  %v12336_v6 = vld [vmem:[%s18179_s7 + $0x834] ss:$40 sps:$4 sm:$0xff]   ;;  %v12331_v8 = vld [vmem:[%s18179_s7 + $0x3d0] ss:$40 sps:$4 sm:$0xff]  }
 0x1b0   :  { %4727 = vmatprep.subr.bf16.mxu0 %v12285_v7  ;;  %v12334_v7 = vld [vmem:[%s18179_s7 + $0x830] ss:$40 sps:$4 sm:$0xff]  }
 0x1b2   :  { %4765 = vmatpush1.bf16.msra.mxu1 %v12286_v9  ;;  %v12339_v9 = vld [vmem:[%s18179_s7 + $0x424] ss:$40 sps:$4 sm:$0xff]  }
 0x1b3   :  { %4728 = vmatpush1.bf16.msra.mxu0 %v12283_v10  ;;  %4766 = vmatprep.subr.bf16.mxu1 %v12294_v13  ;;  %v12342_v10 = vld [vmem:[%s18179_s7 + $0x884] ss:$40 sps:$4 sm:$0xff]   ;;  %v12337_v13 = vld [vmem:[%s18179_s7 + $0x420] ss:$40 sps:$4 sm:$0xff]  }
 0x1b4   :  { %4729 = vmatprep.subr.bf16.mxu0 %v12291_v12  ;;  %v12340_v12 = vld [vmem:[%s18179_s7 + $0x880] ss:$40 sps:$4 sm:$0xff]  }
 0x1b6   :  { %4767 = vmatpush1.bf16.msra.mxu1 %v12292_v14  ;;  %v12345_v14 = vld [vmem:[%s18179_s7 + $0x474] ss:$40 sps:$4 sm:$0xff]  }
 0x1b7   :  { %4730 = vmatpush1.bf16.msra.mxu0 %v12289_v15  ;;  %4768 = vmatprep.subr.bf16.mxu1 %v12300_v20  ;;  %v12348_v15 = vld [vmem:[%s18179_s7 + $0x8d4] ss:$40 sps:$4 sm:$0xff]   ;;  %v12343_v20 = vld [vmem:[%s18179_s7 + $0x470] ss:$40 sps:$4 sm:$0xff]  }
 0x1b8   :  { %v4425_v27 = vpop.f32.mrb[4].mxu0  ;;  %4731 = vmatprep.subr.bf16.mxu0 %v12297_v16  ;;  %v12346_v16 = vld [vmem:[%s18179_s7 + $0x8d0] ss:$40 sps:$4 sm:$0xff]  }
 0x1b9   :  { %v4427_v30 = vpop.f32.mrb[5].mxu0 }
 0x1ba   :  { %4769 = vmatpush1.bf16.msra.mxu1 %v12298_v21  ;;  %v4429_v36 = vpop.f32.mrb[6].mxu0  ;;  %v12351_v21 = vld [vmem:[%s18179_s7 + $0x4c4] ss:$40 sps:$4 sm:$0xff]  }
 0x1bb   :  { %4732 = vmatpush1.bf16.msra.mxu0 %v12295_v22  ;;  %v4430_v37 = vpop.f32.mrb[7].mxu0  ;;  %4770 = vmatprep.subr.bf16.mxu1 %v12306_v23  ;;  %v12354_v22 = vld [vmem:[%s18179_s7 + $0x924] ss:$40 sps:$4 sm:$0xff]   ;;  %v12352_v23 = vld [vmem:[%s18179_s7 + $0x920] ss:$40 sps:$4 sm:$0xff]  }
 0x1bc   :  { %4733 = vmatprep.subr.bf16.mxu0 %v12303_v29  ;;  %v12357_v29 = vld [vmem:[%s18179_s7 + $0x974] ss:$40 sps:$4 sm:$0xff]   ;;  %v12361_v36 = vld [vmem:[%s18179_s7 + $0x9c0] ss:$40 sps:$4 sm:$0xff]   ;;  %v12366_v37 = vld [vmem:[%s18179_s7 + $0xa64] ss:$40 sps:$4 sm:$0xff]  }
 0x1be   :  { %4771 = vmatpush1.bf16.msra.mxu1 %v12304_v33  ;;  %v12358_v33 = vld [vmem:[%s18179_s7 + $0xa10] ss:$40 sps:$4 sm:$0xff]  }
 0x1bf   :  { %4734 = vmatpush1.bf16.msra.mxu0 %v12301_v32  ;;  %4772 = vmatprep.subr.bf16.mxu1 %v12312_v34  ;;  %v12355_v32 = vld [vmem:[%s18179_s7 + $0x970] ss:$40 sps:$4 sm:$0xff]   ;;  %v12363_v34 = vld [vmem:[%s18179_s7 + $0x9c4] ss:$40 sps:$4 sm:$0xff]  }
 0x1c0   :  { %v4466_v46 = vpop.f32.mrb[16].mxu1  ;;  %4735 = vmatprep.subr.bf16.mxu0 %v12309_v38  ;;  %v12364_v38 = vld [vmem:[%s18179_s7 + $0xa60] ss:$40 sps:$4 sm:$0xff]  }
 0x1c1   :  { %v14926_v44 = vadd.f32 %v4466_v46, %v4425_v27  ;;  %v4468_v49 = vpop.f32.mrb[17].mxu1  ;;  %v12349_v27 = vld [vmem:[%s18179_s7 + $0x4c0] ss:$40 sps:$4 sm:$0xff]   ;;  %v12375_v46 = vld [vmem:[%s18179_s7 + $0xb04] ss:$40 sps:$4 sm:$0xff]  }
 0x1c2   :  { %v14928_v50 = vadd.f32 %v4468_v49, %v4427_v30  ;;  %4773 = vmatpush1.bf16.msra.mxu1 %v12310_v39  ;;  %v4470_v51 = vpop.f32.mrb[18].mxu1  ;;  %v12360_v30 = vld [vmem:[%s18179_s7 + $0xa14] ss:$40 sps:$4 sm:$0xff]   ;;  %v12376_v49 = vld [vmem:[%s18179_s7 + $0xf60] ss:$40 sps:$4 sm:$0xff]  }
 0x1c3   :  { %4736 = vmatpush1.bf16.msra.mxu0 %v12307_v40  ;;  %v4471_v52 = vpop.f32.mrb[19].mxu1  ;;  %4774 = vmatprep.subr.bf16.mxu1 %v12318_v43  ;;  %v12372_v39 = vld [vmem:[%s18179_s7 + $0xf14] ss:$40 sps:$4 sm:$0xff]   ;;  %v12367_v43 = vld [vmem:[%s18179_s7 + $0xab0] ss:$40 sps:$4 sm:$0xff]  }
 0x1c4   :  { %4737 = vmatprep.subr.bf16.mxu0 %v12315_v42  ;;  %v12369_v40 = vld [vmem:[%s18179_s7 + $0xab4] ss:$40 sps:$4 sm:$0xff]   ;;  %v12370_v42 = vld [vmem:[%s18179_s7 + $0xf10] ss:$40 sps:$4 sm:$0xff]   ;;  %v12373_v51 = vld [vmem:[%s18179_s7 + $0xb00] ss:$40 sps:$4 sm:$0xff]  }
 0x1c5   :  { %v12381_v52 = vld [vmem:[%s18179_s7 + $0xb54] ss:$40 sps:$4 sm:$0xff]  }
 0x1c6   :  { %4775 = vmatpush1.bf16.msra.mxu1 %v12316_v24  ;;  %v12378_v24 = vld [vmem:[%s18179_s7 + $0xf64] ss:$40 sps:$4 sm:$0xff]  }
 0x1c7   :  { %4738 = vmatpush1.bf16.msra.mxu0 %v12313_v53  ;;  %4776 = vmatprep.subr.bf16.mxu1 %v12324_v55  ;;  %v12384_v53 = vld [vmem:[%s18179_s7 + $0xfb4] ss:$40 sps:$4 sm:$0xff]   ;;  %v12382_v55 = vld [vmem:[%s18179_s7 + $0xfb0] ss:$40 sps:$4 sm:$0xff]  }
 0x1c8   :  { %4739 = vmatprep.subr.bf16.mxu0 %v12321_v58  ;;  %v12379_v58 = vld [vmem:[%s18179_s7 + $0xb50] ss:$40 sps:$4 sm:$0xff]  }
 0x1ca   :  { %4777 = vmatpush1.bf16.msra.mxu1 %v12322_v59  ;;  %v12387_v59 = vld [vmem:[%s18179_s7 + $0xba4] ss:$40 sps:$4 sm:$0xff]  }
 0x1cb   :  { %4740 = vmatpush1.bf16.msra.mxu0 %v12319_v60  ;;  %4778 = vmatprep.subr.bf16.mxu1 %v12330_v0  ;;  %v12390_v60 = vld [vmem:[%s18179_s7 + $0x1004] ss:$40 sps:$4 sm:$0xff]   ;;  %v12385_v0 = vld [vmem:[%s18179_s7 + $0xba0] ss:$40 sps:$4 sm:$0xff]  }
 0x1cc   :  { %4741 = vmatprep.subr.bf16.mxu0 %v12327_v61  ;;  %v12388_v61 = vld [vmem:[%s18179_s7 + $0x1000] ss:$40 sps:$4 sm:$0xff]  }
 0x1ce   :  { %4779 = vmatpush1.bf16.msra.mxu1 %v12328_v2  ;;  %v12396_v2 = vld [vmem:[%s18179_s7 + $0x1054] ss:$40 sps:$4 sm:$0xff]  }
 0x1cf   :  { %4742 = vmatpush1.bf16.msra.mxu0 %v12325_v3  ;;  %4780 = vmatprep.subr.bf16.mxu1 %v12336_v6  ;;  %v12393_v3 = vld [vmem:[%s18179_s7 + $0xbf4] ss:$40 sps:$4 sm:$0xff]   ;;  %v12394_v6 = vld [vmem:[%s18179_s7 + $0x1050] ss:$40 sps:$4 sm:$0xff]  }
 0x1d0   :  { %4743 = vmatprep.subr.bf16.mxu0 %v12333_v4  ;;  %v12391_v4 = vld [vmem:[%s18179_s7 + $0xbf0] ss:$40 sps:$4 sm:$0xff]  }
 0x1d2   :  { %4781 = vmatpush1.bf16.msra.mxu1 %v12334_v7  ;;  %v12402_v7 = vld [vmem:[%s18179_s7 + $0x10a4] ss:$40 sps:$4 sm:$0xff]  }
 0x1d3   :  { %4744 = vmatpush1.bf16.msra.mxu0 %v12331_v8  ;;  %4782 = vmatprep.subr.bf16.mxu1 %v12342_v10 }
 0x1d4   :  { %4745 = vmatprep.subr.bf16.mxu0 %v12339_v9  ;;  %v12399_v9 = vld [vmem:[%s18179_s7 + $0xc44] ss:$40 sps:$4 sm:$0xff]  }
 0x1d6   :  { %4783 = vmatpush1.bf16.msra.mxu1 %v12340_v12 }
 0x1d7   :  { %4746 = vmatpush1.bf16.msra.mxu0 %v12337_v13  ;;  %4784 = vmatprep.subr.bf16.mxu1 %v12348_v15  ;;  %v12397_v13 = vld [vmem:[%s18179_s7 + $0xc40] ss:$40 sps:$4 sm:$0xff]   ;;  %v12408_v15 = vld [vmem:[%s18179_s7 + $0x10f4] ss:$40 sps:$4 sm:$0xff]  }
 0x1d8   :  { %4747 = vmatprep.subr.bf16.mxu0 %v12345_v14  ;;  %v12400_v14 = vld [vmem:[%s18179_s7 + $0x10a0] ss:$40 sps:$4 sm:$0xff]  }
 0x1da   :  { %4785 = vmatpush1.bf16.msra.mxu1 %v12346_v16 }
 0x1db   :  { %4748 = vmatpush1.bf16.msra.mxu0 %v12343_v20  ;;  %4786 = vmatprep.subr.bf16.mxu1 %v12354_v22  ;;  %v12405_v22 = vld [vmem:[%s18179_s7 + $0xc94] ss:$40 sps:$4 sm:$0xff]  }
 0x1dc   :  { %4749 = vmatprep.subr.bf16.mxu0 %v12351_v21 }
 0x1de   :  { %4787 = vmatpush1.bf16.msra.mxu1 %v12352_v23 }
 0x1df   :  { %4750 = vmatpush1.bf16.msra.mxu0 %v12349_v27  ;;  %4788 = vmatprep.subr.bf16.mxu1 %v12357_v29  ;;  %v12406_v29 = vld [vmem:[%s18179_s7 + $0x10f0] ss:$40 sps:$4 sm:$0xff]  }
 0x1e0   :  { %4801 = vmatprep.subr.bf16.mxu0 %v12360_v30 }
 0x1e2   :  { %4752 = vmatmul.mubr.bf16.vlgmr.msra.gmra.mrb[20].mxu0 %v14205_v1  ;;  %4789 = vmatpush1.bf16.msra.mxu1 %v12355_v32 }
 0x1e3   :  { %4802 = vmatpush1.bf16.msra.mxu0 %v12358_v33  ;;  %4833 = vmatprep.mubr.bf16.mxu0 %v14262_v35  ;;  %v12403_v33 = vld [vmem:[%s18179_s7 + $0xc90] ss:$40 sps:$4 sm:$0xff]  }
 0x1e4   :  { %4790 = vmatprep.subr.bf16.mxu1 %v12363_v34  ;;  %4803 = vmatprep.subr.bf16.mxu0 %v12366_v37  ;;  %v12414_v34 = vld [vmem:[%s18179_s7 + $0x1144] ss:$40 sps:$4 sm:$0xff]   ;;  %v12412_v37 = vld [vmem:[%s18179_s7 + $0x1140] ss:$40 sps:$4 sm:$0xff]  }
 0x1e6   :  { %4791 = vmatpush1.bf16.msra.mxu1 %v12361_v36  ;;  %v12411_v36 = vld [vmem:[%s18179_s7 + $0xce4] ss:$40 sps:$4 sm:$0xff]  }
 0x1e7   :  { %4804 = vmatpush1.bf16.msra.mxu0 %v12364_v38  ;;  %4842 = vmatprep.subr.bf16.mxu1 %v12372_v39  ;;  %v12409_v38 = vld [vmem:[%s18179_s7 + $0xce0] ss:$40 sps:$4 sm:$0xff]   ;;  %v12417_v39 = vld [vmem:[%s18179_s7 + $0xd34] ss:$40 sps:$4 sm:$0xff]  }
 0x1e8   :  { %4805 = vmatprep.subr.bf16.mxu0 %v12369_v40  ;;  %v12420_v40 = vld [vmem:[%s18179_s7 + $0x1194] ss:$40 sps:$4 sm:$0xff]  }
 0x1e9   :  { %4793 = vmatmul.mubr.bf16.vlgmr.msra.gmra.mrb[32].mxu1 %v14231_v19 }
 0x1ea   :  { %4843 = vmatpush1.bf16.msra.mxu1 %v12370_v42  ;;  %11046 = vmatprep.mubr.msk.bf16.mxu1 %vm4356_vm4, %v14294_v56  ;;  %v12418_v42 = vld [vmem:[%s18179_s7 + $0x1190] ss:$40 sps:$4 sm:$0xff]  }
 0x1eb   :  { %4806 = vmatpush1.bf16.msra.mxu0 %v12367_v43  ;;  %4844 = vmatprep.subr.bf16.mxu1 %v12378_v24  ;;  %v12415_v43 = vld [vmem:[%s18179_s7 + $0xd30] ss:$40 sps:$4 sm:$0xff]   ;;  %v12426_v24 = vld [vmem:[%s18179_s7 + $0x11e4] ss:$40 sps:$4 sm:$0xff]  }
 0x1ec   :  { %4807 = vmatprep.subr.bf16.mxu0 %v12375_v46  ;;  %v12423_v46 = vld [vmem:[%s18179_s7 + $0xd84] ss:$40 sps:$4 sm:$0xff]  }
 0x1ee   :  { %4845 = vmatpush1.bf16.msra.mxu1 %v12376_v49  ;;  %v12424_v49 = vld [vmem:[%s18179_s7 + $0x11e0] ss:$40 sps:$4 sm:$0xff]  }
 0x1ef   :  { %4808 = vmatpush1.bf16.msra.mxu0 %v12373_v51  ;;  %4846 = vmatprep.subr.bf16.mxu1 %v12384_v53  ;;  %v12421_v51 = vld [vmem:[%s18179_s7 + $0xd80] ss:$40 sps:$4 sm:$0xff]   ;;  %v12432_v53 = vld [vmem:[%s18179_s7 + $0x1234] ss:$40 sps:$4 sm:$0xff]  }
 0x1f0   :  { %4809 = vmatprep.subr.bf16.mxu0 %v12381_v52  ;;  %v12429_v52 = vld [vmem:[%s18179_s7 + $0xdd4] ss:$40 sps:$4 sm:$0xff]  }
 0x1f2   :  { %4847 = vmatpush1.bf16.msra.mxu1 %v12382_v55  ;;  %v12430_v55 = vld [vmem:[%s18179_s7 + $0x1230] ss:$40 sps:$4 sm:$0xff]  }
 0x1f3   :  { %4810 = vmatpush1.bf16.msra.mxu0 %v12379_v58  ;;  %4848 = vmatprep.subr.bf16.mxu1 %v12390_v60  ;;  %v12427_v58 = vld [vmem:[%s18179_s7 + $0xdd0] ss:$40 sps:$4 sm:$0xff]   ;;  %v12438_v60 = vld [vmem:[%s18179_s7 + $0x1284] ss:$40 sps:$4 sm:$0xff]  }
 0x1f4   :  { %4811 = vmatprep.subr.bf16.mxu0 %v12387_v59  ;;  %v12435_v59 = vld [vmem:[%s18179_s7 + $0xe24] ss:$40 sps:$4 sm:$0xff]  }
 0x1f6   :  { %4849 = vmatpush1.bf16.msra.mxu1 %v12388_v61  ;;  %v12436_v61 = vld [vmem:[%s18179_s7 + $0x1280] ss:$40 sps:$4 sm:$0xff]  }
 0x1f7   :  { %4812 = vmatpush1.bf16.msra.mxu0 %v12385_v0  ;;  %4850 = vmatprep.subr.bf16.mxu1 %v12396_v2  ;;  %v12433_v0 = vld [vmem:[%s18179_s7 + $0xe20] ss:$40 sps:$4 sm:$0xff]   ;;  %v12441_v2 = vld [vmem:[%s18179_s7 + $0xe74] ss:$40 sps:$4 sm:$0xff]  }
 0x1f8   :  { %v4507_v8 = vpop.f32.mrb[8].mxu0  ;;  %4813 = vmatprep.subr.bf16.mxu0 %v12393_v3  ;;  %v12444_v3 = vld [vmem:[%s18179_s7 + $0x12d4] ss:$40 sps:$4 sm:$0xff]  }
 0x1f9   :  { %v4508_v10 = vadd.f32 %v4507_v8, %v14926_v44  ;;  %v4509_v12 = vpop.f32.mrb[9].mxu0  ;;  %v12450_v8 = vld [vmem:[%s18179_s7 + $0x1324] ss:$40 sps:$4 sm:$0xff]  }
 0x1fa   :  { %v4510_v16 = vadd.f32 %v4509_v12, %v14928_v50  ;;  %v4511_v20 = vpop.f32.mrb[10].mxu0  ;;  %4851 = vmatpush1.bf16.msra.mxu1 %v12394_v6  ;;  %v12439_v6 = vld [vmem:[%s18179_s7 + $0xe70] ss:$40 sps:$4 sm:$0xff]   ;;  %v12445_v12 = vld [vmem:[%s18179_s7 + $0xec0] ss:$40 sps:$4 sm:$0xff]  }
 0x1fb   :  { %4814 = vmatpush1.bf16.msra.mxu0 %v12391_v4  ;;  %v4512_v21 = vpop.f32.mrb[11].mxu0  ;;  %4852 = vmatprep.subr.bf16.mxu1 %v12402_v7  ;;  %v12442_v4 = vld [vmem:[%s18179_s7 + $0x12d0] ss:$40 sps:$4 sm:$0xff]   ;;  %v12447_v7 = vld [vmem:[%s18179_s7 + $0xec4] ss:$40 sps:$4 sm:$0xff]  }
 0x1fc   :  { %v4548_v44 = vpop.f32.mrb[20].mxu1  ;;  %4815 = vmatprep.subr.bf16.mxu0 %v12399_v9  ;;  %v1228_v9 = vld [vmem:[%s18179_s7 + $0x1370] sm:$0xff]  ;;  %v12458_v21 = vld [vmem:[%s18179_s7 + $0x1c] ss:$40 sps:$4 sm:$0xff]  }
 0x1fd   :  { %v15114_v23 = vadd.f32 %v4548_v44, %v4508_v10  ;;  %v4550_v27 = vpop.f32.mrb[21].mxu1  ;;  %v12448_v10 = vld [vmem:[%s18179_s7 + $0x1320] ss:$40 sps:$4 sm:$0xff]  }
 0x1fe   :  { %v15119_v30 = vadd.f32 %v4550_v27, %v4510_v16  ;;  %v4552_v50 = vpop.f32.mrb[22].mxu1  ;;  %4853 = vmatpush1.bf16.msra.mxu1 %v12400_v14  ;;  %v11035_v14 = vcombine.low %v1228_v9, %v1228_v9  ;;  %v12452_v16 = vld [vmem:[%s18179_s7 + $0x518] ss:$40 sps:$4 sm:$0xff]   ;;  %v12459_v27 = vld [vmem:[%s18179_s7 + $0x568] ss:$40 sps:$4 sm:$0xff]  }
 0x1ff   :  { %4816 = vmatpush1.bf16.msra.mxu0 %v12397_v13  ;;  %v4553_v32 = vpop.f32.mrb[23].mxu1  ;;  %4854 = vmatprep.subr.bf16.mxu1 %v12408_v15  ;;  %v11036_v13 = vcombine.high %v1228_v9, %v1228_v9  ;;  %v12454_v15 = vld [vmem:[%s18179_s7 + $0x51c] ss:$40 sps:$4 sm:$0xff]   ;;  %v12456_v44 = vld [vmem:[%s18179_s7 + $0x18] ss:$40 sps:$4 sm:$0xff]  }
 0x200   :  { %4817 = vmatprep.subr.bf16.mxu0 %v12405_v22  ;;  %v4374_v20 = vsel %vm4360_vm5, %v11035_v14, 0  ;;  %v12461_v22 = vld [vmem:[%s18179_s7 + $0x56c] ss:$40 sps:$4 sm:$0xff]   ;;  %v12467_v50 = vld [vmem:[%s18179_s7 + $0x5bc] ss:$40 sps:$4 sm:$0xff]  }
 0x201   :  { %v12462_v32 = vld [vmem:[%s18179_s7 + $0x68] ss:$40 sps:$4 sm:$0xff]   ;;  %v12503_v9 = vld [vmem:[%s18179_s7 + $0x79c] ss:$40 sps:$4 sm:$0xff]  }
 0x202   :  { %4855 = vmatpush1.bf16.msra.mxu1 %v12406_v29  ;;  %v12464_v29 = vld [vmem:[%s18179_s7 + $0x6c] ss:$40 sps:$4 sm:$0xff]  }
 0x203   :  { %4818 = vmatpush1.bf16.msra.mxu0 %v12403_v33  ;;  %4856 = vmatprep.subr.bf16.mxu1 %v12414_v34  ;;  %v12465_v33 = vld [vmem:[%s18179_s7 + $0x5b8] ss:$40 sps:$4 sm:$0xff]   ;;  %v12470_v34 = vld [vmem:[%s18179_s7 + $0xbc] ss:$40 sps:$4 sm:$0xff]  }
 0x204   :  { %4819 = vmatprep.subr.bf16.mxu0 %v12411_v36  ;;  %v12468_v36 = vld [vmem:[%s18179_s7 + $0xb8] ss:$40 sps:$4 sm:$0xff]  }
 0x206   :  { %4857 = vmatpush1.bf16.msra.mxu1 %v12412_v37  ;;  %v12473_v37 = vld [vmem:[%s18179_s7 + $0x60c] ss:$40 sps:$4 sm:$0xff]  }
 0x207   :  { %4820 = vmatpush1.bf16.msra.mxu0 %v12409_v38  ;;  %4858 = vmatprep.subr.bf16.mxu1 %v12420_v40  ;;  %v12471_v38 = vld [vmem:[%s18179_s7 + $0x608] ss:$40 sps:$4 sm:$0xff]  }
 0x208   :  { %4821 = vmatprep.subr.bf16.mxu0 %v12417_v39  ;;  %v12476_v39 = vld [vmem:[%s18179_s7 + $0x10c] ss:$40 sps:$4 sm:$0xff]   ;;  %v12474_v40 = vld [vmem:[%s18179_s7 + $0x108] ss:$40 sps:$4 sm:$0xff]  }
 0x20a   :  { %4859 = vmatpush1.bf16.msra.mxu1 %v12418_v42  ;;  %v12479_v42 = vld [vmem:[%s18179_s7 + $0x65c] ss:$40 sps:$4 sm:$0xff]  }
 0x20b   :  { %4822 = vmatpush1.bf16.msra.mxu0 %v12415_v43  ;;  %4860 = vmatprep.subr.bf16.mxu1 %v12426_v24  ;;  %v12477_v43 = vld [vmem:[%s18179_s7 + $0x658] ss:$40 sps:$4 sm:$0xff]  }
 0x20c   :  { %4823 = vmatprep.subr.bf16.mxu0 %v12423_v46  ;;  %v12482_v46 = vld [vmem:[%s18179_s7 + $0x15c] ss:$40 sps:$4 sm:$0xff]   ;;  %v12480_v24 = vld [vmem:[%s18179_s7 + $0x158] ss:$40 sps:$4 sm:$0xff]  }
 0x20e   :  { %4861 = vmatpush1.bf16.msra.mxu1 %v12424_v49  ;;  %v12485_v49 = vld [vmem:[%s18179_s7 + $0x6ac] ss:$40 sps:$4 sm:$0xff]  }
 0x20f   :  { %4824 = vmatpush1.bf16.msra.mxu0 %v12421_v51  ;;  %4862 = vmatprep.subr.bf16.mxu1 %v12432_v53  ;;  %v12483_v51 = vld [vmem:[%s18179_s7 + $0x6a8] ss:$40 sps:$4 sm:$0xff]  }
 0x210   :  { %4825 = vmatprep.subr.bf16.mxu0 %v12429_v52  ;;  %v12488_v52 = vld [vmem:[%s18179_s7 + $0x1ac] ss:$40 sps:$4 sm:$0xff]   ;;  %v12486_v53 = vld [vmem:[%s18179_s7 + $0x1a8] ss:$40 sps:$4 sm:$0xff]  }
 0x212   :  { %4863 = vmatpush1.bf16.msra.mxu1 %v12430_v55  ;;  %v12491_v55 = vld [vmem:[%s18179_s7 + $0x6fc] ss:$40 sps:$4 sm:$0xff]  }
 0x213   :  { %4826 = vmatpush1.bf16.msra.mxu0 %v12427_v58  ;;  %4864 = vmatprep.subr.bf16.mxu1 %v12438_v60  ;;  %v12489_v58 = vld [vmem:[%s18179_s7 + $0x6f8] ss:$40 sps:$4 sm:$0xff]  }
 0x214   :  { %4827 = vmatprep.subr.bf16.mxu0 %v12435_v59  ;;  %v12494_v59 = vld [vmem:[%s18179_s7 + $0x1fc] ss:$40 sps:$4 sm:$0xff]   ;;  %v12492_v60 = vld [vmem:[%s18179_s7 + $0x1f8] ss:$40 sps:$4 sm:$0xff]  }
 0x216   :  { %4865 = vmatpush1.bf16.msra.mxu1 %v12436_v61  ;;  %v12497_v61 = vld [vmem:[%s18179_s7 + $0x74c] ss:$40 sps:$4 sm:$0xff]  }
 0x217   :  { %4828 = vmatpush1.bf16.msra.mxu0 %v12433_v0  ;;  %4866 = vmatprep.subr.bf16.mxu1 %v12444_v3  ;;  %v12500_v3 = vld [vmem:[%s18179_s7 + $0x24c] ss:$40 sps:$4 sm:$0xff]  }
 0x218   :  { %4829 = vmatprep.subr.bf16.mxu0 %v12441_v2  ;;  %v12495_v2 = vld [vmem:[%s18179_s7 + $0x748] ss:$40 sps:$4 sm:$0xff]  }
 0x21a   :  { %4867 = vmatpush1.bf16.msra.mxu1 %v12442_v4 }
 0x21b   :  { %4830 = vmatpush1.bf16.msra.mxu0 %v12439_v6  ;;  %4868 = vmatprep.subr.bf16.mxu1 %v12450_v8 }
 0x21c   :  { %4831 = vmatprep.subr.bf16.mxu0 %v12447_v7 }
 0x21e   :  { %4869 = vmatpush1.bf16.msra.mxu1 %v12448_v10 }
 0x21f   :  { %4832 = vmatpush1.bf16.msra.mxu0 %v12445_v12  ;;  %11045 = vmatprep.subr.msk.bf16.mxu1 %vm4360_vm5, %v11036_v13  ;;  %v12498_v13 = vld [vmem:[%s18179_s7 + $0x248] ss:$40 sps:$4 sm:$0xff]  }
 0x220   :  { %4924 = vmatprep.subr.bf16.mxu0 %v12454_v15 }
 0x222   :  { %4834 = vmatmul.mubr.bf16.vlgmr.msra.gmra.mrb[24].mxu0 %v14427_v41  ;;  %4871 = vmatpush1.bf16.msra.mxu1 %v4374_v20  ;;  %v12501_v20 = vld [vmem:[%s18179_s7 + $0x798] ss:$40 sps:$4 sm:$0xff]  }
 0x223   :  { %4925 = vmatpush1.bf16.msra.mxu0 %v12452_v16  ;;  %4956 = vmatprep.mubr.bf16.mxu0 %v14227_v17 }
 0x224   :  { %4883 = vmatprep.subr.bf16.mxu1 %v12458_v21  ;;  %4926 = vmatprep.subr.bf16.mxu0 %v12461_v22  ;;  %v12506_v21 = vld [vmem:[%s18179_s7 + $0x29c] ss:$40 sps:$4 sm:$0xff]   ;;  %v12509_v22 = vld [vmem:[%s18179_s7 + $0x7ec] ss:$40 sps:$4 sm:$0xff]  }
 0x225   :  { %4875 = vmatmul.mubr.bf16.vlgmr.msra.gmra.mrb[36].mxu1 %v14440_v62 }
 0x226   :  { %4884 = vmatpush1.bf16.msra.mxu1 %v12456_v44  ;;  %4915 = vmatprep.mubr.bf16.mxu1 %v14201_v63  ;;  %v12504_v44 = vld [vmem:[%s18179_s7 + $0x298] ss:$40 sps:$4 sm:$0xff]  }
 0x227   :  { %4927 = vmatpush1.bf16.msra.mxu0 %v12459_v27  ;;  %4885 = vmatprep.subr.bf16.mxu1 %v12464_v29  ;;  %v12507_v27 = vld [vmem:[%s18179_s7 + $0x7e8] ss:$40 sps:$4 sm:$0xff]   ;;  %v12512_v29 = vld [vmem:[%s18179_s7 + $0x2ec] ss:$40 sps:$4 sm:$0xff]  }
 0x228   :  { %4928 = vmatprep.subr.bf16.mxu0 %v12467_v50  ;;  %v12510_v50 = vld [vmem:[%s18179_s7 + $0x2e8] ss:$40 sps:$4 sm:$0xff]  }
 0x22a   :  { %4886 = vmatpush1.bf16.msra.mxu1 %v12462_v32  ;;  %v12515_v32 = vld [vmem:[%s18179_s7 + $0x83c] ss:$40 sps:$4 sm:$0xff]  }
 0x22b   :  { %4929 = vmatpush1.bf16.msra.mxu0 %v12465_v33  ;;  %4887 = vmatprep.subr.bf16.mxu1 %v12470_v34  ;;  %v12513_v33 = vld [vmem:[%s18179_s7 + $0x838] ss:$40 sps:$4 sm:$0xff]   ;;  %v12518_v34 = vld [vmem:[%s18179_s7 + $0x33c] ss:$40 sps:$4 sm:$0xff]  }
 0x22c   :  { %4930 = vmatprep.subr.bf16.mxu0 %v12473_v37  ;;  %v12521_v37 = vld [vmem:[%s18179_s7 + $0x88c] ss:$40 sps:$4 sm:$0xff]  }
 0x22e   :  { %4888 = vmatpush1.bf16.msra.mxu1 %v12468_v36  ;;  %v12516_v36 = vld [vmem:[%s18179_s7 + $0x338] ss:$40 sps:$4 sm:$0xff]  }
 0x22f   :  { %4931 = vmatpush1.bf16.msra.mxu0 %v12471_v38  ;;  %4889 = vmatprep.subr.bf16.mxu1 %v12476_v39  ;;  %v12519_v38 = vld [vmem:[%s18179_s7 + $0x888] ss:$40 sps:$4 sm:$0xff]   ;;  %v12524_v39 = vld [vmem:[%s18179_s7 + $0x38c] ss:$40 sps:$4 sm:$0xff]  }
 0x230   :  { %4932 = vmatprep.subr.bf16.mxu0 %v12479_v42  ;;  %v12527_v42 = vld [vmem:[%s18179_s7 + $0x8dc] ss:$40 sps:$4 sm:$0xff]  }
 0x232   :  { %4890 = vmatpush1.bf16.msra.mxu1 %v12474_v40  ;;  %v12522_v40 = vld [vmem:[%s18179_s7 + $0x388] ss:$40 sps:$4 sm:$0xff]  }
 0x233   :  { %4933 = vmatpush1.bf16.msra.mxu0 %v12477_v43  ;;  %4891 = vmatprep.subr.bf16.mxu1 %v12482_v46  ;;  %v12525_v43 = vld [vmem:[%s18179_s7 + $0x8d8] ss:$40 sps:$4 sm:$0xff]   ;;  %v12530_v46 = vld [vmem:[%s18179_s7 + $0x3dc] ss:$40 sps:$4 sm:$0xff]  }
 0x234   :  { %4934 = vmatprep.subr.bf16.mxu0 %v12485_v49  ;;  %v12533_v49 = vld [vmem:[%s18179_s7 + $0x92c] ss:$40 sps:$4 sm:$0xff]  }
 0x236   :  { %4892 = vmatpush1.bf16.msra.mxu1 %v12480_v24  ;;  %v12528_v24 = vld [vmem:[%s18179_s7 + $0x3d8] ss:$40 sps:$4 sm:$0xff]  }
 0x237   :  { %4935 = vmatpush1.bf16.msra.mxu0 %v12483_v51  ;;  %4893 = vmatprep.subr.bf16.mxu1 %v12488_v52  ;;  %v12531_v51 = vld [vmem:[%s18179_s7 + $0x928] ss:$40 sps:$4 sm:$0xff]   ;;  %v12536_v52 = vld [vmem:[%s18179_s7 + $0x42c] ss:$40 sps:$4 sm:$0xff]  }
 0x238   :  { %4936 = vmatprep.subr.bf16.mxu0 %v12491_v55  ;;  %v12539_v55 = vld [vmem:[%s18179_s7 + $0x97c] ss:$40 sps:$4 sm:$0xff]  }
 0x239   :  { %v4630_v0 = vpop.f32.mrb[12].mxu0 }
 0x23a   :  { %v4632_v4 = vpop.f32.mrb[13].mxu0  ;;  %4894 = vmatpush1.bf16.msra.mxu1 %v12486_v53  ;;  %v12534_v53 = vld [vmem:[%s18179_s7 + $0x428] ss:$40 sps:$4 sm:$0xff]  }
 0x23b   :  { %v4634_v6 = vpop.f32.mrb[14].mxu0  ;;  %4937 = vmatpush1.bf16.msra.mxu0 %v12489_v58  ;;  %4895 = vmatprep.subr.bf16.mxu1 %v12494_v59  ;;  %v12537_v58 = vld [vmem:[%s18179_s7 + $0x978] ss:$40 sps:$4 sm:$0xff]   ;;  %v12542_v59 = vld [vmem:[%s18179_s7 + $0x47c] ss:$40 sps:$4 sm:$0xff]  }
 0x23c   :  { %v4635_v7 = vpop.f32.mrb[15].mxu0  ;;  %v4589_v8 = vpop.f32.mrb[24].mxu1  ;;  %4938 = vmatprep.subr.bf16.mxu0 %v12497_v61  ;;  %v12545_v61 = vld [vmem:[%s18179_s7 + $0x9cc] ss:$40 sps:$4 sm:$0xff]   ;;  %v12549_v6 = vld [vmem:[%s18179_s7 + $0xf18] ss:$40 sps:$4 sm:$0xff]  }
 0x23d   :  { %v15313_v10 = vadd.f32 %v4630_v0, %v4589_v8  ;;  %v4591_v12 = vpop.f32.mrb[25].mxu1  ;;  %v12543_v0 = vld [vmem:[%s18179_s7 + $0x9c8] ss:$40 sps:$4 sm:$0xff]   ;;  %v12554_v7 = vld [vmem:[%s18179_s7 + $0xa1c] ss:$40 sps:$4 sm:$0xff]  }
 0x23e   :  { %v15318_v14 = vadd.f32 %v4632_v4, %v4591_v12  ;;  %v4593_v15 = vpop.f32.mrb[26].mxu1  ;;  %4896 = vmatpush1.bf16.msra.mxu1 %v12492_v60  ;;  %v12540_v60 = vld [vmem:[%s18179_s7 + $0x478] ss:$40 sps:$4 sm:$0xff]   ;;  %v12546_v4 = vld [vmem:[%s18179_s7 + $0x4c8] ss:$40 sps:$4 sm:$0xff]  }
 0x23f   :  { %4939 = vmatpush1.bf16.msra.mxu0 %v12495_v2  ;;  %v4594_v16 = vpop.f32.mrb[27].mxu1  ;;  %4897 = vmatprep.subr.bf16.mxu1 %v12500_v3  ;;  %v12548_v2 = vld [vmem:[%s18179_s7 + $0x4cc] ss:$40 sps:$4 sm:$0xff]   ;;  %v12551_v3 = vld [vmem:[%s18179_s7 + $0xf1c] ss:$40 sps:$4 sm:$0xff]  }
 0x240   :  { %4940 = vmatprep.subr.bf16.mxu0 %v12503_v9  ;;  %v12552_v8 = vld [vmem:[%s18179_s7 + $0xa18] ss:$40 sps:$4 sm:$0xff]   ;;  %v12557_v9 = vld [vmem:[%s18179_s7 + $0xf6c] ss:$40 sps:$4 sm:$0xff]   ;;  %v12555_v12 = vld [vmem:[%s18179_s7 + $0xf68] ss:$40 sps:$4 sm:$0xff]  }
 0x241   :  { %v12563_v15 = vld [vmem:[%s18179_s7 + $0xfbc] ss:$40 sps:$4 sm:$0xff]   ;;  %v12558_v16 = vld [vmem:[%s18179_s7 + $0xa68] ss:$40 sps:$4 sm:$0xff]  }
 0x242   :  { %4898 = vmatpush1.bf16.msra.mxu1 %v12498_v13  ;;  %v12560_v13 = vld [vmem:[%s18179_s7 + $0xa6c] ss:$40 sps:$4 sm:$0xff]  }
 0x243   :  { %4941 = vmatpush1.bf16.msra.mxu0 %v12501_v20  ;;  %4899 = vmatprep.subr.bf16.mxu1 %v12506_v21  ;;  %v12561_v20 = vld [vmem:[%s18179_s7 + $0xfb8] ss:$40 sps:$4 sm:$0xff]   ;;  %v12566_v21 = vld [vmem:[%s18179_s7 + $0xabc] ss:$40 sps:$4 sm:$0xff]  }
 0x244   :  { %4942 = vmatprep.subr.bf16.mxu0 %v12509_v22  ;;  %v12569_v22 = vld [vmem:[%s18179_s7 + $0x100c] ss:$40 sps:$4 sm:$0xff]  }
 0x246   :  { %4900 = vmatpush1.bf16.msra.mxu1 %v12504_v44  ;;  %v12564_v44 = vld [vmem:[%s18179_s7 + $0xab8] ss:$40 sps:$4 sm:$0xff]  }
 0x247   :  { %4943 = vmatpush1.bf16.msra.mxu0 %v12507_v27  ;;  %4901 = vmatprep.subr.bf16.mxu1 %v12512_v29  ;;  %v12567_v27 = vld [vmem:[%s18179_s7 + $0x1008] ss:$40 sps:$4 sm:$0xff]   ;;  %v12572_v29 = vld [vmem:[%s18179_s7 + $0xb0c] ss:$40 sps:$4 sm:$0xff]  }
 0x248   :  { %4944 = vmatprep.subr.bf16.mxu0 %v12515_v32  ;;  %v12575_v32 = vld [vmem:[%s18179_s7 + $0x105c] ss:$40 sps:$4 sm:$0xff]  }
 0x24a   :  { %4902 = vmatpush1.bf16.msra.mxu1 %v12510_v50  ;;  %v12570_v50 = vld [vmem:[%s18179_s7 + $0xb08] ss:$40 sps:$4 sm:$0xff]  }
 0x24b   :  { %4945 = vmatpush1.bf16.msra.mxu0 %v12513_v33  ;;  %4903 = vmatprep.subr.bf16.mxu1 %v12518_v34  ;;  %v12573_v33 = vld [vmem:[%s18179_s7 + $0x1058] ss:$40 sps:$4 sm:$0xff]   ;;  %v12578_v34 = vld [vmem:[%s18179_s7 + $0xb5c] ss:$40 sps:$4 sm:$0xff]  }
 0x24c   :  { %4946 = vmatprep.subr.bf16.mxu0 %v12521_v37  ;;  %v12581_v37 = vld [vmem:[%s18179_s7 + $0x10ac] ss:$40 sps:$4 sm:$0xff]  }
 0x24e   :  { %4904 = vmatpush1.bf16.msra.mxu1 %v12516_v36  ;;  %v12576_v36 = vld [vmem:[%s18179_s7 + $0xb58] ss:$40 sps:$4 sm:$0xff]  }
 0x24f   :  { %4947 = vmatpush1.bf16.msra.mxu0 %v12519_v38  ;;  %4905 = vmatprep.subr.bf16.mxu1 %v12524_v39  ;;  %v12579_v38 = vld [vmem:[%s18179_s7 + $0x10a8] ss:$40 sps:$4 sm:$0xff]   ;;  %v12584_v39 = vld [vmem:[%s18179_s7 + $0xbac] ss:$40 sps:$4 sm:$0xff]  }
 0x250   :  { %4948 = vmatprep.subr.bf16.mxu0 %v12527_v42  ;;  %v12587_v42 = vld [vmem:[%s18179_s7 + $0x10fc] ss:$40 sps:$4 sm:$0xff]  }
 0x252   :  { %4906 = vmatpush1.bf16.msra.mxu1 %v12522_v40  ;;  %v12582_v40 = vld [vmem:[%s18179_s7 + $0xba8] ss:$40 sps:$4 sm:$0xff]  }
 0x253   :  { %4949 = vmatpush1.bf16.msra.mxu0 %v12525_v43  ;;  %4907 = vmatprep.subr.bf16.mxu1 %v12530_v46  ;;  %v12585_v46 = vld [vmem:[%s18179_s7 + $0x10f8] ss:$40 sps:$4 sm:$0xff]  }
 0x254   :  { %4950 = vmatprep.subr.bf16.mxu0 %v12533_v49 }
 0x256   :  { %4908 = vmatpush1.bf16.msra.mxu1 %v12528_v24  ;;  %v12590_v24 = vld [vmem:[%s18179_s7 + $0xbfc] ss:$40 sps:$4 sm:$0xff]  }
 0x257   :  { %4951 = vmatpush1.bf16.msra.mxu0 %v12531_v51  ;;  %4909 = vmatprep.subr.bf16.mxu1 %v12536_v52 }
 0x258   :  { %4952 = vmatprep.subr.bf16.mxu0 %v12539_v55  ;;  %v12588_v55 = vld [vmem:[%s18179_s7 + $0xbf8] ss:$40 sps:$4 sm:$0xff]  }
 0x25a   :  { %4910 = vmatpush1.bf16.msra.mxu1 %v12534_v53  ;;  %v12593_v53 = vld [vmem:[%s18179_s7 + $0x114c] ss:$40 sps:$4 sm:$0xff]  }
 0x25b   :  { %4953 = vmatpush1.bf16.msra.mxu0 %v12537_v58  ;;  %4911 = vmatprep.subr.bf16.mxu1 %v12542_v59  ;;  %v12591_v58 = vld [vmem:[%s18179_s7 + $0x1148] ss:$40 sps:$4 sm:$0xff]   ;;  %v12596_v59 = vld [vmem:[%s18179_s7 + $0xc4c] ss:$40 sps:$4 sm:$0xff]  }
 0x25c   :  { %4954 = vmatprep.subr.bf16.mxu0 %v12545_v61  ;;  %v12594_v61 = vld [vmem:[%s18179_s7 + $0xc48] ss:$40 sps:$4 sm:$0xff]  }
 0x25e   :  { %4912 = vmatpush1.bf16.msra.mxu1 %v12540_v60 }
 0x25f   :  { %4955 = vmatpush1.bf16.msra.mxu0 %v12543_v0  ;;  %4913 = vmatprep.subr.bf16.mxu1 %v12548_v2  ;;  %v12599_v0 = vld [vmem:[%s18179_s7 + $0x119c] ss:$40 sps:$4 sm:$0xff]  }
 0x260   :  { %5006 = vmatprep.subr.bf16.mxu0 %v12551_v3 }
 0x262   :  { %4957 = vmatmul.mubr.bf16.vlgmr.msra.gmra.mrb[28].mxu0 %v14231_v19  ;;  %4914 = vmatpush1.bf16.msra.mxu1 %v12546_v4 }
 0x263   :  { %5007 = vmatpush1.bf16.msra.mxu0 %v12549_v6  ;;  %11048 = vmatprep.mubr.msk.bf16.mxu0 %vm4356_vm4, %v14294_v56 }
 0x264   :  { %4965 = vmatprep.subr.bf16.mxu1 %v12554_v7  ;;  %5008 = vmatprep.subr.bf16.mxu0 %v12557_v9  ;;  %v12602_v9 = vld [vmem:[%s18179_s7 + $0xc9c] ss:$40 sps:$4 sm:$0xff]  }
 0x265   :  { %4916 = vmatmul.mubr.bf16.vlgmr.msra.gmra.mrb[40].mxu1 %v14205_v1 }
 0x266   :  { %4966 = vmatpush1.bf16.msra.mxu1 %v12552_v8  ;;  %4997 = vmatprep.mubr.bf16.mxu1 %v14262_v35  ;;  %v12597_v8 = vld [vmem:[%s18179_s7 + $0x1198] ss:$40 sps:$4 sm:$0xff]  }
 0x267   :  { %5009 = vmatpush1.bf16.msra.mxu0 %v12555_v12  ;;  %4967 = vmatprep.subr.bf16.mxu1 %v12560_v13 }
 0x268   :  { %5010 = vmatprep.subr.bf16.mxu0 %v12563_v15  ;;  %v12603_v15 = vld [vmem:[%s18179_s7 + $0x11e8] ss:$40 sps:$4 sm:$0xff]  }
 0x26a   :  { %4968 = vmatpush1.bf16.msra.mxu1 %v12558_v16  ;;  %v12608_v16 = vld [vmem:[%s18179_s7 + $0xcec] ss:$40 sps:$4 sm:$0xff]  }
 0x26b   :  { %5011 = vmatpush1.bf16.msra.mxu0 %v12561_v20  ;;  %4969 = vmatprep.subr.bf16.mxu1 %v12566_v21  ;;  %v12606_v20 = vld [vmem:[%s18179_s7 + $0xce8] ss:$40 sps:$4 sm:$0xff]   ;;  %v12611_v21 = vld [vmem:[%s18179_s7 + $0x123c] ss:$40 sps:$4 sm:$0xff]  }
 0x26c   :  { %5012 = vmatprep.subr.bf16.mxu0 %v12569_v22  ;;  %v12614_v22 = vld [vmem:[%s18179_s7 + $0xd3c] ss:$40 sps:$4 sm:$0xff]  }
 0x26e   :  { %4970 = vmatpush1.bf16.msra.mxu1 %v12564_v44  ;;  %v12609_v44 = vld [vmem:[%s18179_s7 + $0x1238] ss:$40 sps:$4 sm:$0xff]  }
 0x26f   :  { %5013 = vmatpush1.bf16.msra.mxu0 %v12567_v27  ;;  %4971 = vmatprep.subr.bf16.mxu1 %v12572_v29  ;;  %v12612_v27 = vld [vmem:[%s18179_s7 + $0xd38] ss:$40 sps:$4 sm:$0xff]   ;;  %v12617_v29 = vld [vmem:[%s18179_s7 + $0x128c] ss:$40 sps:$4 sm:$0xff]  }
 0x270   :  { %5014 = vmatprep.subr.bf16.mxu0 %v12575_v32  ;;  %v12620_v32 = vld [vmem:[%s18179_s7 + $0xd8c] ss:$40 sps:$4 sm:$0xff]  }
 0x272   :  { %4972 = vmatpush1.bf16.msra.mxu1 %v12570_v50  ;;  %v12615_v50 = vld [vmem:[%s18179_s7 + $0x1288] ss:$40 sps:$4 sm:$0xff]  }
 0x273   :  { %5015 = vmatpush1.bf16.msra.mxu0 %v12573_v33  ;;  %4973 = vmatprep.subr.bf16.mxu1 %v12578_v34  ;;  %v12618_v33 = vld [vmem:[%s18179_s7 + $0xd88] ss:$40 sps:$4 sm:$0xff]   ;;  %v12623_v34 = vld [vmem:[%s18179_s7 + $0x12dc] ss:$40 sps:$4 sm:$0xff]  }
 0x274   :  { %5016 = vmatprep.subr.bf16.mxu0 %v12581_v37  ;;  %v12626_v37 = vld [vmem:[%s18179_s7 + $0xddc] ss:$40 sps:$4 sm:$0xff]  }
 0x275   :  { %v4712_v43 = vpop.f32.mrb[16].mxu0 }
 0x276   :  { %v4714_v49 = vpop.f32.mrb[17].mxu0  ;;  %4974 = vmatpush1.bf16.msra.mxu1 %v12576_v36  ;;  %v12621_v36 = vld [vmem:[%s18179_s7 + $0x12d8] ss:$40 sps:$4 sm:$0xff]  }
 0x277   :  { %v4716_v51 = vpop.f32.mrb[18].mxu0  ;;  %5017 = vmatpush1.bf16.msra.mxu0 %v12579_v38  ;;  %4975 = vmatprep.subr.bf16.mxu1 %v12584_v39  ;;  %v12624_v38 = vld [vmem:[%s18179_s7 + $0xdd8] ss:$40 sps:$4 sm:$0xff]   ;;  %v12629_v39 = vld [vmem:[%s18179_s7 + $0x132c] ss:$40 sps:$4 sm:$0xff]  }
 0x278   :  { %v4717_v52 = vpop.f32.mrb[19].mxu0  ;;  %5018 = vmatprep.subr.bf16.mxu0 %v12587_v42  ;;  %v12627_v42 = vld [vmem:[%s18179_s7 + $0x1328] ss:$40 sps:$4 sm:$0xff]  }
 0x279   :  { %v12637_v52 = vld [vmem:[%s18179_s7 + $0xe7c] ss:$40 sps:$4 sm:$0xff]  }
 0x27a   :  { %4976 = vmatpush1.bf16.msra.mxu1 %v12582_v40  ;;  %v1229_v40 = vld [vmem:[%s18179_s7 + $0x1378] sm:$0xff] }
 0x27b   :  { %5019 = vmatpush1.bf16.msra.mxu0 %v12585_v46  ;;  %4977 = vmatprep.subr.bf16.mxu1 %v12590_v24  ;;  %v11037_v46 = vcombine.low %v1229_v40, %v1229_v40  ;;  %v12630_v24 = vld [vmem:[%s18179_s7 + $0xe28] ss:$40 sps:$4 sm:$0xff]  }
 0x27c   :  { %v4671_v60 = vpop.f32.mrb[28].mxu1  ;;  %5020 = vmatprep.subr.bf16.mxu0 %v12593_v53  ;;  %v12635_v53 = vld [vmem:[%s18179_s7 + $0xe78] ss:$40 sps:$4 sm:$0xff]  }
 0x27d   :  { %v4672_v2 = vadd.f32 %v4671_v60, %v15313_v10  ;;  %v4673_v3 = vpop.f32.mrb[29].mxu1  ;;  %v12600_v10 = vld [vmem:[%s18179_s7 + $0xc98] ss:$40 sps:$4 sm:$0xff]   ;;  %v4380_v51 = vsel %vm4360_vm5, %v11037_v46, 0  ;;  %v12641_v60 = vld [vmem:[%s18179_s7 + $0xec8] ss:$40 sps:$4 sm:$0xff]  }
 0x27e   :  { %v4674_v4 = vadd.f32 %v4673_v3, %v15318_v14  ;;  %v4675_v6 = vpop.f32.mrb[30].mxu1  ;;  %4978 = vmatpush1.bf16.msra.mxu1 %v12588_v55  ;;  %v12605_v14 = vld [vmem:[%s18179_s7 + $0x11ec] ss:$40 sps:$4 sm:$0xff]  }
 0x27f   :  { %5021 = vmatpush1.bf16.msra.mxu0 %v12591_v58  ;;  %v4676_v7 = vpop.f32.mrb[31].mxu1  ;;  %4979 = vmatprep.subr.bf16.mxu1 %v12596_v59  ;;  %v15525_v12 = vadd.f32 %v4712_v43, %v4672_v2  ;;  %v12632_v43 = vld [vmem:[%s18179_s7 + $0xe2c] ss:$40 sps:$4 sm:$0xff]   ;;  %v12638_v58 = vld [vmem:[%s18179_s7 + $0x20] ss:$40 sps:$4 sm:$0xff]  }
 0x280   :  { %5022 = vmatprep.subr.bf16.mxu0 %v12599_v0  ;;  %v15533_v13 = vadd.f32 %v4714_v49, %v4674_v4  ;;  %v11038_v49 = vcombine.high %v1229_v40, %v1229_v40  ;;  %v12640_v55 = vld [vmem:[%s18179_s7 + $0x24] ss:$40 sps:$4 sm:$0xff]   ;;  %v12644_v0 = vld [vmem:[%s18179_s7 + $0x70] ss:$40 sps:$4 sm:$0xff]   ;;  %v12650_v4 = vld [vmem:[%s18179_s7 + $0x520] ss:$40 sps:$4 sm:$0xff]  }
 0x281   :  { %v12643_v59 = vld [vmem:[%s18179_s7 + $0xecc] ss:$40 sps:$4 sm:$0xff]  }
 0x282   :  { %4980 = vmatpush1.bf16.msra.mxu1 %v12594_v61  ;;  %v12646_v61 = vld [vmem:[%s18179_s7 + $0x74] ss:$40 sps:$4 sm:$0xff]   ;;  %v12652_v2 = vld [vmem:[%s18179_s7 + $0x524] ss:$40 sps:$4 sm:$0xff]  }
 0x283   :  { %5023 = vmatpush1.bf16.msra.mxu0 %v12597_v8  ;;  %4981 = vmatprep.subr.bf16.mxu1 %v12602_v9  ;;  %v12649_v3 = vld [vmem:[%s18179_s7 + $0xc4] ss:$40 sps:$4 sm:$0xff]  }
 0x284   :  { %5024 = vmatprep.subr.bf16.mxu0 %v12605_v14 }
 0x286   :  { %4982 = vmatpush1.bf16.msra.mxu1 %v12600_v10 }
 0x287   :  { %5025 = vmatpush1.bf16.msra.mxu0 %v12603_v15  ;;  %4983 = vmatprep.subr.bf16.mxu1 %v12608_v16 }
 0x288   :  { %5026 = vmatprep.subr.bf16.mxu0 %v12611_v21 }
 0x28a   :  { %4984 = vmatpush1.bf16.msra.mxu1 %v12606_v20 }
 0x28b   :  { %5027 = vmatpush1.bf16.msra.mxu0 %v12609_v44  ;;  %4985 = vmatprep.subr.bf16.mxu1 %v12614_v22 }
 0x28c   :  { %5028 = vmatprep.subr.bf16.mxu0 %v12617_v29 }
 0x28e   :  { %4986 = vmatpush1.bf16.msra.mxu1 %v12612_v27 }
 0x28f   :  { %5029 = vmatpush1.bf16.msra.mxu0 %v12615_v50  ;;  %4987 = vmatprep.subr.bf16.mxu1 %v12620_v32 }
 0x290   :  { %5030 = vmatprep.subr.bf16.mxu0 %v12623_v34 }
 0x292   :  { %4988 = vmatpush1.bf16.msra.mxu1 %v12618_v33 }
 0x293   :  { %5031 = vmatpush1.bf16.msra.mxu0 %v12621_v36  ;;  %4989 = vmatprep.subr.bf16.mxu1 %v12626_v37 }
 0x294   :  { %5032 = vmatprep.subr.bf16.mxu0 %v12629_v39 }
 0x296   :  { %4990 = vmatpush1.bf16.msra.mxu1 %v12624_v38 }
 0x297   :  { %5033 = vmatpush1.bf16.msra.mxu0 %v12627_v42  ;;  %4991 = vmatprep.subr.bf16.mxu1 %v12632_v43 }
 0x298   :  { %11047 = vmatprep.subr.msk.bf16.mxu0 %vm4360_vm5, %v11038_v49 }
 0x29a   :  { %4992 = vmatpush1.bf16.msra.mxu1 %v12630_v24 }
 0x29b   :  { %5035 = vmatpush1.bf16.msra.mxu0 %v4380_v51  ;;  %4993 = vmatprep.subr.bf16.mxu1 %v12637_v52 }
 0x29c   :  { %5047 = vmatprep.subr.bf16.mxu0 %v12640_v55 }
 0x29e   :  { %5039 = vmatmul.mubr.bf16.vlgmr.msra.gmra.mrb[32].mxu0 %v14440_v62  ;;  %4994 = vmatpush1.bf16.msra.mxu1 %v12635_v53 }
 0x29f   :  { %5048 = vmatpush1.bf16.msra.mxu0 %v12638_v58  ;;  %5079 = vmatprep.mubr.bf16.mxu0 %v14201_v63 }
 0x2a0   :  { %4995 = vmatprep.subr.bf16.mxu1 %v12643_v59  ;;  %5049 = vmatprep.subr.bf16.mxu0 %v12646_v61 }
 0x2a2   :  { %4996 = vmatpush1.bf16.msra.mxu1 %v12641_v60 }
 0x2a3   :  { %16 = vsyncpa [#allocation3], 0  ;;  %5050 = vmatpush1.bf16.msra.mxu0 %v12644_v0  ;;  %v12647_v6 = vld [vmem:[%s18179_s7 + $0xc0] ss:$40 sps:$4 sm:$0xff]   ;;  %5088 = vmatprep.subr.bf16.mxu1 %v12652_v2  ;;  %v12658_v63 = vld [vmem:[%s18179_s7 + $0x574] ss:$40 sps:$4 sm:$0xff]  }
 0x2a4   :  { %5051 = vmatprep.subr.bf16.mxu0 %v12649_v3  ;;  %v12655_v7 = vld [vmem:[%s18179_s7 + $0x114] ss:$40 sps:$4 sm:$0xff]   ;;  %v12656_v8 = vld [vmem:[%s18179_s7 + $0x570] ss:$40 sps:$4 sm:$0xff]   ;;  %v12664_v10 = vld [vmem:[%s18179_s7 + $0x5c4] ss:$40 sps:$4 sm:$0xff]  }
 0x2a5   :  { %4998 = vmatmul.mubr.bf16.vlgmr.msra.gmra.mrb[44].mxu1 %v14427_v41  ;;  %v12653_v9 = vld [vmem:[%s18179_s7 + $0x110] ss:$40 sps:$4 sm:$0xff]   ;;  %v12661_v14 = vld [vmem:[%s18179_s7 + $0x164] ss:$40 sps:$4 sm:$0xff]   ;;  %v12659_v15 = vld [vmem:[%s18179_s7 + $0x160] ss:$40 sps:$4 sm:$0xff]  }
 0x2a6   :  { %5089 = vmatpush1.bf16.msra.mxu1 %v12650_v4  ;;  %5120 = vmatprep.mubr.bf16.mxu1 %v14227_v17  ;;  %v12662_v17 = vld [vmem:[%s18179_s7 + $0x5c0] ss:$40 sps:$4 sm:$0xff]   ;;  %v12670_v16 = vld [vmem:[%s18179_s7 + $0x614] ss:$40 sps:$4 sm:$0xff]   ;;  %v12668_v21 = vld [vmem:[%s18179_s7 + $0x610] ss:$40 sps:$4 sm:$0xff]  }
 0x2a7   :  { %5052 = vmatpush1.bf16.msra.mxu0 %v12647_v6  ;;  %5090 = vmatprep.subr.bf16.mxu1 %v12658_v63  ;;  %v12667_v20 = vld [vmem:[%s18179_s7 + $0x1b4] ss:$40 sps:$4 sm:$0xff]   ;;  %v12665_v44 = vld [vmem:[%s18179_s7 + $0x1b0] ss:$40 sps:$4 sm:$0xff]   ;;  %v12676_v22 = vld [vmem:[%s18179_s7 + $0x664] ss:$40 sps:$4 sm:$0xff]  }
 0x2a8   :  { %5053 = vmatprep.subr.bf16.mxu0 %v12655_v7  ;;  %v12673_v27 = vld [vmem:[%s18179_s7 + $0x204] ss:$40 sps:$4 sm:$0xff]   ;;  %v12674_v29 = vld [vmem:[%s18179_s7 + $0x660] ss:$40 sps:$4 sm:$0xff]   ;;  %v12682_v32 = vld [vmem:[%s18179_s7 + $0x6b4] ss:$40 sps:$4 sm:$0xff]  }
 0x2a9   :  { %v12671_v50 = vld [vmem:[%s18179_s7 + $0x200] ss:$40 sps:$4 sm:$0xff]   ;;  %v12679_v33 = vld [vmem:[%s18179_s7 + $0x254] ss:$40 sps:$4 sm:$0xff]   ;;  %v12680_v37 = vld [vmem:[%s18179_s7 + $0x6b0] ss:$40 sps:$4 sm:$0xff]  }
 0x2aa   :  { %5091 = vmatpush1.bf16.msra.mxu1 %v12656_v8  ;;  %v12677_v39 = vld [vmem:[%s18179_s7 + $0x250] ss:$40 sps:$4 sm:$0xff]   ;;  %v12688_v40 = vld [vmem:[%s18179_s7 + $0x704] ss:$40 sps:$4 sm:$0xff]   ;;  %v12686_v46 = vld [vmem:[%s18179_s7 + $0x700] ss:$40 sps:$4 sm:$0xff]  }
 0x2ab   :  { %5054 = vmatpush1.bf16.msra.mxu0 %v12653_v9  ;;  %5092 = vmatprep.subr.bf16.mxu1 %v12664_v10  ;;  %v12685_v43 = vld [vmem:[%s18179_s7 + $0x2a4] ss:$40 sps:$4 sm:$0xff]   ;;  %v12683_v24 = vld [vmem:[%s18179_s7 + $0x2a0] ss:$40 sps:$4 sm:$0xff]   ;;  %v12694_v49 = vld [vmem:[%s18179_s7 + $0x754] ss:$40 sps:$4 sm:$0xff]  }
 0x2ac   :  { %5055 = vmatprep.subr.bf16.mxu0 %v12661_v14  ;;  %v12691_v52 = vld [vmem:[%s18179_s7 + $0x2f4] ss:$40 sps:$4 sm:$0xff]   ;;  %v12692_v60 = vld [vmem:[%s18179_s7 + $0x750] ss:$40 sps:$4 sm:$0xff]   ;;  %v12700_v2 = vld [vmem:[%s18179_s7 + $0x7a4] ss:$40 sps:$4 sm:$0xff]  }
 0x2ad   :  { %v12689_v0 = vld [vmem:[%s18179_s7 + $0x2f0] ss:$40 sps:$4 sm:$0xff]   ;;  %v12697_v3 = vld [vmem:[%s18179_s7 + $0x344] ss:$40 sps:$4 sm:$0xff]   ;;  %v12698_v4 = vld [vmem:[%s18179_s7 + $0x7a0] ss:$40 sps:$4 sm:$0xff]  }
 0x2ae   :  { %5093 = vmatpush1.bf16.msra.mxu1 %v12662_v17  ;;  %v12695_v6 = vld [vmem:[%s18179_s7 + $0x340] ss:$40 sps:$4 sm:$0xff]   ;;  %v12706_v63 = vld [vmem:[%s18179_s7 + $0x7f4] ss:$40 sps:$4 sm:$0xff]   ;;  %v12704_v8 = vld [vmem:[%s18179_s7 + $0x7f0] ss:$40 sps:$4 sm:$0xff]  }
 0x2af   :  { %5056 = vmatpush1.bf16.msra.mxu0 %v12659_v15  ;;  %5094 = vmatprep.subr.bf16.mxu1 %v12670_v16  ;;  %v12703_v7 = vld [vmem:[%s18179_s7 + $0x394] ss:$40 sps:$4 sm:$0xff]   ;;  %v12701_v9 = vld [vmem:[%s18179_s7 + $0x390] ss:$40 sps:$4 sm:$0xff]   ;;  %v12712_v10 = vld [vmem:[%s18179_s7 + $0x844] ss:$40 sps:$4 sm:$0xff]  }
 0x2b0   :  { %5057 = vmatprep.subr.bf16.mxu0 %v12667_v20  ;;  %v12709_v14 = vld [vmem:[%s18179_s7 + $0x3e4] ss:$40 sps:$4 sm:$0xff]   ;;  %v12710_v17 = vld [vmem:[%s18179_s7 + $0x840] ss:$40 sps:$4 sm:$0xff]   ;;  %v12718_v16 = vld [vmem:[%s18179_s7 + $0x894] ss:$40 sps:$4 sm:$0xff]  }
 0x2b1   :  { %v12707_v15 = vld [vmem:[%s18179_s7 + $0x3e0] ss:$40 sps:$4 sm:$0xff]   ;;  %v12715_v20 = vld [vmem:[%s18179_s7 + $0x434] ss:$40 sps:$4 sm:$0xff]   ;;  %vm5836_vm6 = vcmask 588800   ;;  %vm9496_vm7 = vcmask 392192  }
 0x2b2   :  { %5095 = vmatpush1.bf16.msra.mxu1 %v12668_v21  ;;  %v12716_v21 = vld [vmem:[%s18179_s7 + $0x890] ss:$40 sps:$4 sm:$0xff]   ;;  %vm10363_vm8 = vcmask 130048  }
 0x2b3   :  { %5058 = vmatpush1.bf16.msra.mxu0 %v12665_v44  ;;  %5096 = vmatprep.subr.bf16.mxu1 %v12676_v22  ;;  %v12713_v44 = vld [vmem:[%s18179_s7 + $0x430] ss:$40 sps:$4 sm:$0xff]   ;;  %v12724_v22 = vld [vmem:[%s18179_s7 + $0x8e4] ss:$40 sps:$4 sm:$0xff]  }
 0x2b4   :  { %5059 = vmatprep.subr.bf16.mxu0 %v12673_v27  ;;  %v12721_v27 = vld [vmem:[%s18179_s7 + $0x484] ss:$40 sps:$4 sm:$0xff]  }
 0x2b5   :  { %v4753_v34 = vpop.f32.mrb[20].mxu0 }
 0x2b6   :  { %v4755_v36 = vpop.f32.mrb[21].mxu0  ;;  %5097 = vmatpush1.bf16.msra.mxu1 %v12674_v29  ;;  %v12722_v29 = vld [vmem:[%s18179_s7 + $0x8e0] ss:$40 sps:$4 sm:$0xff]  }
 0x2b7   :  { %v4757_v38 = vpop.f32.mrb[22].mxu0  ;;  %5060 = vmatpush1.bf16.msra.mxu0 %v12671_v50  ;;  %5098 = vmatprep.subr.bf16.mxu1 %v12682_v32  ;;  %v12719_v50 = vld [vmem:[%s18179_s7 + $0x480] ss:$40 sps:$4 sm:$0xff]   ;;  %v12730_v32 = vld [vmem:[%s18179_s7 + $0x934] ss:$40 sps:$4 sm:$0xff]  }
 0x2b8   :  { %v4758_v42 = vpop.f32.mrb[23].mxu0  ;;  %5061 = vmatprep.subr.bf16.mxu0 %v12679_v33  ;;  %v12727_v33 = vld [vmem:[%s18179_s7 + $0x4d4] ss:$40 sps:$4 sm:$0xff]   ;;  %v12736_v38 = vld [vmem:[%s18179_s7 + $0xa24] ss:$40 sps:$4 sm:$0xff]  }
 0x2b9   :  { %v12739_v42 = vld [vmem:[%s18179_s7 + $0x9d4] ss:$40 sps:$4 sm:$0xff]  }
 0x2ba   :  { %5099 = vmatpush1.bf16.msra.mxu1 %v12680_v37  ;;  %v12733_v37 = vld [vmem:[%s18179_s7 + $0x984] ss:$40 sps:$4 sm:$0xff]  }
 0x2bb   :  { %5062 = vmatpush1.bf16.msra.mxu0 %v12677_v39  ;;  %5100 = vmatprep.subr.bf16.mxu1 %v12688_v40  ;;  %v12731_v39 = vld [vmem:[%s18179_s7 + $0x980] ss:$40 sps:$4 sm:$0xff]  }
 0x2bc   :  { %v4794_v51 = vpop.f32.mrb[32].mxu1  ;;  %5063 = vmatprep.subr.bf16.mxu0 %v12685_v43  ;;  %v12734_v40 = vld [vmem:[%s18179_s7 + $0xa20] ss:$40 sps:$4 sm:$0xff]   ;;  %v12742_v43 = vld [vmem:[%s18179_s7 + $0xa74] ss:$40 sps:$4 sm:$0xff]  }
 0x2bd   :  { %v15715_v53 = vadd.f32 %v4794_v51, %v4753_v34  ;;  %v4796_v55 = vpop.f32.mrb[33].mxu1  ;;  %v12728_v34 = vld [vmem:[%s18179_s7 + $0x930] ss:$40 sps:$4 sm:$0xff]   ;;  %v12746_v51 = vld [vmem:[%s18179_s7 + $0xf20] ss:$40 sps:$4 sm:$0xff]  }
 0x2be   :  { %v15717_v58 = vadd.f32 %v4796_v55, %v4755_v36  ;;  %v4798_v59 = vpop.f32.mrb[34].mxu1  ;;  %5101 = vmatpush1.bf16.msra.mxu1 %v12686_v46  ;;  %v12725_v36 = vld [vmem:[%s18179_s7 + $0x4d0] ss:$40 sps:$4 sm:$0xff]   ;;  %v12751_v55 = vld [vmem:[%s18179_s7 + $0xb14] ss:$40 sps:$4 sm:$0xff]  }
 0x2bf   :  { %5064 = vmatpush1.bf16.msra.mxu0 %v12683_v24  ;;  %v4799_v61 = vpop.f32.mrb[35].mxu1  ;;  %5102 = vmatprep.subr.bf16.mxu1 %v12694_v49  ;;  %v12737_v46 = vld [vmem:[%s18179_s7 + $0x9d0] ss:$40 sps:$4 sm:$0xff]   ;;  %v12748_v49 = vld [vmem:[%s18179_s7 + $0xf24] ss:$40 sps:$4 sm:$0xff]  }
 0x2c0   :  { %5065 = vmatprep.subr.bf16.mxu0 %v12691_v52  ;;  %v12740_v24 = vld [vmem:[%s18179_s7 + $0xa70] ss:$40 sps:$4 sm:$0xff]   ;;  %v12754_v52 = vld [vmem:[%s18179_s7 + $0xf74] ss:$40 sps:$4 sm:$0xff]   ;;  %v12760_v61 = vld [vmem:[%s18179_s7 + $0xfc4] ss:$40 sps:$4 sm:$0xff]  }
 0x2c1   :  { %v12752_v59 = vld [vmem:[%s18179_s7 + $0xf70] ss:$40 sps:$4 sm:$0xff]  }
 0x2c2   :  { %5103 = vmatpush1.bf16.msra.mxu1 %v12692_v60  ;;  %v12749_v60 = vld [vmem:[%s18179_s7 + $0xb10] ss:$40 sps:$4 sm:$0xff]  }
 0x2c3   :  { %5066 = vmatpush1.bf16.msra.mxu0 %v12689_v0  ;;  %5104 = vmatprep.subr.bf16.mxu1 %v12700_v2  ;;  %v12755_v0 = vld [vmem:[%s18179_s7 + $0xb60] ss:$40 sps:$4 sm:$0xff]   ;;  %v12766_v2 = vld [vmem:[%s18179_s7 + $0x1014] ss:$40 sps:$4 sm:$0xff]  }
 0x2c4   :  { %5067 = vmatprep.subr.bf16.mxu0 %v12697_v3  ;;  %v12763_v3 = vld [vmem:[%s18179_s7 + $0xbb4] ss:$40 sps:$4 sm:$0xff]  }
 0x2c6   :  { %5105 = vmatpush1.bf16.msra.mxu1 %v12698_v4  ;;  %v12764_v4 = vld [vmem:[%s18179_s7 + $0x1010] ss:$40 sps:$4 sm:$0xff]  }
 0x2c7   :  { %5068 = vmatpush1.bf16.msra.mxu0 %v12695_v6  ;;  %5106 = vmatprep.subr.bf16.mxu1 %v12706_v63  ;;  %v12761_v6 = vld [vmem:[%s18179_s7 + $0xbb0] ss:$40 sps:$4 sm:$0xff]   ;;  %v12772_v63 = vld [vmem:[%s18179_s7 + $0x1064] ss:$40 sps:$4 sm:$0xff]  }
 0x2c8   :  { %5069 = vmatprep.subr.bf16.mxu0 %v12703_v7  ;;  %v12769_v7 = vld [vmem:[%s18179_s7 + $0xc04] ss:$40 sps:$4 sm:$0xff]  }
 0x2ca   :  { %5107 = vmatpush1.bf16.msra.mxu1 %v12704_v8  ;;  %v12770_v8 = vld [vmem:[%s18179_s7 + $0x1060] ss:$40 sps:$4 sm:$0xff]  }
 0x2cb   :  { %5070 = vmatpush1.bf16.msra.mxu0 %v12701_v9  ;;  %5108 = vmatprep.subr.bf16.mxu1 %v12712_v10  ;;  %v12767_v9 = vld [vmem:[%s18179_s7 + $0xc00] ss:$40 sps:$4 sm:$0xff]   ;;  %v12778_v10 = vld [vmem:[%s18179_s7 + $0x10b4] ss:$40 sps:$4 sm:$0xff]  }
 0x2cc   :  { %5071 = vmatprep.subr.bf16.mxu0 %v12709_v14  ;;  %v12775_v14 = vld [vmem:[%s18179_s7 + $0xc54] ss:$40 sps:$4 sm:$0xff]  }
 0x2ce   :  { %5109 = vmatpush1.bf16.msra.mxu1 %v12710_v17 }
 0x2cf   :  { %5072 = vmatpush1.bf16.msra.mxu0 %v12707_v15  ;;  %5110 = vmatprep.subr.bf16.mxu1 %v12718_v16 }
 0x2d0   :  { %5073 = vmatprep.subr.bf16.mxu0 %v12715_v20  ;;  %v12776_v20 = vld [vmem:[%s18179_s7 + $0x10b0] ss:$40 sps:$4 sm:$0xff]  }
 0x2d2   :  { %5111 = vmatpush1.bf16.msra.mxu1 %v12716_v21 }
 0x2d3   :  { %5074 = vmatpush1.bf16.msra.mxu0 %v12713_v44  ;;  %5112 = vmatprep.subr.bf16.mxu1 %v12724_v22  ;;  %v12773_v22 = vld [vmem:[%s18179_s7 + $0xc50] ss:$40 sps:$4 sm:$0xff]  }
 0x2d4   :  { %5075 = vmatprep.subr.bf16.mxu0 %v12721_v27  ;;  %v12784_v27 = vld [vmem:[%s18179_s7 + $0x1104] ss:$40 sps:$4 sm:$0xff]  }
 0x2d6   :  { %5113 = vmatpush1.bf16.msra.mxu1 %v12722_v29 }
 0x2d7   :  { %5076 = vmatpush1.bf16.msra.mxu0 %v12719_v50  ;;  %5114 = vmatprep.subr.bf16.mxu1 %v12730_v32  ;;  %v12781_v50 = vld [vmem:[%s18179_s7 + $0xca4] ss:$40 sps:$4 sm:$0xff]  }
 0x2d8   :  { %5077 = vmatprep.subr.bf16.mxu0 %v12727_v33 }
 0x2da   :  { %5115 = vmatpush1.bf16.msra.mxu1 %v12728_v34 }
 0x2db   :  { %5078 = vmatpush1.bf16.msra.mxu0 %v12725_v36  ;;  %5116 = vmatprep.subr.bf16.mxu1 %v12733_v37  ;;  %v12782_v36 = vld [vmem:[%s18179_s7 + $0x1100] ss:$40 sps:$4 sm:$0xff]  }
 0x2dc   :  { %5129 = vmatprep.subr.bf16.mxu0 %v12736_v38  ;;  %v12779_v38 = vld [vmem:[%s18179_s7 + $0xca0] ss:$40 sps:$4 sm:$0xff]  }
 0x2de   :  { %5080 = vmatmul.mubr.bf16.vlgmr.msra.gmra.mrb[36].mxu0 %v14205_v1  ;;  %5117 = vmatpush1.bf16.msra.mxu1 %v12731_v39  ;;  %v12745_v1 = vld [vmem:[%s18179_s7 + $0xac4] ss:$40 sps:$4 sm:$0xff]   ;;  %v12790_v39 = vld [vmem:[%s18179_s7 + $0x1154] ss:$40 sps:$4 sm:$0xff]  }
 0x2df   :  { %5130 = vmatpush1.bf16.msra.mxu0 %v12734_v40  ;;  %5161 = vmatprep.mubr.bf16.mxu0 %v14262_v35  ;;  %v12743_v35 = vld [vmem:[%s18179_s7 + $0xac0] ss:$40 sps:$4 sm:$0xff]   ;;  %v12787_v40 = vld [vmem:[%s18179_s7 + $0xcf4] ss:$40 sps:$4 sm:$0xff]  }
 0x2e0   :  { %5118 = vmatprep.subr.bf16.mxu1 %v12739_v42  ;;  %5131 = vmatprep.subr.bf16.mxu0 %v12742_v43  ;;  %v12788_v42 = vld [vmem:[%s18179_s7 + $0x1150] ss:$40 sps:$4 sm:$0xff]  }
 0x2e1   :  { %v12785_v43 = vld [vmem:[%s18179_s7 + $0xcf0] ss:$40 sps:$4 sm:$0xff]  }
 0x2e2   :  { %5119 = vmatpush1.bf16.msra.mxu1 %v12737_v46  ;;  %v12796_v46 = vld [vmem:[%s18179_s7 + $0x11a4] ss:$40 sps:$4 sm:$0xff]  }
 0x2e3   :  { %5132 = vmatpush1.bf16.msra.mxu0 %v12740_v24  ;;  %5170 = vmatprep.subr.bf16.mxu1 %v12748_v49  ;;  %v12793_v24 = vld [vmem:[%s18179_s7 + $0xd44] ss:$40 sps:$4 sm:$0xff]   ;;  %v12794_v49 = vld [vmem:[%s18179_s7 + $0x11a0] ss:$40 sps:$4 sm:$0xff]  }
 0x2e4   :  { %5133 = vmatprep.subr.bf16.mxu0 %v12745_v1  ;;  %v12791_v1 = vld [vmem:[%s18179_s7 + $0xd40] ss:$40 sps:$4 sm:$0xff]  }
 0x2e5   :  { %5121 = vmatmul.mubr.bf16.vlgmr.msra.gmra.mrb[48].mxu1 %v14231_v19  ;;  %v12757_v19 = vld [vmem:[%s18179_s7 + $0xb64] ss:$40 sps:$4 sm:$0xff]  }
 0x2e6   :  { %5171 = vmatpush1.bf16.msra.mxu1 %v12746_v51  ;;  %11050 = vmatprep.mubr.msk.bf16.mxu1 %vm4356_vm4, %v14294_v56  ;;  %v12758_v56 = vld [vmem:[%s18179_s7 + $0xfc0] ss:$40 sps:$4 sm:$0xff]   ;;  %v12802_v51 = vld [vmem:[%s18179_s7 + $0x11f4] ss:$40 sps:$4 sm:$0xff]  }
 0x2e7   :  { %5134 = vmatpush1.bf16.msra.mxu0 %v12743_v35  ;;  %5172 = vmatprep.subr.bf16.mxu1 %v12754_v52  ;;  %v12799_v35 = vld [vmem:[%s18179_s7 + $0xd94] ss:$40 sps:$4 sm:$0xff]   ;;  %v12800_v52 = vld [vmem:[%s18179_s7 + $0x11f0] ss:$40 sps:$4 sm:$0xff]  }
 0x2e8   :  { %5135 = vmatprep.subr.bf16.mxu0 %v12751_v55  ;;  %v12797_v55 = vld [vmem:[%s18179_s7 + $0xd90] ss:$40 sps:$4 sm:$0xff]  }
 0x2ea   :  { %5173 = vmatpush1.bf16.msra.mxu1 %v12752_v59  ;;  %v12808_v59 = vld [vmem:[%s18179_s7 + $0x1244] ss:$40 sps:$4 sm:$0xff]  }
 0x2eb   :  { %5136 = vmatpush1.bf16.msra.mxu0 %v12749_v60  ;;  %5174 = vmatprep.subr.bf16.mxu1 %v12760_v61  ;;  %v12805_v60 = vld [vmem:[%s18179_s7 + $0xde4] ss:$40 sps:$4 sm:$0xff]   ;;  %v12806_v61 = vld [vmem:[%s18179_s7 + $0x1240] ss:$40 sps:$4 sm:$0xff]  }
 0x2ec   :  { %5137 = vmatprep.subr.bf16.mxu0 %v12757_v19  ;;  %v12803_v19 = vld [vmem:[%s18179_s7 + $0xde0] ss:$40 sps:$4 sm:$0xff]  }
 0x2ee   :  { %5175 = vmatpush1.bf16.msra.mxu1 %v12758_v56  ;;  %v12814_v56 = vld [vmem:[%s18179_s7 + $0x1294] ss:$40 sps:$4 sm:$0xff]  }
 0x2ef   :  { %5138 = vmatpush1.bf16.msra.mxu0 %v12755_v0  ;;  %5176 = vmatprep.subr.bf16.mxu1 %v12766_v2  ;;  %v12811_v0 = vld [vmem:[%s18179_s7 + $0xe34] ss:$40 sps:$4 sm:$0xff]   ;;  %v15973_v2 = vld [vmem:[%s18175_s3] sm:$0x3] }
 0x2f0   :  { %5139 = vmatprep.subr.bf16.mxu0 %v12763_v3  ;;  %v12812_v3 = vld [vmem:[%s18179_s7 + $0x1290] ss:$40 sps:$4 sm:$0xff]  }
 0x2f2   :  { %5177 = vmatpush1.bf16.msra.mxu1 %v12764_v4  ;;  %v12809_v4 = vld [vmem:[%s18179_s7 + $0xe30] ss:$40 sps:$4 sm:$0xff]  }
 0x2f3   :  { %5140 = vmatpush1.bf16.msra.mxu0 %v12761_v6  ;;  %5178 = vmatprep.subr.bf16.mxu1 %v12772_v63  ;;  %v12820_v6 = vld [vmem:[%s18179_s7 + $0x12e4] ss:$40 sps:$4 sm:$0xff]  }
 0x2f4   :  { %5141 = vmatprep.subr.bf16.mxu0 %v12769_v7  ;;  %v12817_v63 = vld [vmem:[%s18179_s7 + $0xe84] ss:$40 sps:$4 sm:$0xff]   ;;  %v64_v7 = vrot.slane %v15973_v2, %v14184_v48 }
 0x2f5   :  { %v4835_v17 = vpop.f32.mrb[24].mxu0 }
 0x2f6   :  { %v4836_v15 = vadd.f32 %v4835_v17, %v15715_v53  ;;  %v4837_v16 = vpop.f32.mrb[25].mxu0  ;;  %5179 = vmatpush1.bf16.msra.mxu1 %v12770_v8  ;;  %v12818_v8 = vld [vmem:[%s18179_s7 + $0x12e0] ss:$40 sps:$4 sm:$0xff]  }
 0x2f7   :  { %v4838_v21 = vadd.f32 %v4837_v16, %v15717_v58  ;;  %v4839_v44 = vpop.f32.mrb[26].mxu0  ;;  %5142 = vmatpush1.bf16.msra.mxu0 %v12767_v9  ;;  %5180 = vmatprep.subr.bf16.mxu1 %v12778_v10  ;;  %v12815_v9 = vld [vmem:[%s18179_s7 + $0xe80] ss:$40 sps:$4 sm:$0xff]   ;;  %v12826_v10 = vld [vmem:[%s18179_s7 + $0x1334] ss:$40 sps:$4 sm:$0xff]  }
 0x2f8   :  { %v4840_v53 = vpop.f32.mrb[27].mxu0  ;;  %v4876_v29 = vpop.f32.mrb[36].mxu1  ;;  %5143 = vmatprep.subr.bf16.mxu0 %v12775_v14  ;;  %v12823_v14 = vld [vmem:[%s18179_s7 + $0xed4] ss:$40 sps:$4 sm:$0xff]   ;;  %v1230_v17 = vld [vmem:[%s18179_s7 + $0x1380] sm:$0xff] }
 0x2f9   :  { %v15906_v32 = vadd.f32 %v4876_v29, %v4836_v15  ;;  %v4878_v58 = vpop.f32.mrb[37].mxu1  ;;  %v180_v15 = vadd.f32 %v14502_v26, %v64_v7  ;;  %v12824_v16 = vld [vmem:[%s18179_s7 + $0x1330] ss:$40 sps:$4 sm:$0xff]   ;;  %v11039_v44 = vcombine.low %v1230_v17, %v1230_v17  ;;  %v12834_v29 = vld [vmem:[%s18178_s6 + $0x4] ss:$40 sps:$4 sm:$0xff]  }
 0x2fa   :  { %v15908_v33 = vadd.f32 %v4878_v58, %v4838_v21  ;;  %v4880_v34 = vpop.f32.mrb[38].mxu1  ;;  %5181 = vmatpush1.bf16.msra.mxu1 %v12776_v20  ;;  %v12821_v20 = vld [vmem:[%s18179_s7 + $0xed0] ss:$40 sps:$4 sm:$0xff]   ;;  %v11040_v21 = vcombine.high %v1230_v17, %v1230_v17 }
 0x2fb   :  { %5144 = vmatpush1.bf16.msra.mxu0 %v12773_v22  ;;  %v4881_v37 = vpop.f32.mrb[39].mxu1  ;;  %5182 = vmatprep.subr.bf16.mxu1 %v12784_v27  ;;  %v12830_v22 = vld [vmem:[%s18178_s6 + $0xc] ss:$40 sps:$4 sm:$0xff]   ;;  %v185_v27 = vmax.f32 %v180_v15, 0.0  ;;  %v12828_v26 = vld [vmem:[%s18178_s6 + $0x8] ss:$40 sps:$4 sm:$0xff]  }
 0x2fc   :  { %5145 = vmatprep.subr.bf16.mxu0 %v12781_v50  ;;  %v4386_v53 = vsel %vm4360_vm5, %v11039_v44, 0  ;;  %v12837_v50 = vld [vmem:[%s18178_s6 + $0x5c] ss:$40 sps:$4 sm:$0xff]   ;;  %v12832_v34 = vld [vmem:[%s18178_s6] ss:$40 sps:$4 sm:$0xff]  }
 0x2fd   :  { %v16025_v58 = vpack.c.bf16 %v185_v27, %v185_v27  ;;  %v12840_v37 = vld [vmem:[%s18178_s6 + $0x54] ss:$40 sps:$4 sm:$0xff]   ;;  %v12871_v7 = vld [vmem:[%s18178_s6 + $0x238] ss:$40 sps:$4 sm:$0xff]   ;;  %v12882_v27 = vld [vmem:[%s18178_s6 + $0x284] ss:$40 sps:$4 sm:$0xff]  }
 0x2fe   :  { %5183 = vmatpush1.bf16.msra.mxu1 %v12782_v36  ;;  %v12835_v36 = vld [vmem:[%s18178_s6 + $0x58] ss:$40 sps:$4 sm:$0xff]  }
 0x2ff   :  { %5146 = vmatpush1.bf16.msra.mxu0 %v12779_v38  ;;  %5184 = vmatprep.subr.bf16.mxu1 %v12790_v39  ;;  %v12838_v38 = vld [vmem:[%s18178_s6 + $0x50] ss:$40 sps:$4 sm:$0xff]  }
 0x300   :  { %5147 = vmatprep.subr.bf16.mxu0 %v12787_v40  ;;  %v12841_v39 = vld [vmem:[%s18178_s6 + $0xa8] ss:$40 sps:$4 sm:$0xff]   ;;  %v12846_v40 = vld [vmem:[%s18178_s6 + $0xa4] ss:$40 sps:$4 sm:$0xff]  }
 0x302   :  { %5185 = vmatpush1.bf16.msra.mxu1 %v12788_v42  ;;  %v12844_v42 = vld [vmem:[%s18178_s6 + $0xa0] ss:$40 sps:$4 sm:$0xff]  }
 0x303   :  { %5148 = vmatpush1.bf16.msra.mxu0 %v12785_v43  ;;  %5186 = vmatprep.subr.bf16.mxu1 %v12796_v46  ;;  %v12847_v43 = vld [vmem:[%s18178_s6 + $0xf8] ss:$40 sps:$4 sm:$0xff]   ;;  %v12852_v46 = vld [vmem:[%s18178_s6 + $0xf4] ss:$40 sps:$4 sm:$0xff]  }
 0x304   :  { %5149 = vmatprep.subr.bf16.mxu0 %v12793_v24  ;;  %v12855_v24 = vld [vmem:[%s18178_s6 + $0x14c] ss:$40 sps:$4 sm:$0xff]  }
 0x306   :  { %5187 = vmatpush1.bf16.msra.mxu1 %v12794_v49  ;;  %v12850_v49 = vld [vmem:[%s18178_s6 + $0xf0] ss:$40 sps:$4 sm:$0xff]  }
 0x307   :  { %5150 = vmatpush1.bf16.msra.mxu0 %v12791_v1  ;;  %5188 = vmatprep.subr.bf16.mxu1 %v12802_v51  ;;  %v12853_v1 = vld [vmem:[%s18178_s6 + $0x148] ss:$40 sps:$4 sm:$0xff]   ;;  %v12858_v51 = vld [vmem:[%s18178_s6 + $0x144] ss:$40 sps:$4 sm:$0xff]  }
 0x308   :  { %5151 = vmatprep.subr.bf16.mxu0 %v12799_v35  ;;  %v12861_v35 = vld [vmem:[%s18178_s6 + $0x19c] ss:$40 sps:$4 sm:$0xff]  }
 0x30a   :  { %5189 = vmatpush1.bf16.msra.mxu1 %v12800_v52  ;;  %v12856_v52 = vld [vmem:[%s18178_s6 + $0x140] ss:$40 sps:$4 sm:$0xff]  }
 0x30b   :  { %5152 = vmatpush1.bf16.msra.mxu0 %v12797_v55  ;;  %5190 = vmatprep.subr.bf16.mxu1 %v12808_v59  ;;  %v12859_v55 = vld [vmem:[%s18178_s6 + $0x198] ss:$40 sps:$4 sm:$0xff]   ;;  %v12864_v59 = vld [vmem:[%s18178_s6 + $0x194] ss:$40 sps:$4 sm:$0xff]  }
 0x30c   :  { %5153 = vmatprep.subr.bf16.mxu0 %v12805_v60  ;;  %v12867_v60 = vld [vmem:[%s18178_s6 + $0x1ec] ss:$40 sps:$4 sm:$0xff]  }
 0x30e   :  { %5191 = vmatpush1.bf16.msra.mxu1 %v12806_v61  ;;  %v12862_v61 = vld [vmem:[%s18178_s6 + $0x190] ss:$40 sps:$4 sm:$0xff]  }
 0x30f   :  { %5154 = vmatpush1.bf16.msra.mxu0 %v12803_v19  ;;  %5192 = vmatprep.subr.bf16.mxu1 %v12814_v56  ;;  %v12865_v19 = vld [vmem:[%s18178_s6 + $0x1e8] ss:$40 sps:$4 sm:$0xff]   ;;  %v12870_v56 = vld [vmem:[%s18178_s6 + $0x1e4] ss:$40 sps:$4 sm:$0xff]  }
 0x310   :  { %5155 = vmatprep.subr.bf16.mxu0 %v12811_v0  ;;  %v12873_v0 = vld [vmem:[%s18178_s6 + $0x23c] ss:$40 sps:$4 sm:$0xff]  }
 0x312   :  { %5193 = vmatpush1.bf16.msra.mxu1 %v12812_v3 }
 0x313   :  { %5156 = vmatpush1.bf16.msra.mxu0 %v12809_v4  ;;  %5194 = vmatprep.subr.bf16.mxu1 %v12820_v6  ;;  %v12868_v6 = vld [vmem:[%s18178_s6 + $0x1e0] ss:$40 sps:$4 sm:$0xff]  }
 0x314   :  { %5157 = vmatprep.subr.bf16.mxu0 %v12817_v63 }
 0x316   :  { %5195 = vmatpush1.bf16.msra.mxu1 %v12818_v8  ;;  %v12876_v8 = vld [vmem:[%s18178_s6 + $0x234] ss:$40 sps:$4 sm:$0xff]  }
 0x317   :  { %5158 = vmatpush1.bf16.msra.mxu0 %v12815_v9  ;;  %5196 = vmatprep.subr.bf16.mxu1 %v12826_v10 }
 0x318   :  { %5159 = vmatprep.subr.bf16.mxu0 %v12823_v14  ;;  %v12879_v14 = vld [vmem:[%s18178_s6 + $0x28c] ss:$40 sps:$4 sm:$0xff]  }
 0x31a   :  { %5197 = vmatpush1.bf16.msra.mxu1 %v12824_v16 }
 0x31b   :  { %5160 = vmatpush1.bf16.msra.mxu0 %v12821_v20  ;;  %11049 = vmatprep.subr.msk.bf16.mxu1 %vm4360_vm5, %v11040_v21  ;;  %v12874_v21 = vld [vmem:[%s18178_s6 + $0x230] ss:$40 sps:$4 sm:$0xff]  }
 0x31c   :  { %5911 = vmatprep.subr.bf16.mxu0 %v12830_v22  ;;  %v12877_v22 = vld [vmem:[%s18178_s6 + $0x288] ss:$40 sps:$4 sm:$0xff]  }
 0x31e   :  { %5162 = vmatmul.mubr.bf16.vlgmr.msra.gmra.mrb[40].mxu0 %v14427_v41  ;;  %5199 = vmatpush1.bf16.msra.mxu1 %v4386_v53  ;;  %v12843_v41 = vld [vmem:[%s18178_s6 + $0xac] ss:$40 sps:$4 sm:$0xff]   ;;  %v12880_v53 = vld [vmem:[%s18178_s6 + $0x280] ss:$40 sps:$4 sm:$0xff]  }
 0x31f   :  { %5912 = vmatpush1.bf16.msra.mxu0 %v12828_v26  ;;  %11184 = vmatprep.mubr.msk.bf16.mxu0 %vm5836_vm6, %v16025_v58  ;;  %v12885_v26 = vld [vmem:[%s18178_s6 + $0x2dc] ss:$40 sps:$4 sm:$0xff]  }
 0x320   :  { %5870 = vmatprep.subr.bf16.mxu1 %v12834_v29  ;;  %5913 = vmatprep.subr.bf16.mxu0 %v12837_v50  ;;  %v12883_v29 = vld [vmem:[%s18178_s6 + $0x2d8] ss:$40 sps:$4 sm:$0xff]   ;;  %v12888_v50 = vld [vmem:[%s18178_s6 + $0x2d4] ss:$40 sps:$4 sm:$0xff]  }
 0x321   :  { %5203 = vmatmul.mubr.bf16.vlgmr.msra.gmra.mrb[52].mxu1 %v14440_v62  ;;  %v12849_v62 = vld [vmem:[%s18178_s6 + $0xfc] ss:$40 sps:$4 sm:$0xff]  }
 0x322   :  { %5871 = vmatpush1.bf16.msra.mxu1 %v12832_v34  ;;  %11182 = vmatprep.mubr.msk.bf16.mxu1 %vm5836_vm6, %v16025_v58  ;;  %v12891_v34 = vld [vmem:[%s18178_s6 + $0x32c] ss:$40 sps:$4 sm:$0xff]  }
 0x323   :  { %5914 = vmatpush1.bf16.msra.mxu0 %v12835_v36  ;;  %5872 = vmatprep.subr.bf16.mxu1 %v12840_v37  ;;  %v12886_v36 = vld [vmem:[%s18178_s6 + $0x2d0] ss:$40 sps:$4 sm:$0xff]  }
 0x324   :  { %5915 = vmatprep.subr.bf16.mxu0 %v12843_v41  ;;  %v12889_v37 = vld [vmem:[%s18178_s6 + $0x328] ss:$40 sps:$4 sm:$0xff]   ;;  %v12894_v41 = vld [vmem:[%s18178_s6 + $0x324] ss:$40 sps:$4 sm:$0xff]  }
 0x326   :  { %5873 = vmatpush1.bf16.msra.mxu1 %v12838_v38  ;;  %v60_v38 = vrot.slane %v15973_v2, %v14181_v47  ;;  %v12895_v2 = vld [vmem:[%s18178_s6 + $0x378] ss:$40 sps:$4 sm:$0xff]  }
 0x327   :  { %5916 = vmatpush1.bf16.msra.mxu0 %v12841_v39  ;;  %5874 = vmatprep.subr.bf16.mxu1 %v12846_v40  ;;  %v12897_v39 = vld [vmem:[%s18178_s6 + $0x37c] ss:$40 sps:$4 sm:$0xff]   ;;  %v602_v40 = vld [vmem:[%s18178_s6 + $0x3c8] sm:$0xff] }
 0x328   :  { %5917 = vmatprep.subr.bf16.mxu0 %v12849_v62  ;;  %v12892_v62 = vld [vmem:[%s18178_s6 + $0x320] ss:$40 sps:$4 sm:$0xff]  }
 0x32a   :  { %5875 = vmatpush1.bf16.msra.mxu1 %v12844_v42  ;;  %v12900_v42 = vld [vmem:[%s18178_s6 + $0x374] ss:$40 sps:$4 sm:$0xff]  }
 0x32b   :  { %5918 = vmatpush1.bf16.msra.mxu0 %v12847_v43  ;;  %5876 = vmatprep.subr.bf16.mxu1 %v12852_v46  ;;  %v178_v43 = vadd.f32 %v14488_v18, %v60_v38  ;;  %v11174_v46 = vcombine.high %v602_v40, %v602_v40  ;;  %v12944_v38 = vld [vmem:[%s18178_s6 + $0x1f0] ss:$40 sps:$4 sm:$0xff]  }
 0x32c   :  { %5919 = vmatprep.subr.bf16.mxu0 %v12855_v24  ;;  %v11173_v24 = vcombine.low %v602_v40, %v602_v40  ;;  %v12952_v40 = vld [vmem:[%s18178_s6 + $0x244] ss:$40 sps:$4 sm:$0xff]  }
 0x32e   :  { %5877 = vmatpush1.bf16.msra.mxu1 %v12850_v49  ;;  %v601_v49 = vld [vmem:[%s18178_s6 + $0x3c0] sm:$0xff]  ;;  %v5847_v18 = vsel %vm4360_vm5, %v11173_v24, 0 }
 0x32f   :  { %5920 = vmatpush1.bf16.msra.mxu0 %v12853_v1  ;;  %5878 = vmatprep.subr.bf16.mxu1 %v12858_v51  ;;  %v12898_v1 = vld [vmem:[%s18178_s6 + $0x370] ss:$40 sps:$4 sm:$0xff]   ;;  %v11172_v51 = vcombine.high %v601_v49, %v601_v49 }
 0x330   :  { %5921 = vmatprep.subr.bf16.mxu0 %v12861_v35  ;;  %v11171_v35 = vcombine.low %v601_v49, %v601_v49 }
 0x332   :  { %5879 = vmatpush1.bf16.msra.mxu1 %v12856_v52  ;;  %v184_v52 = vmax.f32 %v178_v43, 0.0  ;;  %v12958_v43 = vld [vmem:[%s18178_s6 + $0x294] ss:$40 sps:$4 sm:$0xff]  }
 0x333   :  { %5922 = vmatpush1.bf16.msra.mxu0 %v12859_v55  ;;  %5880 = vmatprep.subr.bf16.mxu1 %v12864_v59  ;;  %v12906_v55 = vld [vmem:[%s18178_s6 + $0x1c] ss:$40 sps:$4 sm:$0xff]   ;;  %v12904_v59 = vld [vmem:[%s18178_s6 + $0x18] ss:$40 sps:$4 sm:$0xff]  }
 0x334   :  { %5923 = vmatprep.subr.bf16.mxu0 %v12867_v60  ;;  %v5841_v60 = vsel %vm4360_vm5, %v11171_v35, 0  ;;  %v12959_v35 = vld [vmem:[%s18178_s6 + $0x2e8] ss:$40 sps:$4 sm:$0xff]  }
 0x335   :  { %v4958_v3 = vpop.f32.mrb[28].mxu0 }
 0x336   :  { %v4960_v4 = vpop.f32.mrb[29].mxu0  ;;  %5881 = vmatpush1.bf16.msra.mxu1 %v12862_v61  ;;  %v16188_v61 = vpack.c.bf16 %v184_v52, %v184_v52  ;;  %v12964_v52 = vld [vmem:[%s18178_s6 + $0x2e4] ss:$40 sps:$4 sm:$0xff]  }
 0x337   :  { %v4962_v63 = vpop.f32.mrb[30].mxu0  ;;  %5924 = vmatpush1.bf16.msra.mxu0 %v12865_v19  ;;  %5882 = vmatprep.subr.bf16.mxu1 %v12870_v56  ;;  %v12910_v19 = vld [vmem:[%s18178_s6 + $0x14] ss:$40 sps:$4 sm:$0xff]  }
 0x338   :  { %v4963_v9 = vpop.f32.mrb[31].mxu0  ;;  %v4917_v10 = vpop.f32.mrb[40].mxu1  ;;  %5925 = vmatprep.subr.bf16.mxu0 %v12873_v0  ;;  %v12913_v56 = vld [vmem:[%s18178_s6 + $0x6c] ss:$40 sps:$4 sm:$0xff]   ;;  %v12908_v0 = vld [vmem:[%s18178_s6 + $0x10] ss:$40 sps:$4 sm:$0xff]  }
 0x339   :  { %v16117_v17 = vadd.f32 %v4958_v3, %v4917_v10  ;;  %v4919_v15 = vpop.f32.mrb[41].mxu1  ;;  %v12911_v3 = vld [vmem:[%s18178_s6 + $0x68] ss:$40 sps:$4 sm:$0xff]   ;;  %v12925_v9 = vld [vmem:[%s18178_s6 + $0x10c] ss:$40 sps:$4 sm:$0xff]  }
 0x33a   :  { %v16119_v16 = vadd.f32 %v4960_v4, %v4919_v15  ;;  %v4921_v20 = vpop.f32.mrb[42].mxu1  ;;  %5883 = vmatpush1.bf16.msra.mxu1 %v12868_v6  ;;  %v12916_v4 = vld [vmem:[%s18178_s6 + $0x64] ss:$40 sps:$4 sm:$0xff]   ;;  %v12914_v63 = vld [vmem:[%s18178_s6 + $0x60] ss:$40 sps:$4 sm:$0xff]  }
 0x33b   :  { %5926 = vmatpush1.bf16.msra.mxu0 %v12871_v7  ;;  %v4922_v44 = vpop.f32.mrb[43].mxu1  ;;  %5884 = vmatprep.subr.bf16.mxu1 %v12876_v8  ;;  %v12919_v6 = vld [vmem:[%s18178_s6 + $0xbc] ss:$40 sps:$4 sm:$0xff]   ;;  %v12917_v7 = vld [vmem:[%s18178_s6 + $0xb8] ss:$40 sps:$4 sm:$0xff]  }
 0x33c   :  { %5927 = vmatprep.subr.bf16.mxu0 %v12879_v14  ;;  %v12922_v8 = vld [vmem:[%s18178_s6 + $0xb4] ss:$40 sps:$4 sm:$0xff]   ;;  %v12920_v10 = vld [vmem:[%s18178_s6 + $0xb0] ss:$40 sps:$4 sm:$0xff]   ;;  %v12928_v15 = vld [vmem:[%s18178_s6 + $0x104] ss:$40 sps:$4 sm:$0xff]  }
 0x33d   :  { %v12923_v14 = vld [vmem:[%s18178_s6 + $0x108] ss:$40 sps:$4 sm:$0xff]   ;;  %v12931_v20 = vld [vmem:[%s18178_s6 + $0x15c] ss:$40 sps:$4 sm:$0xff]   ;;  %v12929_v44 = vld [vmem:[%s18178_s6 + $0x158] ss:$40 sps:$4 sm:$0xff]  }
 0x33e   :  { %5885 = vmatpush1.bf16.msra.mxu1 %v12874_v21  ;;  %v12926_v21 = vld [vmem:[%s18178_s6 + $0x100] ss:$40 sps:$4 sm:$0xff]  }
 0x33f   :  { %5928 = vmatpush1.bf16.msra.mxu0 %v12877_v22  ;;  %5886 = vmatprep.subr.bf16.mxu1 %v12882_v27  ;;  %v12934_v22 = vld [vmem:[%s18178_s6 + $0x154] ss:$40 sps:$4 sm:$0xff]  }
 0x340   :  { %5929 = vmatprep.subr.bf16.mxu0 %v12885_v26  ;;  %v12937_v27 = vld [vmem:[%s18178_s6 + $0x1ac] ss:$40 sps:$4 sm:$0xff]   ;;  %v12932_v26 = vld [vmem:[%s18178_s6 + $0x150] ss:$40 sps:$4 sm:$0xff]  }
 0x342   :  { %5887 = vmatpush1.bf16.msra.mxu1 %v12880_v53  ;;  %v12935_v53 = vld [vmem:[%s18178_s6 + $0x1a8] ss:$40 sps:$4 sm:$0xff]  }
 0x343   :  { %5930 = vmatpush1.bf16.msra.mxu0 %v12883_v29  ;;  %5888 = vmatprep.subr.bf16.mxu1 %v12888_v50  ;;  %v12940_v29 = vld [vmem:[%s18178_s6 + $0x1a4] ss:$40 sps:$4 sm:$0xff]  }
 0x344   :  { %5931 = vmatprep.subr.bf16.mxu0 %v12891_v34  ;;  %v12943_v50 = vld [vmem:[%s18178_s6 + $0x1fc] ss:$40 sps:$4 sm:$0xff]   ;;  %v12938_v34 = vld [vmem:[%s18178_s6 + $0x1a0] ss:$40 sps:$4 sm:$0xff]  }
 0x346   :  { %5889 = vmatpush1.bf16.msra.mxu1 %v12886_v36  ;;  %v12941_v36 = vld [vmem:[%s18178_s6 + $0x1f8] ss:$40 sps:$4 sm:$0xff]  }
 0x347   :  { %5932 = vmatpush1.bf16.msra.mxu0 %v12889_v37  ;;  %5890 = vmatprep.subr.bf16.mxu1 %v12894_v41  ;;  %v12946_v37 = vld [vmem:[%s18178_s6 + $0x1f4] ss:$40 sps:$4 sm:$0xff]  }
 0x348   :  { %5933 = vmatprep.subr.bf16.mxu0 %v12897_v39  ;;  %v12949_v41 = vld [vmem:[%s18178_s6 + $0x24c] ss:$40 sps:$4 sm:$0xff]   ;;  %v12947_v39 = vld [vmem:[%s18178_s6 + $0x248] ss:$40 sps:$4 sm:$0xff]  }
 0x34a   :  { %5891 = vmatpush1.bf16.msra.mxu1 %v12892_v62  ;;  %v12955_v62 = vld [vmem:[%s18178_s6 + $0x29c] ss:$40 sps:$4 sm:$0xff]  }
 0x34b   :  { %5934 = vmatpush1.bf16.msra.mxu0 %v12895_v2  ;;  %5892 = vmatprep.subr.bf16.mxu1 %v12900_v42  ;;  %v12950_v2 = vld [vmem:[%s18178_s6 + $0x240] ss:$40 sps:$4 sm:$0xff]  }
 0x34c   :  { %11183 = vmatprep.subr.msk.bf16.mxu0 %vm4360_vm5, %v11174_v46  ;;  %v12953_v42 = vld [vmem:[%s18178_s6 + $0x298] ss:$40 sps:$4 sm:$0xff]   ;;  %v12961_v46 = vld [vmem:[%s18178_s6 + $0x2ec] ss:$40 sps:$4 sm:$0xff]  }
 0x34e   :  { %5893 = vmatpush1.bf16.msra.mxu1 %v12898_v1  ;;  %v12956_v1 = vld [vmem:[%s18178_s6 + $0x290] ss:$40 sps:$4 sm:$0xff]  }
 0x34f   :  { %5936 = vmatpush1.bf16.msra.mxu0 %v5847_v18  ;;  %11181 = vmatprep.subr.msk.bf16.mxu1 %vm4360_vm5, %v11172_v51 }
 0x350   :  { %5993 = vmatprep.subr.bf16.mxu0 %v12906_v55  ;;  %v12967_v55 = vld [vmem:[%s18178_s6 + $0x33c] ss:$40 sps:$4 sm:$0xff]  }
 0x352   :  { %5944 = vmatmul.mubr.bf16.vlgmr.msra.gmra.mrb[44].mxu0 %v16188_v61  ;;  %5895 = vmatpush1.bf16.msra.mxu1 %v5841_v60  ;;  %v12965_v60 = vld [vmem:[%s18178_s6 + $0x338] ss:$40 sps:$4 sm:$0xff]  }
 0x353   :  { %5994 = vmatpush1.bf16.msra.mxu0 %v12904_v59  ;;  %11188 = vmatprep.mubr.msk.bf16.mxu0 %vm5836_vm6, %v16025_v58  ;;  %v12962_v59 = vld [vmem:[%s18178_s6 + $0x2e0] ss:$40 sps:$4 sm:$0xff]  }
 0x354   :  { %5952 = vmatprep.subr.bf16.mxu1 %v12910_v19  ;;  %5995 = vmatprep.subr.bf16.mxu0 %v12913_v56  ;;  %v12970_v19 = vld [vmem:[%s18178_s6 + $0x334] ss:$40 sps:$4 sm:$0xff]  }
 0x355   :  { %5903 = vmatmul.mubr.bf16.vlgmr.msra.gmra.mrb[56].mxu1 %v16188_v61 }
 0x356   :  { %5953 = vmatpush1.bf16.msra.mxu1 %v12908_v0  ;;  %11186 = vmatprep.mubr.msk.bf16.mxu1 %vm5836_vm6, %v16025_v58  ;;  %v12973_v0 = vld [vmem:[%s18178_s6 + $0x38c] ss:$40 sps:$4 sm:$0xff]  }
 0x357   :  { %5996 = vmatpush1.bf16.msra.mxu0 %v12911_v3  ;;  %5954 = vmatprep.subr.bf16.mxu1 %v12916_v4 }
 0x358   :  { %5997 = vmatprep.subr.bf16.mxu0 %v12919_v6  ;;  %v604_v6 = vld [vmem:[%s18178_s6 + $0x3d8] sm:$0xff] }
 0x35a   :  { %5955 = vmatpush1.bf16.msra.mxu1 %v12914_v63 }
 0x35b   :  { %5998 = vmatpush1.bf16.msra.mxu0 %v12917_v7  ;;  %5956 = vmatprep.subr.bf16.mxu1 %v12922_v8  ;;  %v12968_v8 = vld [vmem:[%s18178_s6 + $0x330] ss:$40 sps:$4 sm:$0xff]  }
 0x35c   :  { %5999 = vmatprep.subr.bf16.mxu0 %v12925_v9 }
 0x35e   :  { %5957 = vmatpush1.bf16.msra.mxu1 %v12920_v10  ;;  %v12976_v10 = vld [vmem:[%s18178_s6 + $0x384] ss:$40 sps:$4 sm:$0xff]  }
 0x35f   :  { %6000 = vmatpush1.bf16.msra.mxu0 %v12923_v14  ;;  %5958 = vmatprep.subr.bf16.mxu1 %v12928_v15  ;;  %v11177_v15 = vcombine.low %v604_v6, %v604_v6 }
 0x360   :  { %6001 = vmatprep.subr.bf16.mxu0 %v12931_v20  ;;  %v603_v20 = vld [vmem:[%s18178_s6 + $0x3d0] sm:$0xff] }
 0x362   :  { %5959 = vmatpush1.bf16.msra.mxu1 %v12926_v21 }
 0x363   :  { %6002 = vmatpush1.bf16.msra.mxu0 %v12929_v44  ;;  %5960 = vmatprep.subr.bf16.mxu1 %v12934_v22  ;;  %v12974_v44 = vld [vmem:[%s18178_s6 + $0x380] ss:$40 sps:$4 sm:$0xff]   ;;  %v11176_v22 = vcombine.high %v603_v20, %v603_v20 }
 0x364   :  { %6003 = vmatprep.subr.bf16.mxu0 %v12937_v27  ;;  %v11175_v27 = vcombine.low %v603_v20, %v603_v20  ;;  %v13051_v20 = vld [vmem:[%s18181_s9 + $0x234] ss:$28 sps:$4 sm:$0xff]  }
 0x366   :  { %5961 = vmatpush1.bf16.msra.mxu1 %v12932_v26  ;;  %v5859_v26 = vsel %vm4360_vm5, %v11177_v15, 0  ;;  %v13046_v15 = vld [vmem:[%s18181_s9 + $0x1f8] ss:$28 sps:$4 sm:$0xff]  }
 0x367   :  { %6004 = vmatpush1.bf16.msra.mxu0 %v12935_v53  ;;  %5962 = vmatprep.subr.bf16.mxu1 %v12940_v29  ;;  %v13021_v53 = vld [vmem:[%s18181_s9 + $0x4] ss:$28 sps:$4 sm:$0xff]   ;;  %v5853_v29 = vsel %vm4360_vm5, %v11175_v27, 0  ;;  %v13049_v27 = vld [vmem:[%s18181_s9 + $0x230] ss:$28 sps:$4 sm:$0xff]  }
 0x368   :  { %6005 = vmatprep.subr.bf16.mxu0 %v12943_v50  ;;  %v12983_v50 = vld [vmem:[%s18178_s6 + $0x24] ss:$40 sps:$4 sm:$0xff]  }
 0x36a   :  { %5963 = vmatpush1.bf16.msra.mxu1 %v12938_v34  ;;  %v13019_v34 = vld [vmem:[%s18181_s9] ss:$28 sps:$4 sm:$0xff]  }
 0x36b   :  { %6006 = vmatpush1.bf16.msra.mxu0 %v12941_v36  ;;  %5964 = vmatprep.subr.bf16.mxu1 %v12946_v37  ;;  %v13024_v36 = vld [vmem:[%s18181_s9 + $0x3c] ss:$28 sps:$4 sm:$0xff]   ;;  %v12981_v37 = vld [vmem:[%s18178_s6 + $0x20] ss:$40 sps:$4 sm:$0xff]  }
 0x36c   :  { %6007 = vmatprep.subr.bf16.mxu0 %v12949_v41  ;;  %v12986_v41 = vld [vmem:[%s18178_s6 + $0x74] ss:$40 sps:$4 sm:$0xff]  }
 0x36e   :  { %5965 = vmatpush1.bf16.msra.mxu1 %v12944_v38  ;;  %v13022_v38 = vld [vmem:[%s18181_s9 + $0x38] ss:$28 sps:$4 sm:$0xff]  }
 0x36f   :  { %6008 = vmatpush1.bf16.msra.mxu0 %v12947_v39  ;;  %5966 = vmatprep.subr.bf16.mxu1 %v12952_v40  ;;  %v13027_v39 = vld [vmem:[%s18181_s9 + $0x74] ss:$28 sps:$4 sm:$0xff]  }
 0x370   :  { %6009 = vmatprep.subr.bf16.mxu0 %v12955_v62  ;;  %v12984_v40 = vld [vmem:[%s18178_s6 + $0x70] ss:$40 sps:$4 sm:$0xff]   ;;  %v12989_v62 = vld [vmem:[%s18178_s6 + $0xc4] ss:$40 sps:$4 sm:$0xff]  }
 0x371   :  { %v5040_v24 = vpop.f32.mrb[32].mxu0 }
 0x372   :  { %v5042_v49 = vpop.f32.mrb[33].mxu0  ;;  %5967 = vmatpush1.bf16.msra.mxu1 %v12950_v2  ;;  %v13025_v2 = vld [vmem:[%s18181_s9 + $0x70] ss:$28 sps:$4 sm:$0xff]  }
 0x373   :  { %v5044_v51 = vpop.f32.mrb[34].mxu0  ;;  %6010 = vmatpush1.bf16.msra.mxu0 %v12953_v42  ;;  %5968 = vmatprep.subr.bf16.mxu1 %v12958_v43  ;;  %v13030_v42 = vld [vmem:[%s18181_s9 + $0xac] ss:$28 sps:$4 sm:$0xff]   ;;  %v12992_v43 = vld [vmem:[%s18178_s6 + $0x114] ss:$40 sps:$4 sm:$0xff]  }
 0x374   :  { %v5045_v18 = vpop.f32.mrb[35].mxu0  ;;  %6011 = vmatprep.subr.bf16.mxu0 %v12961_v46  ;;  %v13028_v46 = vld [vmem:[%s18181_s9 + $0xa8] ss:$28 sps:$4 sm:$0xff]   ;;  %v13031_v51 = vld [vmem:[%s18181_s9 + $0xe0] ss:$28 sps:$4 sm:$0xff]  }
 0x375   :  { %v12998_v18 = vld [vmem:[%s18178_s6 + $0x1b4] ss:$40 sps:$4 sm:$0xff]  }
 0x376   :  { %5969 = vmatpush1.bf16.msra.mxu1 %v12956_v1  ;;  %v12995_v1 = vld [vmem:[%s18178_s6 + $0x164] ss:$40 sps:$4 sm:$0xff]  }
 0x377   :  { %6012 = vmatpush1.bf16.msra.mxu0 %v12959_v35  ;;  %5970 = vmatprep.subr.bf16.mxu1 %v12964_v52  ;;  %v13036_v35 = vld [vmem:[%s18181_s9 + $0x11c] ss:$28 sps:$4 sm:$0xff]   ;;  %v12993_v52 = vld [vmem:[%s18178_s6 + $0x160] ss:$40 sps:$4 sm:$0xff]  }
 0x378   :  { %v4999_v56 = vpop.f32.mrb[44].mxu1  ;;  %6013 = vmatprep.subr.bf16.mxu0 %v12967_v55  ;;  %v13034_v55 = vld [vmem:[%s18181_s9 + $0x118] ss:$28 sps:$4 sm:$0xff]  }
 0x379   :  { %v5000_v3 = vadd.f32 %v4999_v56, %v16117_v17  ;;  %v5001_v4 = vpop.f32.mrb[45].mxu1  ;;  %v12971_v17 = vld [vmem:[%s18178_s6 + $0x388] ss:$40 sps:$4 sm:$0xff]  }
 0x37a   :  { %v5002_v63 = vadd.f32 %v5001_v4, %v16119_v16  ;;  %v5003_v7 = vpop.f32.mrb[46].mxu1  ;;  %5971 = vmatpush1.bf16.msra.mxu1 %v12962_v59  ;;  %v11178_v16 = vcombine.high %v604_v6, %v604_v6  ;;  %v13039_v59 = vld [vmem:[%s18181_s9 + $0x154] ss:$28 sps:$4 sm:$0xff]   ;;  %v13040_v6 = vld [vmem:[%s18181_s9 + $0x188] ss:$28 sps:$4 sm:$0xff]  }
 0x37b   :  { %6014 = vmatpush1.bf16.msra.mxu0 %v12965_v60  ;;  %v5004_v9 = vpop.f32.mrb[47].mxu1  ;;  %5972 = vmatprep.subr.bf16.mxu1 %v12970_v19  ;;  %v16336_v14 = vadd.f32 %v5040_v24, %v5000_v3  ;;  %v13033_v24 = vld [vmem:[%s18181_s9 + $0xe4] ss:$28 sps:$4 sm:$0xff]   ;;  %v12996_v60 = vld [vmem:[%s18178_s6 + $0x1b0] ss:$40 sps:$4 sm:$0xff]  }
 0x37c   :  { %6015 = vmatprep.subr.bf16.mxu0 %v12973_v0  ;;  %v16341_v21 = vadd.f32 %v5042_v49, %v5002_v63  ;;  %v12990_v49 = vld [vmem:[%s18178_s6 + $0x110] ss:$40 sps:$4 sm:$0xff]   ;;  %v13001_v19 = vld [vmem:[%s18178_s6 + $0x204] ss:$40 sps:$4 sm:$0xff]   ;;  %v12999_v3 = vld [vmem:[%s18178_s6 + $0x200] ss:$40 sps:$4 sm:$0xff]  }
 0x37d   :  { %v13037_v56 = vld [vmem:[%s18181_s9 + $0x150] ss:$28 sps:$4 sm:$0xff]   ;;  %v13004_v4 = vld [vmem:[%s18178_s6 + $0x254] ss:$40 sps:$4 sm:$0xff]   ;;  %v13045_v63 = vld [vmem:[%s18181_s9 + $0x1c4] ss:$28 sps:$4 sm:$0xff]  }
 0x37e   :  { %5973 = vmatpush1.bf16.msra.mxu1 %v12968_v8  ;;  %v13042_v0 = vld [vmem:[%s18181_s9 + $0x18c] ss:$28 sps:$4 sm:$0xff]   ;;  %v13002_v7 = vld [vmem:[%s18178_s6 + $0x250] ss:$40 sps:$4 sm:$0xff]   ;;  %v13043_v9 = vld [vmem:[%s18181_s9 + $0x1c0] ss:$28 sps:$4 sm:$0xff]  }
 0x37f   :  { %6016 = vmatpush1.bf16.msra.mxu0 %v12971_v17  ;;  %5974 = vmatprep.subr.bf16.mxu1 %v12976_v10  ;;  %v13007_v8 = vld [vmem:[%s18178_s6 + $0x2a4] ss:$40 sps:$4 sm:$0xff]   ;;  %v13048_v17 = vld [vmem:[%s18181_s9 + $0x1fc] ss:$28 sps:$4 sm:$0xff]   ;;  %v13005_v10 = vld [vmem:[%s18178_s6 + $0x2a0] ss:$40 sps:$4 sm:$0xff]  }
 0x380   :  { %11187 = vmatprep.subr.msk.bf16.mxu0 %vm4360_vm5, %v11178_v16  ;;  %v13010_v16 = vld [vmem:[%s18178_s6 + $0x2f4] ss:$40 sps:$4 sm:$0xff]  }
 0x382   :  { %5975 = vmatpush1.bf16.msra.mxu1 %v12974_v44  ;;  %v13008_v44 = vld [vmem:[%s18178_s6 + $0x2f0] ss:$40 sps:$4 sm:$0xff]  }
 0x383   :  { %6018 = vmatpush1.bf16.msra.mxu0 %v5859_v26  ;;  %11185 = vmatprep.subr.msk.bf16.mxu1 %vm4360_vm5, %v11176_v22  ;;  %v13013_v22 = vld [vmem:[%s18178_s6 + $0x344] ss:$40 sps:$4 sm:$0xff]  }
 0x384   :  { %9500 = vmatprep.subr.bf16.mxu0 %v13021_v53  ;;  %v13054_v26 = vld [vmem:[%s18181_s9 + $0x26c] ss:$28 sps:$4 sm:$0xff]  }
 0x385   :  { %v13011_v53 = vld [vmem:[%s18178_s6 + $0x340] ss:$40 sps:$4 sm:$0xff]  }
 0x386   :  { %6026 = vmatmul.mubr.bf16.vlgmr.msra.gmra.mrb[48].mxu0 %v16188_v61  ;;  %5977 = vmatpush1.bf16.msra.mxu1 %v5853_v29  ;;  %v13016_v29 = vld [vmem:[%s18178_s6 + $0x394] ss:$40 sps:$4 sm:$0xff]  }
 0x387   :  { %6034 = vmatprep.subr.bf16.mxu1 %v12983_v50  ;;  %9501 = vmatpush1.bf16.msra.mxu0 %v13019_v34  ;;  %v13052_v50 = vld [vmem:[%s18181_s9 + $0x268] ss:$28 sps:$4 sm:$0xff]  }
 0x388   :  { %9502 = vmatprep.subr.bf16.mxu0 %v13024_v36  ;;  %v605_v34 = vld [vmem:[%s18178_s6 + $0x3e0] sm:$0xff] }
 0x389   :  { %5985 = vmatmul.mubr.bf16.vlgmr.msra.gmra.mrb[60].mxu1 %v16188_v61  ;;  %v13057_v36 = vld [vmem:[%s18181_s9 + $0x2a4] ss:$28 sps:$4 sm:$0xff]  }
 0x38a   :  { %6035 = vmatpush1.bf16.msra.mxu1 %v12981_v37  ;;  %11190 = vmatprep.mubr.msk.bf16.mxu1 %vm5836_vm6, %v16025_v58  ;;  %v12987_v58 = vld [vmem:[%s18178_s6 + $0xc0] ss:$40 sps:$4 sm:$0xff]  }
 0x38b   :  { %6036 = vmatprep.subr.bf16.mxu1 %v12986_v41  ;;  %9503 = vmatpush1.bf16.msra.mxu0 %v13022_v38  ;;  %v13014_v38 = vld [vmem:[%s18178_s6 + $0x390] ss:$40 sps:$4 sm:$0xff]  }
 0x38c   :  { %9504 = vmatprep.subr.bf16.mxu0 %v13027_v39 }
 0x38e   :  { %6037 = vmatpush1.bf16.msra.mxu1 %v12984_v40  ;;  %v11180_v40 = vcombine.high %v605_v34, %v605_v34 }
 0x38f   :  { %6038 = vmatprep.subr.bf16.mxu1 %v12989_v62  ;;  %9505 = vmatpush1.bf16.msra.mxu0 %v13025_v2  ;;  %v11179_v62 = vcombine.low %v605_v34, %v605_v34  ;;  %v13055_v2 = vld [vmem:[%s18181_s9 + $0x2a0] ss:$28 sps:$4 sm:$0xff]   ;;  %v13145_v34 = vld [vmem:[%s18181_s9 + $0xf18] ss:$28 sps:$4 sm:$0xff]  }
 0x390   :  { %9506 = vmatprep.subr.bf16.mxu0 %v13030_v42 }
 0x392   :  { %6039 = vmatpush1.bf16.msra.mxu1 %v12987_v58  ;;  %v13060_v58 = vld [vmem:[%s18181_s9 + $0x2dc] ss:$28 sps:$4 sm:$0xff]  }
 0x393   :  { %6040 = vmatprep.subr.bf16.mxu1 %v12992_v43  ;;  %9507 = vmatpush1.bf16.msra.mxu0 %v13028_v46  ;;  %v5865_v43 = vsel %vm4360_vm5, %v11179_v62, 0  ;;  %v13058_v46 = vld [vmem:[%s18181_s9 + $0x2d8] ss:$28 sps:$4 sm:$0xff]   ;;  %v13165_v62 = vld [vmem:[%s18181_s9 + $0xfc4] ss:$28 sps:$4 sm:$0xff]  }
 0x394   :  { %9508 = vmatprep.subr.bf16.mxu0 %v13033_v24 }
 0x396   :  { %6041 = vmatpush1.bf16.msra.mxu1 %v12990_v49  ;;  %v13063_v49 = vld [vmem:[%s18181_s9 + $0x314] ss:$28 sps:$4 sm:$0xff]  }
 0x397   :  { %6042 = vmatprep.subr.bf16.mxu1 %v12995_v1  ;;  %9509 = vmatpush1.bf16.msra.mxu0 %v13031_v51 }
 0x398   :  { %9510 = vmatprep.subr.bf16.mxu0 %v13036_v35 }
 0x39a   :  { %6043 = vmatpush1.bf16.msra.mxu1 %v12993_v52 }
 0x39b   :  { %6044 = vmatprep.subr.bf16.mxu1 %v12998_v18  ;;  %9511 = vmatpush1.bf16.msra.mxu0 %v13034_v55  ;;  %v13061_v55 = vld [vmem:[%s18181_s9 + $0x310] ss:$28 sps:$4 sm:$0xff]  }
 0x39c   :  { %9512 = vmatprep.subr.bf16.mxu0 %v13039_v59  ;;  %v13066_v59 = vld [vmem:[%s18181_s9 + $0x34c] ss:$28 sps:$4 sm:$0xff]  }
 0x39e   :  { %6045 = vmatpush1.bf16.msra.mxu1 %v12996_v60  ;;  %v13064_v60 = vld [vmem:[%s18181_s9 + $0x348] ss:$28 sps:$4 sm:$0xff]  }
 0x39f   :  { %6046 = vmatprep.subr.bf16.mxu1 %v13001_v19  ;;  %9513 = vmatpush1.bf16.msra.mxu0 %v13037_v56  ;;  %v13069_v19 = vld [vmem:[%s18181_s9 + $0x384] ss:$28 sps:$4 sm:$0xff]  }
 0x3a0   :  { %9514 = vmatprep.subr.bf16.mxu0 %v13042_v0  ;;  %v13115_v56 = vld [vmem:[%s18181_s9 + $0xe00] ss:$28 sps:$4 sm:$0xff]  }
 0x3a2   :  { %6047 = vmatpush1.bf16.msra.mxu1 %v12999_v3  ;;  %v13123_v3 = vld [vmem:[%s18181_s9 + $0xe3c] ss:$28 sps:$4 sm:$0xff]  }
 0x3a3   :  { %6048 = vmatprep.subr.bf16.mxu1 %v13004_v4  ;;  %9515 = vmatpush1.bf16.msra.mxu0 %v13040_v6 }
 0x3a4   :  { %9516 = vmatprep.subr.bf16.mxu0 %v13045_v63  ;;  %v13121_v63 = vld [vmem:[%s18181_s9 + $0xe38] ss:$28 sps:$4 sm:$0xff]  }
 0x3a6   :  { %6049 = vmatpush1.bf16.msra.mxu1 %v13002_v7 }
 0x3a7   :  { %6050 = vmatprep.subr.bf16.mxu1 %v13007_v8  ;;  %9517 = vmatpush1.bf16.msra.mxu0 %v13043_v9 }
 0x3a8   :  { %9518 = vmatprep.subr.bf16.mxu0 %v13048_v17 }
 0x3aa   :  { %6051 = vmatpush1.bf16.msra.mxu1 %v13005_v10 }
 0x3ab   :  { %6052 = vmatprep.subr.bf16.mxu1 %v13010_v16  ;;  %9519 = vmatpush1.bf16.msra.mxu0 %v13046_v15  ;;  %v13127_v15 = vld [vmem:[%s18181_s9 + $0xe70] ss:$28 sps:$4 sm:$0xff]  }
 0x3ac   :  { %9520 = vmatprep.subr.bf16.mxu0 %v13051_v20  ;;  %v13129_v20 = vld [vmem:[%s18181_s9 + $0xe74] ss:$28 sps:$4 sm:$0xff]  }
 0x3ae   :  { %6053 = vmatpush1.bf16.msra.mxu1 %v13008_v44 }
 0x3af   :  { %6054 = vmatprep.subr.bf16.mxu1 %v13013_v22  ;;  %9521 = vmatpush1.bf16.msra.mxu0 %v13049_v27 }
 0x3b0   :  { %9522 = vmatprep.subr.bf16.mxu0 %v13054_v26  ;;  %v13133_v26 = vld [vmem:[%s18181_s9 + $0xea8] ss:$28 sps:$4 sm:$0xff]  }
 0x3b1   :  { %v5081_v37 = vpop.f32.mrb[36].mxu0 }
 0x3b2   :  { %v5083_v41 = vpop.f32.mrb[37].mxu0  ;;  %6055 = vmatpush1.bf16.msra.mxu1 %v13011_v53  ;;  %v13135_v53 = vld [vmem:[%s18181_s9 + $0xeac] ss:$28 sps:$4 sm:$0xff]  }
 0x3b3   :  { %v5085_v39 = vpop.f32.mrb[38].mxu0  ;;  %6056 = vmatprep.subr.bf16.mxu1 %v13016_v29  ;;  %9523 = vmatpush1.bf16.msra.mxu0 %v13052_v50  ;;  %v13139_v29 = vld [vmem:[%s18181_s9 + $0xee0] ss:$28 sps:$4 sm:$0xff]  }
 0x3b4   :  { %v5086_v42 = vpop.f32.mrb[39].mxu0  ;;  %9524 = vmatprep.subr.bf16.mxu0 %v13057_v36  ;;  %v13141_v50 = vld [vmem:[%s18181_s9 + $0xee4] ss:$28 sps:$4 sm:$0xff]   ;;  %v13147_v36 = vld [vmem:[%s18181_s9 + $0xf1c] ss:$28 sps:$4 sm:$0xff]  }
 0x3b5   :  { %v13159_v39 = vld [vmem:[%s18181_s9 + $0xf8c] ss:$28 sps:$4 sm:$0xff]   ;;  %v13169_v42 = vld [vmem:[%s18181_s9 + $0xff8] ss:$28 sps:$4 sm:$0xff]  }
 0x3b6   :  { %6057 = vmatpush1.bf16.msra.mxu1 %v13014_v38  ;;  %v13157_v38 = vld [vmem:[%s18181_s9 + $0xf88] ss:$28 sps:$4 sm:$0xff]  }
 0x3b7   :  { %11189 = vmatprep.subr.msk.bf16.mxu1 %vm4360_vm5, %v11180_v40  ;;  %9525 = vmatpush1.bf16.msra.mxu0 %v13055_v2  ;;  %v13163_v40 = vld [vmem:[%s18181_s9 + $0xfc0] ss:$28 sps:$4 sm:$0xff]  }
 0x3b8   :  { %v5122_v24 = vpop.f32.mrb[48].mxu1  ;;  %9526 = vmatprep.subr.bf16.mxu0 %v13060_v58  ;;  %v13171_v2 = vld [vmem:[%s18181_s9 + $0xffc] ss:$28 sps:$4 sm:$0xff]   ;;  %v13177_v58 = vld [vmem:[%s18181_s9 + $0x1034] ss:$28 sps:$4 sm:$0xff]  }
 0x3b9   :  { %v5123_v1 = vadd.f32 %v5122_v24, %v5081_v37  ;;  %v5124_v51 = vpop.f32.mrb[49].mxu1  ;;  %v13151_v37 = vld [vmem:[%s18181_s9 + $0xf50] ss:$28 sps:$4 sm:$0xff]   ;;  %v16607_v24 = vld [vmem:[%s18180_s8] sm:$0xff] }
 0x3ba   :  { %v5125_v35 = vadd.f32 %v5124_v51, %v5083_v41  ;;  %v5126_v52 = vpop.f32.mrb[50].mxu1  ;;  %6059 = vmatpush1.bf16.msra.mxu1 %v5865_v43  ;;  %v13153_v41 = vld [vmem:[%s18181_s9 + $0xf54] ss:$28 sps:$4 sm:$0xff]  }
 0x3bb   :  { %v5127_v18 = vpop.f32.mrb[51].mxu1  ;;  %9527 = vmatpush1.bf16.msra.mxu0 %v13058_v46  ;;  %v13175_v43 = vld [vmem:[%s18181_s9 + $0x1030] ss:$28 sps:$4 sm:$0xff]   ;;  %v6094_v52 = vrot.slane %v16607_v24, %v14194_v57 }
 0x3bc   :  { %9528 = vmatprep.subr.bf16.mxu0 %v13063_v49  ;;  %v13183_v46 = vld [vmem:[%s18181_s9 + $0xc] ss:$28 sps:$4 sm:$0xff]   ;;  %v6090_v49 = vrot.slane %v16607_v24, %v14191_v54 }
 0x3bd   :  { %6067 = vmatmul.mubr.bf16.vlgmr.msra.gmra.mrb[64].mxu1 %v16188_v61  ;;  %v13117_v61 = vld [vmem:[%s18181_s9 + $0xe04] ss:$28 sps:$4 sm:$0xff]  }
 0x3be   :  { %9664 = vmatprep.subr.bf16.mxu1 %v13117_v61  ;;  %v6086_v61 = vrot.slane %v16607_v24, %v14184_v48 }
 0x3bf   :  { %9529 = vmatpush1.bf16.msra.mxu0 %v13061_v55  ;;  %9665 = vmatpush1.bf16.msra.mxu1 %v13115_v56 }
 0x3c0   :  { %9530 = vmatprep.subr.bf16.mxu0 %v13066_v59  ;;  %9666 = vmatprep.subr.bf16.mxu1 %v13123_v3  ;;  %v6082_v59 = vrot.slane %v16607_v24, %v14181_v47 }
 0x3c3   :  { %9531 = vmatpush1.bf16.msra.mxu0 %v13064_v60  ;;  %9667 = vmatpush1.bf16.msra.mxu1 %v13121_v63 }
 0x3c4   :  { %9541 = vmatprep.subr.bf16.mxu0 %v13069_v19  ;;  %9668 = vmatprep.subr.bf16.mxu1 %v13129_v20 }
 0x3c7   :  { %9669 = vmatpush1.bf16.msra.mxu1 %v13127_v15  ;;  %v13067_v15 = vld [vmem:[%s18181_s9 + $0x380] ss:$28 sps:$4 sm:$0xff]  }
 0x3c8   :  { %9670 = vmatprep.subr.bf16.mxu1 %v13135_v53  ;;  %v13078_v53 = vld [vmem:[%s18181_s9 + $0x42c] ss:$28 sps:$4 sm:$0xff]  }
 0x3cb   :  { %9671 = vmatpush1.bf16.msra.mxu1 %v13133_v26  ;;  %v13073_v26 = vld [vmem:[%s18181_s9 + $0x3f0] ss:$28 sps:$4 sm:$0xff]  }
 0x3cc   :  { %9672 = vmatprep.subr.bf16.mxu1 %v13141_v50  ;;  %v13081_v50 = vld [vmem:[%s18181_s9 + $0x464] ss:$28 sps:$4 sm:$0xff]  }
 0x3cf   :  { %9673 = vmatpush1.bf16.msra.mxu1 %v13139_v29  ;;  %v13076_v29 = vld [vmem:[%s18181_s9 + $0x428] ss:$28 sps:$4 sm:$0xff]  }
 0x3d0   :  { %9674 = vmatprep.subr.bf16.mxu1 %v13147_v36  ;;  %v13084_v36 = vld [vmem:[%s18181_s9 + $0x49c] ss:$28 sps:$4 sm:$0xff]  }
 0x3d3   :  { %9675 = vmatpush1.bf16.msra.mxu1 %v13145_v34  ;;  %v13079_v34 = vld [vmem:[%s18181_s9 + $0x460] ss:$28 sps:$4 sm:$0xff]  }
 0x3d4   :  { %9676 = vmatprep.subr.bf16.mxu1 %v13153_v41  ;;  %v13087_v41 = vld [vmem:[%s18181_s9 + $0x4d4] ss:$28 sps:$4 sm:$0xff]  }
 0x3d7   :  { %9677 = vmatpush1.bf16.msra.mxu1 %v13151_v37  ;;  %v13082_v37 = vld [vmem:[%s18181_s9 + $0x498] ss:$28 sps:$4 sm:$0xff]  }
 0x3d8   :  { %9678 = vmatprep.subr.bf16.mxu1 %v13159_v39  ;;  %v13090_v39 = vld [vmem:[%s18181_s9 + $0x50c] ss:$28 sps:$4 sm:$0xff]  }
 0x3db   :  { %9679 = vmatpush1.bf16.msra.mxu1 %v13157_v38  ;;  %v13085_v38 = vld [vmem:[%s18181_s9 + $0x4d0] ss:$28 sps:$4 sm:$0xff]  }
 0x3dc   :  { %9680 = vmatprep.subr.bf16.mxu1 %v13165_v62  ;;  %v13093_v62 = vld [vmem:[%s18181_s9 + $0x544] ss:$28 sps:$4 sm:$0xff]  }
 0x3df   :  { %9681 = vmatpush1.bf16.msra.mxu1 %v13163_v40  ;;  %v13088_v40 = vld [vmem:[%s18181_s9 + $0x508] ss:$28 sps:$4 sm:$0xff]  }
 0x3e0   :  { %9682 = vmatprep.subr.bf16.mxu1 %v13171_v2  ;;  %v13091_v2 = vld [vmem:[%s18181_s9 + $0x540] ss:$28 sps:$4 sm:$0xff]  }
 0x3e3   :  { %9683 = vmatpush1.bf16.msra.mxu1 %v13169_v42  ;;  %v13096_v42 = vld [vmem:[%s18181_s9 + $0x57c] ss:$28 sps:$4 sm:$0xff]  }
 0x3e4   :  { %9684 = vmatprep.subr.bf16.mxu1 %v13177_v58  ;;  %v13094_v58 = vld [vmem:[%s18181_s9 + $0x578] ss:$28 sps:$4 sm:$0xff]  }
 0x3e7   :  { %9685 = vmatpush1.bf16.msra.mxu1 %v13175_v43  ;;  %v13099_v43 = vld [vmem:[%s18181_s9 + $0x5b4] ss:$28 sps:$4 sm:$0xff]  }
 0x3e8   :  { %9705 = vmatprep.subr.bf16.mxu1 %v13183_v46  ;;  %v6106_v46 = vrot.slane %v16607_v24, %v14386_v31 }
 0x3f1   :  { %v5163_v0 = vpop.f32.mrb[40].mxu0 }
 0x3f2   :  { %v5164_v4 = vadd.f32 %v5163_v0, %v5123_v1  ;;  %v5165_v6 = vpop.f32.mrb[41].mxu0 }
 0x3f3   :  { %v5166_v7 = vadd.f32 %v5165_v6, %v5125_v35  ;;  %v5167_v8 = vpop.f32.mrb[42].mxu0 }
 0x3f4   :  { %v5168_v9 = vpop.f32.mrb[43].mxu0  ;;  %v5204_v17 = vpop.f32.mrb[52].mxu1 }
 0x3f5   :  { %v16543_v10 = vadd.f32 %v5204_v17, %v5164_v4  ;;  %v5206_v16 = vpop.f32.mrb[53].mxu1 }
 0x3f6   :  { %v16551_v44 = vadd.f32 %v5206_v16, %v5166_v7  ;;  %v5208_v22 = vpop.f32.mrb[54].mxu1 }
 0x3f7   :  { %v5209_v27 = vpop.f32.mrb[55].mxu1  ;;  %v13070_v22 = vld [vmem:[%s18181_s9 + $0x3b8] ss:$28 sps:$4 sm:$0xff]  }
 0x3f8   :  { %v13075_v27 = vld [vmem:[%s18181_s9 + $0x3f4] ss:$28 sps:$4 sm:$0xff]  }
 0x425   :  { %v5945_v1 = vpop.f32.mrb[44].mxu0 }
 0x426   :  { %v5946_v51 = vadd.f32 %v5945_v1, %v15525_v12  ;;  %v5947_v35 = vpop.f32.mrb[45].mxu0 }
 0x427   :  { %v5948_v18 = vadd.f32 %v5947_v35, %v15533_v13  ;;  %v5949_v55 = vpop.f32.mrb[46].mxu0  ;;  %v13102_v35 = vld [vmem:[%s18181_s9 + $0x5ec] ss:$28 sps:$4 sm:$0xff]  }
 0x428   :  { %v16617_v60 = vadd.f32 %v6090_v49, %v5946_v51  ;;  %v5950_v19 = vpop.f32.mrb[47].mxu0  ;;  %v5904_v56 = vpop.f32.mrb[56].mxu1  ;;  %v13097_v49 = vld [vmem:[%s18181_s9 + $0x5b0] ss:$28 sps:$4 sm:$0xff]   ;;  %v6110_v51 = vrot.slane %v16607_v24, %v230_v28  ;;  %v6102_v28 = vrot.slane %v16607_v24, %v14219_v11 }
 0x429   :  { %v5905_v0 = vadd.f32 %v5904_v56, %v15114_v23  ;;  %v5906_v12 = vpop.f32.mrb[57].mxu1  ;;  %v6132_v3 = vadd.f32 %v6094_v52, %v5948_v18  ;;  %v13072_v23 = vld [vmem:[%s18181_s9 + $0x3bc] ss:$28 sps:$4 sm:$0xff]   ;;  %v6098_v19 = vrot.slane %v16607_v24, %v14371_v25 }
 0x42a   :  { %v5907_v4 = vadd.f32 %v5906_v12, %v15119_v30  ;;  %v5908_v6 = vpop.f32.mrb[58].mxu1 }
 0x42b   :  { %v6129_v63 = vadd.f32 %v6082_v59, %v5905_v0  ;;  %v5909_v13 = vpop.f32.mrb[59].mxu1  ;;  %v6142_v9 = vmax.f32 %v6132_v3, 0.0  ;;  %v13100_v0 = vld [vmem:[%s18181_s9 + $0x5e8] ss:$28 sps:$4 sm:$0xff]  }
 0x42c   :  { %v6130_v7 = vadd.f32 %v6086_v61, %v5907_v4  ;;  %v13105_v3 = vld [vmem:[%s18181_s9 + $0x624] ss:$28 sps:$4 sm:$0xff]  }
 0x42d   :  { %v6139_v8 = vmax.f32 %v6129_v63, 0.0  ;;  %v16633_v30 = vpack.c.bf16 %v6142_v9, %v6142_v9  ;;  %v13109_v9 = vld [vmem:[%s18181_s9 + $0x690] ss:$28 sps:$4 sm:$0xff]  }
 0x42e   :  { %v6140_v17 = vmax.f32 %v6130_v7, 0.0  ;;  %v13103_v7 = vld [vmem:[%s18181_s9 + $0x620] ss:$28 sps:$4 sm:$0xff]  }
 0x42f   :  { %v16628_v20 = vpack.c.bf16 %v6139_v8, %v6139_v8  ;;  %v13111_v8 = vld [vmem:[%s18181_s9 + $0x694] ss:$28 sps:$4 sm:$0xff]  }
 0x430   :  { %v16623_v16 = vpack.c.bf16 %v6140_v17, %v6140_v17  ;;  %v13114_v17 = vld [vmem:[%s18181_s9 + $0x6cc] ss:$28 sps:$4 sm:$0xff]  }
 0x432   :  { %9532 = vmatprep.mubr.bf16.mxu0 %v16623_v16 }
 0x433   :  { %9533 = vmatmul.mubr.bf16.vlgmr.msra.gmra.mrb[52].mxu0 %v16628_v20 }
 0x434   :  { %9542 = vmatpush1.bf16.msra.mxu0 %v13067_v15  ;;  %9573 = vmatprep.mubr.bf16.mxu0 %v16633_v30  ;;  %v13112_v15 = vld [vmem:[%s18181_s9 + $0x6c8] ss:$28 sps:$4 sm:$0xff]  }
 0x435   :  { %9543 = vmatprep.subr.bf16.mxu0 %v13072_v23  ;;  %v6141_v23 = vmax.f32 %v16617_v60, 0.0  ;;  %v13124_v60 = vld [vmem:[%s18181_s9 + $0x738] ss:$28 sps:$4 sm:$0xff]  }
 0x438   :  { %9544 = vmatpush1.bf16.msra.mxu0 %v13070_v22  ;;  %v13120_v22 = vld [vmem:[%s18181_s9 + $0x704] ss:$28 sps:$4 sm:$0xff]  }
 0x439   :  { %9545 = vmatprep.subr.bf16.mxu0 %v13075_v27 }
 0x43c   :  { %9546 = vmatpush1.bf16.msra.mxu0 %v13073_v26  ;;  %v13118_v26 = vld [vmem:[%s18181_s9 + $0x700] ss:$28 sps:$4 sm:$0xff]  }
 0x43d   :  { %9547 = vmatprep.subr.bf16.mxu0 %v13078_v53  ;;  %v16751_v53 = vpack.c.bf16 %v6141_v23, %v6141_v23  ;;  %v13198_v23 = vld [vmem:[%s18181_s9 + $0x9dc] ss:$28 sps:$4 sm:$0xff]  }
 0x440   :  { %9548 = vmatpush1.bf16.msra.mxu0 %v13076_v29  ;;  %v13126_v29 = vld [vmem:[%s18181_s9 + $0x73c] ss:$28 sps:$4 sm:$0xff]  }
 0x441   :  { %9549 = vmatprep.subr.bf16.mxu0 %v13081_v50 }
 0x444   :  { %9550 = vmatpush1.bf16.msra.mxu0 %v13079_v34  ;;  %v13132_v34 = vld [vmem:[%s18181_s9 + $0x774] ss:$28 sps:$4 sm:$0xff]  }
 0x445   :  { %9551 = vmatprep.subr.bf16.mxu0 %v13084_v36  ;;  %v13130_v36 = vld [vmem:[%s18181_s9 + $0x770] ss:$28 sps:$4 sm:$0xff]  }
 0x448   :  { %9552 = vmatpush1.bf16.msra.mxu0 %v13082_v37  ;;  %v13138_v37 = vld [vmem:[%s18181_s9 + $0x7ac] ss:$28 sps:$4 sm:$0xff]  }
 0x449   :  { %9553 = vmatprep.subr.bf16.mxu0 %v13087_v41  ;;  %v13136_v41 = vld [vmem:[%s18181_s9 + $0x7a8] ss:$28 sps:$4 sm:$0xff]  }
 0x44c   :  { %9554 = vmatpush1.bf16.msra.mxu0 %v13085_v38  ;;  %v13144_v38 = vld [vmem:[%s18181_s9 + $0x7e4] ss:$28 sps:$4 sm:$0xff]  }
 0x44d   :  { %9555 = vmatprep.subr.bf16.mxu0 %v13090_v39  ;;  %v13142_v39 = vld [vmem:[%s18181_s9 + $0x7e0] ss:$28 sps:$4 sm:$0xff]  }
 0x450   :  { %9556 = vmatpush1.bf16.msra.mxu0 %v13088_v40  ;;  %v13150_v40 = vld [vmem:[%s18181_s9 + $0x81c] ss:$28 sps:$4 sm:$0xff]  }
 0x451   :  { %9557 = vmatprep.subr.bf16.mxu0 %v13093_v62  ;;  %v13148_v62 = vld [vmem:[%s18181_s9 + $0x818] ss:$28 sps:$4 sm:$0xff]  }
 0x454   :  { %9558 = vmatpush1.bf16.msra.mxu0 %v13091_v2  ;;  %v13156_v2 = vld [vmem:[%s18181_s9 + $0x854] ss:$28 sps:$4 sm:$0xff]  }
 0x455   :  { %9559 = vmatprep.subr.bf16.mxu0 %v13096_v42  ;;  %v13154_v42 = vld [vmem:[%s18181_s9 + $0x850] ss:$28 sps:$4 sm:$0xff]  }
 0x458   :  { %9560 = vmatpush1.bf16.msra.mxu0 %v13094_v58  ;;  %v13162_v58 = vld [vmem:[%s18181_s9 + $0x88c] ss:$28 sps:$4 sm:$0xff]  }
 0x459   :  { %v6027_v1 = vpop.f32.mrb[48].mxu0  ;;  %9561 = vmatprep.subr.bf16.mxu0 %v13099_v43  ;;  %v13160_v43 = vld [vmem:[%s18181_s9 + $0x888] ss:$28 sps:$4 sm:$0xff]  }
 0x45a   :  { %v6028_v52 = vadd.f32 %v6027_v1, %v16336_v14  ;;  %v6029_v18 = vpop.f32.mrb[49].mxu0 }
 0x45b   :  { %v6030_v55 = vadd.f32 %v6029_v18, %v16341_v21  ;;  %v6031_v59 = vpop.f32.mrb[50].mxu0 }
 0x45c   :  { %v16707_v56 = vadd.f32 %v6106_v46, %v6028_v52  ;;  %v6032_v61 = vpop.f32.mrb[51].mxu0  ;;  %9562 = vmatpush1.bf16.msra.mxu0 %v13097_v49  ;;  %v5986_v45 = vpop.f32.mrb[60].mxu1  ;;  %v6076_v46 = vld [vmem:[%s18180_s8 + $0x8] sm:$0x3]  ;;  %v13168_v49 = vld [vmem:[%s18181_s9 + $0x8c4] ss:$28 sps:$4 sm:$0xff]  }
 0x45d   :  { %v16714_v14 = vadd.f32 %v6110_v51, %v6030_v55  ;;  %v5987_v21 = vadd.f32 %v5986_v45, %v15906_v32  ;;  %v5988_v12 = vpop.f32.mrb[61].mxu1  ;;  %9563 = vmatprep.subr.bf16.mxu0 %v13102_v35  ;;  %v13108_v32 = vld [vmem:[%s18181_s9 + $0x65c] ss:$28 sps:$4 sm:$0xff]   ;;  %v6114_v1 = vrot.slane %v6076_v46, %v14181_v47  ;;  %v6118_v35 = vrot.slane %v6076_v46, %v14184_v48 }
 0x45e   :  { %v5989_v4 = vadd.f32 %v5988_v12, %v15908_v33  ;;  %v5990_v6 = vpop.f32.mrb[62].mxu1  ;;  %v13106_v33 = vld [vmem:[%s18181_s9 + $0x658] ss:$28 sps:$4 sm:$0xff]   ;;  %v13166_v52 = vld [vmem:[%s18181_s9 + $0x8c0] ss:$28 sps:$4 sm:$0xff]  }
 0x45f   :  { %v16721_v63 = vadd.f32 %v6098_v19, %v5987_v21  ;;  %v5991_v24 = vpop.f32.mrb[63].mxu1  ;;  %v13174_v59 = vld [vmem:[%s18181_s9 + $0x8fc] ss:$28 sps:$4 sm:$0xff]   ;;  %v13181_v6 = vld [vmem:[%s18181_s9 + $0x8] ss:$28 sps:$4 sm:$0xff]  }
 0x460   :  { %v6134_v13 = vadd.f32 %v6102_v28, %v5989_v4  ;;  %9564 = vmatpush1.bf16.msra.mxu0 %v13100_v0  ;;  %v13172_v21 = vld [vmem:[%s18181_s9 + $0x8f8] ss:$28 sps:$4 sm:$0xff]  }
 0x461   :  { %9565 = vmatprep.subr.bf16.mxu0 %v13105_v3  ;;  %v13222_v46 = vld [vmem:[%s18181_s9 + $0xabc] ss:$28 sps:$4 sm:$0xff]  }
 0x462   :  { %v6144_v27 = vmax.f32 %v6134_v13, 0.0  ;;  %v13186_v13 = vld [vmem:[%s18181_s9 + $0x96c] ss:$28 sps:$4 sm:$0xff]  }
 0x464   :  { %9566 = vmatpush1.bf16.msra.mxu0 %v13103_v7  ;;  %v16756_v50 = vpack.c.bf16 %v6144_v27, %v6144_v27  ;;  %v13189_v7 = vld [vmem:[%s18181_s9 + $0x44] ss:$28 sps:$4 sm:$0xff]   ;;  %v13196_v27 = vld [vmem:[%s18181_s9 + $0x9d8] ss:$28 sps:$4 sm:$0xff]  }
 0x465   :  { %9567 = vmatprep.subr.bf16.mxu0 %v13108_v32  ;;  %v13184_v32 = vld [vmem:[%s18181_s9 + $0x968] ss:$28 sps:$4 sm:$0xff]  }
 0x468   :  { %9568 = vmatpush1.bf16.msra.mxu0 %v13106_v33  ;;  %v13187_v33 = vld [vmem:[%s18181_s9 + $0x40] ss:$28 sps:$4 sm:$0xff]  }
 0x469   :  { %9569 = vmatprep.subr.bf16.mxu0 %v13111_v8  ;;  %v13192_v8 = vld [vmem:[%s18181_s9 + $0x9a4] ss:$28 sps:$4 sm:$0xff]  }
 0x46c   :  { %9570 = vmatpush1.bf16.msra.mxu0 %v13109_v9  ;;  %v13195_v9 = vld [vmem:[%s18181_s9 + $0x7c] ss:$28 sps:$4 sm:$0xff]  }
 0x46d   :  { %9571 = vmatprep.subr.bf16.mxu0 %v13114_v17  ;;  %v13190_v17 = vld [vmem:[%s18181_s9 + $0x9a0] ss:$28 sps:$4 sm:$0xff]  }
 0x470   :  { %9572 = vmatpush1.bf16.msra.mxu0 %v13112_v15  ;;  %v13193_v15 = vld [vmem:[%s18181_s9 + $0x78] ss:$28 sps:$4 sm:$0xff]  }
 0x471   :  { %9582 = vmatprep.subr.bf16.mxu0 %v13120_v22  ;;  %v13201_v22 = vld [vmem:[%s18181_s9 + $0xb4] ss:$28 sps:$4 sm:$0xff]  }
 0x473   :  { %9574 = vmatmul.mubr.bf16.vlgmr.msra.gmra.mrb[52].mxu0 %v16751_v53 }
 0x474   :  { %9583 = vmatpush1.bf16.msra.mxu0 %v13118_v26  ;;  %9614 = vmatprep.mubr.bf16.mxu0 %v16756_v50  ;;  %v13199_v26 = vld [vmem:[%s18181_s9 + $0xb0] ss:$28 sps:$4 sm:$0xff]  }
 0x475   :  { %9584 = vmatprep.subr.bf16.mxu0 %v13126_v29  ;;  %v13204_v29 = vld [vmem:[%s18181_s9 + $0xa14] ss:$28 sps:$4 sm:$0xff]  }
 0x478   :  { %9585 = vmatpush1.bf16.msra.mxu0 %v13124_v60  ;;  %v13207_v60 = vld [vmem:[%s18181_s9 + $0xec] ss:$28 sps:$4 sm:$0xff]  }
 0x479   :  { %9586 = vmatprep.subr.bf16.mxu0 %v13132_v34  ;;  %v13202_v34 = vld [vmem:[%s18181_s9 + $0xa10] ss:$28 sps:$4 sm:$0xff]  }
 0x47c   :  { %9587 = vmatpush1.bf16.msra.mxu0 %v13130_v36  ;;  %v13205_v36 = vld [vmem:[%s18181_s9 + $0xe8] ss:$28 sps:$4 sm:$0xff]  }
 0x47d   :  { %9588 = vmatprep.subr.bf16.mxu0 %v13138_v37  ;;  %v13210_v37 = vld [vmem:[%s18181_s9 + $0xa4c] ss:$28 sps:$4 sm:$0xff]  }
 0x480   :  { %9589 = vmatpush1.bf16.msra.mxu0 %v13136_v41  ;;  %v13213_v41 = vld [vmem:[%s18181_s9 + $0x124] ss:$28 sps:$4 sm:$0xff]  }
 0x481   :  { %9590 = vmatprep.subr.bf16.mxu0 %v13144_v38  ;;  %v13208_v38 = vld [vmem:[%s18181_s9 + $0xa48] ss:$28 sps:$4 sm:$0xff]  }
 0x484   :  { %9591 = vmatpush1.bf16.msra.mxu0 %v13142_v39  ;;  %v13211_v39 = vld [vmem:[%s18181_s9 + $0x120] ss:$28 sps:$4 sm:$0xff]  }
 0x485   :  { %9592 = vmatprep.subr.bf16.mxu0 %v13150_v40  ;;  %v6143_v40 = vmax.f32 %v16721_v63, 0.0  ;;  %v13217_v63 = vld [vmem:[%s18181_s9 + $0x158] ss:$28 sps:$4 sm:$0xff]  }
 0x488   :  { %9593 = vmatpush1.bf16.msra.mxu0 %v13148_v62  ;;  %v13216_v62 = vld [vmem:[%s18181_s9 + $0xa84] ss:$28 sps:$4 sm:$0xff]  }
 0x489   :  { %9594 = vmatprep.subr.bf16.mxu0 %v13156_v2  ;;  %v13219_v2 = vld [vmem:[%s18181_s9 + $0x15c] ss:$28 sps:$4 sm:$0xff]  }
 0x48c   :  { %9595 = vmatpush1.bf16.msra.mxu0 %v13154_v42  ;;  %v6146_v42 = vmax.f32 %v16714_v14, 0.0  ;;  %v13225_v14 = vld [vmem:[%s18181_s9 + $0x194] ss:$28 sps:$4 sm:$0xff]  }
 0x48d   :  { %9596 = vmatprep.subr.bf16.mxu0 %v13162_v58  ;;  %v13214_v58 = vld [vmem:[%s18181_s9 + $0xa80] ss:$28 sps:$4 sm:$0xff]  }
 0x490   :  { %9597 = vmatpush1.bf16.msra.mxu0 %v13160_v43  ;;  %v6068_v51 = vpop.f32.mrb[64].mxu1  ;;  %v16906_v43 = vpack.c.bf16 %v6143_v40, %v6143_v40  ;;  %v13282_v40 = vld [vmem:[%s18181_s9 + $0xcec] ss:$28 sps:$4 sm:$0xff]  }
 0x491   :  { %v6069_v18 = vadd.f32 %v6068_v51, %v16543_v10  ;;  %v6070_v55 = vpop.f32.mrb[65].mxu1  ;;  %9598 = vmatprep.subr.bf16.mxu0 %v13168_v49  ;;  %v13180_v10 = vld [vmem:[%s18181_s9 + $0x934] ss:$28 sps:$4 sm:$0xff]   ;;  %v16914_v49 = vpack.c.bf16 %v6146_v42, %v6146_v42  ;;  %v13283_v42 = vld [vmem:[%s18181_s9 + $0x3c0] ss:$28 sps:$4 sm:$0xff]  }
 0x492   :  { %v6071_v19 = vadd.f32 %v6070_v55, %v16551_v44  ;;  %v6072_v61 = vpop.f32.mrb[66].mxu1  ;;  %v13178_v44 = vld [vmem:[%s18181_s9 + $0x930] ss:$28 sps:$4 sm:$0xff]   ;;  %v13229_v55 = vld [vmem:[%s18181_s9 + $0x1c8] ss:$28 sps:$4 sm:$0xff]  }
 0x493   :  { %v6137_v45 = vadd.f32 %v6114_v1, %v6069_v18  ;;  %v6073_v28 = vpop.f32.mrb[67].mxu1  ;;  %v13220_v1 = vld [vmem:[%s18181_s9 + $0xab8] ss:$28 sps:$4 sm:$0xff]   ;;  %v13223_v51 = vld [vmem:[%s18181_s9 + $0x190] ss:$28 sps:$4 sm:$0xff]  }
 0x494   :  { %v6138_v0 = vadd.f32 %v6118_v35, %v6071_v19  ;;  %9599 = vmatpush1.bf16.msra.mxu0 %v13166_v52  ;;  %v13228_v35 = vld [vmem:[%s18181_s9 + $0xaf4] ss:$28 sps:$4 sm:$0xff]   ;;  %v13231_v52 = vld [vmem:[%s18181_s9 + $0x1cc] ss:$28 sps:$4 sm:$0xff]   ;;  %v13237_v19 = vld [vmem:[%s18181_s9 + $0x204] ss:$28 sps:$4 sm:$0xff]  }
 0x495   :  { %v6147_v12 = vmax.f32 %v6137_v45, 0.0  ;;  %9600 = vmatprep.subr.bf16.mxu0 %v13174_v59  ;;  %v13226_v18 = vld [vmem:[%s18181_s9 + $0xaf0] ss:$28 sps:$4 sm:$0xff]   ;;  %v13232_v61 = vld [vmem:[%s18181_s9 + $0xb28] ss:$28 sps:$4 sm:$0xff]  }
 0x496   :  { %v6148_v3 = vmax.f32 %v6138_v0, 0.0  ;;  %v13234_v59 = vld [vmem:[%s18181_s9 + $0xb2c] ss:$28 sps:$4 sm:$0xff]   ;;  %v13235_v45 = vld [vmem:[%s18181_s9 + $0x200] ss:$28 sps:$4 sm:$0xff]  }
 0x497   :  { %v16829_v24 = vpack.c.bf16 %v6147_v12, %v6147_v12  ;;  %v13240_v28 = vld [vmem:[%s18181_s9 + $0xb64] ss:$28 sps:$4 sm:$0xff]   ;;  %v13243_v0 = vld [vmem:[%s18181_s9 + $0x23c] ss:$28 sps:$4 sm:$0xff]  }
 0x498   :  { %v16821_v4 = vpack.c.bf16 %v6148_v3, %v6148_v3  ;;  %9601 = vmatpush1.bf16.msra.mxu0 %v13172_v21  ;;  %v13238_v21 = vld [vmem:[%s18181_s9 + $0xb60] ss:$28 sps:$4 sm:$0xff]   ;;  %v13241_v12 = vld [vmem:[%s18181_s9 + $0x238] ss:$28 sps:$4 sm:$0xff]  }
 0x499   :  { %9602 = vmatprep.subr.bf16.mxu0 %v13180_v10  ;;  %v13246_v10 = vld [vmem:[%s18181_s9 + $0xb9c] ss:$28 sps:$4 sm:$0xff]   ;;  %v13249_v3 = vld [vmem:[%s18181_s9 + $0x274] ss:$28 sps:$4 sm:$0xff]  }
 0x49a   :  { %11716 = vmatprep.mubr.msk.bf16.mxu1 %vm9496_vm7, %v16821_v4 }
 0x49b   :  { %9697 = vmatmul.mubr.bf16.vlgmr.msra.gmra.mrb[68].mxu1 %v16829_v24 }
 0x49c   :  { %9603 = vmatpush1.bf16.msra.mxu0 %v13178_v44  ;;  %9706 = vmatpush1.bf16.msra.mxu1 %v13181_v6  ;;  %v13244_v44 = vld [vmem:[%s18181_s9 + $0xb98] ss:$28 sps:$4 sm:$0xff]   ;;  %v13247_v6 = vld [vmem:[%s18181_s9 + $0x270] ss:$28 sps:$4 sm:$0xff]  }
 0x49d   :  { %9737 = vmatprep.mubr.bf16.mxu1 %v16623_v16  ;;  %9604 = vmatprep.subr.bf16.mxu0 %v13186_v13  ;;  %v13252_v13 = vld [vmem:[%s18181_s9 + $0xbd4] ss:$28 sps:$4 sm:$0xff]  }
 0x49e   :  { %9707 = vmatprep.subr.bf16.mxu1 %v13189_v7  ;;  %v13255_v7 = vld [vmem:[%s18181_s9 + $0x2ac] ss:$28 sps:$4 sm:$0xff]  }
 0x4a0   :  { %9605 = vmatpush1.bf16.msra.mxu0 %v13184_v32  ;;  %9708 = vmatpush1.bf16.msra.mxu1 %v13187_v33  ;;  %v13250_v32 = vld [vmem:[%s18181_s9 + $0xbd0] ss:$28 sps:$4 sm:$0xff]   ;;  %v13253_v33 = vld [vmem:[%s18181_s9 + $0x2a8] ss:$28 sps:$4 sm:$0xff]  }
 0x4a1   :  { %9606 = vmatprep.subr.bf16.mxu0 %v13192_v8  ;;  %9709 = vmatprep.subr.bf16.mxu1 %v13195_v9  ;;  %v13258_v8 = vld [vmem:[%s18181_s9 + $0xc0c] ss:$28 sps:$4 sm:$0xff]   ;;  %v13261_v9 = vld [vmem:[%s18181_s9 + $0x2e4] ss:$28 sps:$4 sm:$0xff]  }
 0x4a4   :  { %9607 = vmatpush1.bf16.msra.mxu0 %v13190_v17  ;;  %9710 = vmatpush1.bf16.msra.mxu1 %v13193_v15  ;;  %v13256_v17 = vld [vmem:[%s18181_s9 + $0xc08] ss:$28 sps:$4 sm:$0xff]   ;;  %v13259_v15 = vld [vmem:[%s18181_s9 + $0x2e0] ss:$28 sps:$4 sm:$0xff]  }
 0x4a5   :  { %9608 = vmatprep.subr.bf16.mxu0 %v13198_v23  ;;  %9711 = vmatprep.subr.bf16.mxu1 %v13201_v22  ;;  %v13264_v23 = vld [vmem:[%s18181_s9 + $0xc44] ss:$28 sps:$4 sm:$0xff]   ;;  %v13267_v22 = vld [vmem:[%s18181_s9 + $0x31c] ss:$28 sps:$4 sm:$0xff]  }
 0x4a8   :  { %9609 = vmatpush1.bf16.msra.mxu0 %v13196_v27  ;;  %9712 = vmatpush1.bf16.msra.mxu1 %v13199_v26  ;;  %v13262_v27 = vld [vmem:[%s18181_s9 + $0xc40] ss:$28 sps:$4 sm:$0xff]   ;;  %v13265_v26 = vld [vmem:[%s18181_s9 + $0x318] ss:$28 sps:$4 sm:$0xff]  }
 0x4a9   :  { %9610 = vmatprep.subr.bf16.mxu0 %v13204_v29  ;;  %9713 = vmatprep.subr.bf16.mxu1 %v13207_v60  ;;  %v13270_v29 = vld [vmem:[%s18181_s9 + $0xc7c] ss:$28 sps:$4 sm:$0xff]   ;;  %v13273_v60 = vld [vmem:[%s18181_s9 + $0x354] ss:$28 sps:$4 sm:$0xff]  }
 0x4ac   :  { %9611 = vmatpush1.bf16.msra.mxu0 %v13202_v34  ;;  %9714 = vmatpush1.bf16.msra.mxu1 %v13205_v36  ;;  %v13268_v34 = vld [vmem:[%s18181_s9 + $0xc78] ss:$28 sps:$4 sm:$0xff]   ;;  %v13271_v36 = vld [vmem:[%s18181_s9 + $0x350] ss:$28 sps:$4 sm:$0xff]  }
 0x4ad   :  { %9612 = vmatprep.subr.bf16.mxu0 %v13210_v37  ;;  %9715 = vmatprep.subr.bf16.mxu1 %v13213_v41  ;;  %v13276_v37 = vld [vmem:[%s18181_s9 + $0xcb4] ss:$28 sps:$4 sm:$0xff]   ;;  %v13279_v41 = vld [vmem:[%s18181_s9 + $0x38c] ss:$28 sps:$4 sm:$0xff]  }
 0x4b0   :  { %9613 = vmatpush1.bf16.msra.mxu0 %v13208_v38  ;;  %9716 = vmatpush1.bf16.msra.mxu1 %v13211_v39  ;;  %v13274_v38 = vld [vmem:[%s18181_s9 + $0xcb0] ss:$28 sps:$4 sm:$0xff]   ;;  %v13277_v39 = vld [vmem:[%s18181_s9 + $0x388] ss:$28 sps:$4 sm:$0xff]  }
 0x4b1   :  { %9623 = vmatprep.subr.bf16.mxu0 %v13216_v62  ;;  %9717 = vmatprep.subr.bf16.mxu1 %v13219_v2  ;;  %v13285_v62 = vld [vmem:[%s18181_s9 + $0x3c4] ss:$28 sps:$4 sm:$0xff]  }
 0x4b2   :  { %v13280_v2 = vld [vmem:[%s18181_s9 + $0xce8] ss:$28 sps:$4 sm:$0xff]  }
 0x4b3   :  { %9615 = vmatmul.mubr.bf16.vlgmr.msra.gmra.mrb[52].mxu0 %v16906_v43 }
 0x4b4   :  { %9624 = vmatpush1.bf16.msra.mxu0 %v13214_v58  ;;  %9655 = vmatprep.mubr.bf16.mxu0 %v16914_v49  ;;  %v13288_v58 = vld [vmem:[%s18181_s9 + $0xd24] ss:$28 sps:$4 sm:$0xff]  }
 0x4b5   :  { %9718 = vmatpush1.bf16.msra.mxu1 %v13217_v63  ;;  %9625 = vmatprep.subr.bf16.mxu0 %v13222_v46  ;;  %v13291_v63 = vld [vmem:[%s18181_s9 + $0x3fc] ss:$28 sps:$4 sm:$0xff]  }
 0x4b6   :  { %9719 = vmatprep.subr.bf16.mxu1 %v13225_v14  ;;  %v13286_v46 = vld [vmem:[%s18181_s9 + $0xd20] ss:$28 sps:$4 sm:$0xff]   ;;  %v13289_v14 = vld [vmem:[%s18181_s9 + $0x3f8] ss:$28 sps:$4 sm:$0xff]  }
 0x4b8   :  { %9626 = vmatpush1.bf16.msra.mxu0 %v13220_v1  ;;  %v13294_v1 = vld [vmem:[%s18181_s9 + $0xd5c] ss:$28 sps:$4 sm:$0xff]  }
 0x4b9   :  { %9720 = vmatpush1.bf16.msra.mxu1 %v13223_v51  ;;  %9627 = vmatprep.subr.bf16.mxu0 %v13228_v35  ;;  %v13297_v51 = vld [vmem:[%s18181_s9 + $0x434] ss:$28 sps:$4 sm:$0xff]  }
 0x4ba   :  { %9721 = vmatprep.subr.bf16.mxu1 %v13231_v52  ;;  %v13292_v35 = vld [vmem:[%s18181_s9 + $0xd58] ss:$28 sps:$4 sm:$0xff]   ;;  %v13295_v52 = vld [vmem:[%s18181_s9 + $0x430] ss:$28 sps:$4 sm:$0xff]  }
 0x4bc   :  { %9628 = vmatpush1.bf16.msra.mxu0 %v13226_v18  ;;  %v13300_v18 = vld [vmem:[%s18181_s9 + $0xd94] ss:$28 sps:$4 sm:$0xff]  }
 0x4bd   :  { %9722 = vmatpush1.bf16.msra.mxu1 %v13229_v55  ;;  %9629 = vmatprep.subr.bf16.mxu0 %v13234_v59  ;;  %v13303_v55 = vld [vmem:[%s18181_s9 + $0x46c] ss:$28 sps:$4 sm:$0xff]  }
 0x4be   :  { %9723 = vmatprep.subr.bf16.mxu1 %v13237_v19  ;;  %v13298_v59 = vld [vmem:[%s18181_s9 + $0xd90] ss:$28 sps:$4 sm:$0xff]   ;;  %v13301_v19 = vld [vmem:[%s18181_s9 + $0x468] ss:$28 sps:$4 sm:$0xff]  }
 0x4c0   :  { %9630 = vmatpush1.bf16.msra.mxu0 %v13232_v61  ;;  %v13306_v61 = vld [vmem:[%s18181_s9 + $0xdcc] ss:$28 sps:$4 sm:$0xff]  }
 0x4c1   :  { %9724 = vmatpush1.bf16.msra.mxu1 %v13235_v45  ;;  %9631 = vmatprep.subr.bf16.mxu0 %v13240_v28  ;;  %v13309_v45 = vld [vmem:[%s18181_s9 + $0x4a4] ss:$28 sps:$4 sm:$0xff]  }
 0x4c2   :  { %9725 = vmatprep.subr.bf16.mxu1 %v13243_v0  ;;  %v13304_v28 = vld [vmem:[%s18181_s9 + $0xdc8] ss:$28 sps:$4 sm:$0xff]   ;;  %v6145_v0 = vmax.f32 %v16707_v56, 0.0  ;;  %v13313_v56 = vld [vmem:[%s18181_s9 + $0x10] ss:$28 sps:$4 sm:$0xff]  }
 0x4c4   :  { %9632 = vmatpush1.bf16.msra.mxu0 %v13238_v21  ;;  %v13307_v21 = vld [vmem:[%s18181_s9 + $0x4a0] ss:$28 sps:$4 sm:$0xff]  }
 0x4c5   :  { %9726 = vmatpush1.bf16.msra.mxu1 %v13241_v12  ;;  %9633 = vmatprep.subr.bf16.mxu0 %v13246_v10  ;;  %v13315_v12 = vld [vmem:[%s18181_s9 + $0x14] ss:$28 sps:$4 sm:$0xff]   ;;  %v13312_v10 = vld [vmem:[%s18181_s9 + $0x4dc] ss:$28 sps:$4 sm:$0xff]  }
 0x4c6   :  { %9727 = vmatprep.subr.bf16.mxu1 %v13249_v3  ;;  %v17107_v3 = vpack.c.bf16 %v6145_v0, %v6145_v0  ;;  %v13378_v0 = vld [vmem:[%s18181_s9 + $0x744] ss:$28 sps:$4 sm:$0xff]  }
 0x4c8   :  { %9634 = vmatpush1.bf16.msra.mxu0 %v13244_v44  ;;  %v13310_v44 = vld [vmem:[%s18181_s9 + $0x4d8] ss:$28 sps:$4 sm:$0xff]  }
 0x4c9   :  { %9728 = vmatpush1.bf16.msra.mxu1 %v13247_v6  ;;  %9635 = vmatprep.subr.bf16.mxu0 %v13252_v13  ;;  %v13321_v6 = vld [vmem:[%s18181_s9 + $0x4c] ss:$28 sps:$4 sm:$0xff]   ;;  %v13318_v13 = vld [vmem:[%s18181_s9 + $0x514] ss:$28 sps:$4 sm:$0xff]  }
 0x4ca   :  { %9729 = vmatprep.subr.bf16.mxu1 %v13255_v7  ;;  %v13319_v7 = vld [vmem:[%s18181_s9 + $0x48] ss:$28 sps:$4 sm:$0xff]  }
 0x4cc   :  { %9636 = vmatpush1.bf16.msra.mxu0 %v13250_v32  ;;  %v13316_v32 = vld [vmem:[%s18181_s9 + $0x510] ss:$28 sps:$4 sm:$0xff]  }
 0x4cd   :  { %9730 = vmatpush1.bf16.msra.mxu1 %v13253_v33  ;;  %9637 = vmatprep.subr.bf16.mxu0 %v13258_v8  ;;  %v13327_v33 = vld [vmem:[%s18181_s9 + $0x84] ss:$28 sps:$4 sm:$0xff]   ;;  %v13324_v8 = vld [vmem:[%s18181_s9 + $0x54c] ss:$28 sps:$4 sm:$0xff]  }
 0x4ce   :  { %9731 = vmatprep.subr.bf16.mxu1 %v13261_v9  ;;  %v13325_v9 = vld [vmem:[%s18181_s9 + $0x80] ss:$28 sps:$4 sm:$0xff]  }
 0x4d0   :  { %9638 = vmatpush1.bf16.msra.mxu0 %v13256_v17  ;;  %v13322_v17 = vld [vmem:[%s18181_s9 + $0x548] ss:$28 sps:$4 sm:$0xff]  }
 0x4d1   :  { %9732 = vmatpush1.bf16.msra.mxu1 %v13259_v15  ;;  %9639 = vmatprep.subr.bf16.mxu0 %v13264_v23  ;;  %v13333_v15 = vld [vmem:[%s18181_s9 + $0xbc] ss:$28 sps:$4 sm:$0xff]   ;;  %v13330_v23 = vld [vmem:[%s18181_s9 + $0x584] ss:$28 sps:$4 sm:$0xff]  }
 0x4d2   :  { %9733 = vmatprep.subr.bf16.mxu1 %v13267_v22  ;;  %v13331_v22 = vld [vmem:[%s18181_s9 + $0xb8] ss:$28 sps:$4 sm:$0xff]  }
 0x4d4   :  { %9640 = vmatpush1.bf16.msra.mxu0 %v13262_v27  ;;  %v13328_v27 = vld [vmem:[%s18181_s9 + $0x580] ss:$28 sps:$4 sm:$0xff]  }
 0x4d5   :  { %9734 = vmatpush1.bf16.msra.mxu1 %v13265_v26  ;;  %9641 = vmatprep.subr.bf16.mxu0 %v13270_v29  ;;  %v13339_v26 = vld [vmem:[%s18181_s9 + $0xf4] ss:$28 sps:$4 sm:$0xff]   ;;  %v13336_v29 = vld [vmem:[%s18181_s9 + $0x5bc] ss:$28 sps:$4 sm:$0xff]  }
 0x4d6   :  { %9735 = vmatprep.subr.bf16.mxu1 %v13273_v60  ;;  %v13337_v60 = vld [vmem:[%s18181_s9 + $0xf0] ss:$28 sps:$4 sm:$0xff]  }
 0x4d8   :  { %9642 = vmatpush1.bf16.msra.mxu0 %v13268_v34  ;;  %v13334_v34 = vld [vmem:[%s18181_s9 + $0x5b8] ss:$28 sps:$4 sm:$0xff]  }
 0x4d9   :  { %9736 = vmatpush1.bf16.msra.mxu1 %v13271_v36  ;;  %9643 = vmatprep.subr.bf16.mxu0 %v13276_v37  ;;  %v13345_v36 = vld [vmem:[%s18181_s9 + $0x12c] ss:$28 sps:$4 sm:$0xff]   ;;  %v13342_v37 = vld [vmem:[%s18181_s9 + $0x5f4] ss:$28 sps:$4 sm:$0xff]  }
 0x4da   :  { %9746 = vmatprep.subr.bf16.mxu1 %v13279_v41  ;;  %v13343_v41 = vld [vmem:[%s18181_s9 + $0x128] ss:$28 sps:$4 sm:$0xff]  }
 0x4dc   :  { %9738 = vmatmul.mubr.bf16.vlgmr.msra.gmra.mrb[72].mxu1 %v16628_v20  ;;  %9644 = vmatpush1.bf16.msra.mxu0 %v13274_v38  ;;  %v13340_v38 = vld [vmem:[%s18181_s9 + $0x5f0] ss:$28 sps:$4 sm:$0xff]  }
 0x4dd   :  { %9747 = vmatpush1.bf16.msra.mxu1 %v13277_v39  ;;  %9778 = vmatprep.mubr.bf16.mxu1 %v16633_v30  ;;  %v13351_v39 = vld [vmem:[%s18181_s9 + $0x164] ss:$28 sps:$4 sm:$0xff]  }
 0x4de   :  { %9645 = vmatprep.subr.bf16.mxu0 %v13282_v40  ;;  %9748 = vmatprep.subr.bf16.mxu1 %v13285_v62  ;;  %v13348_v40 = vld [vmem:[%s18181_s9 + $0x62c] ss:$28 sps:$4 sm:$0xff]   ;;  %v13349_v62 = vld [vmem:[%s18181_s9 + $0x160] ss:$28 sps:$4 sm:$0xff]  }
 0x4e0   :  { %9646 = vmatpush1.bf16.msra.mxu0 %v13280_v2  ;;  %v13346_v2 = vld [vmem:[%s18181_s9 + $0x628] ss:$28 sps:$4 sm:$0xff]  }
 0x4e1   :  { %9749 = vmatpush1.bf16.msra.mxu1 %v13283_v42  ;;  %9647 = vmatprep.subr.bf16.mxu0 %v13288_v58  ;;  %v13357_v42 = vld [vmem:[%s18181_s9 + $0x19c] ss:$28 sps:$4 sm:$0xff]   ;;  %v13354_v58 = vld [vmem:[%s18181_s9 + $0x664] ss:$28 sps:$4 sm:$0xff]  }
 0x4e2   :  { %9750 = vmatprep.subr.bf16.mxu1 %v13291_v63  ;;  %v13355_v63 = vld [vmem:[%s18181_s9 + $0x198] ss:$28 sps:$4 sm:$0xff]  }
 0x4e4   :  { %9648 = vmatpush1.bf16.msra.mxu0 %v13286_v46  ;;  %v13352_v46 = vld [vmem:[%s18181_s9 + $0x660] ss:$28 sps:$4 sm:$0xff]  }
 0x4e5   :  { %9751 = vmatpush1.bf16.msra.mxu1 %v13289_v14  ;;  %9649 = vmatprep.subr.bf16.mxu0 %v13294_v1  ;;  %v13363_v14 = vld [vmem:[%s18181_s9 + $0x1d4] ss:$28 sps:$4 sm:$0xff]   ;;  %v13360_v1 = vld [vmem:[%s18181_s9 + $0x69c] ss:$28 sps:$4 sm:$0xff]  }
 0x4e6   :  { %9752 = vmatprep.subr.bf16.mxu1 %v13297_v51  ;;  %v13361_v51 = vld [vmem:[%s18181_s9 + $0x1d0] ss:$28 sps:$4 sm:$0xff]  }
 0x4e8   :  { %9650 = vmatpush1.bf16.msra.mxu0 %v13292_v35  ;;  %v13358_v35 = vld [vmem:[%s18181_s9 + $0x698] ss:$28 sps:$4 sm:$0xff]  }
 0x4e9   :  { %9753 = vmatpush1.bf16.msra.mxu1 %v13295_v52  ;;  %9651 = vmatprep.subr.bf16.mxu0 %v13300_v18  ;;  %v13369_v52 = vld [vmem:[%s18181_s9 + $0x20c] ss:$28 sps:$4 sm:$0xff]   ;;  %v13366_v18 = vld [vmem:[%s18181_s9 + $0x6d4] ss:$28 sps:$4 sm:$0xff]  }
 0x4ea   :  { %9754 = vmatprep.subr.bf16.mxu1 %v13303_v55  ;;  %v13367_v55 = vld [vmem:[%s18181_s9 + $0x208] ss:$28 sps:$4 sm:$0xff]  }
 0x4ec   :  { %9652 = vmatpush1.bf16.msra.mxu0 %v13298_v59  ;;  %v13364_v59 = vld [vmem:[%s18181_s9 + $0x6d0] ss:$28 sps:$4 sm:$0xff]  }
 0x4ed   :  { %9755 = vmatpush1.bf16.msra.mxu1 %v13301_v19  ;;  %9653 = vmatprep.subr.bf16.mxu0 %v13306_v61  ;;  %v13375_v19 = vld [vmem:[%s18181_s9 + $0x244] ss:$28 sps:$4 sm:$0xff]   ;;  %v13372_v61 = vld [vmem:[%s18181_s9 + $0x70c] ss:$28 sps:$4 sm:$0xff]  }
 0x4ee   :  { %9756 = vmatprep.subr.bf16.mxu1 %v13309_v45  ;;  %v13373_v45 = vld [vmem:[%s18181_s9 + $0x240] ss:$28 sps:$4 sm:$0xff]  }
 0x4f0   :  { %9654 = vmatpush1.bf16.msra.mxu0 %v13304_v28  ;;  %v13370_v28 = vld [vmem:[%s18181_s9 + $0x708] ss:$28 sps:$4 sm:$0xff]  }
 0x4f1   :  { %9757 = vmatpush1.bf16.msra.mxu1 %v13307_v21  ;;  %9910 = vmatprep.subr.bf16.mxu0 %v13315_v12  ;;  %v13381_v21 = vld [vmem:[%s18181_s9 + $0x27c] ss:$28 sps:$4 sm:$0xff]  }
 0x4f2   :  { %9758 = vmatprep.subr.bf16.mxu1 %v13312_v10  ;;  %v13379_v12 = vld [vmem:[%s18181_s9 + $0x278] ss:$28 sps:$4 sm:$0xff]   ;;  %v13376_v10 = vld [vmem:[%s18181_s9 + $0x740] ss:$28 sps:$4 sm:$0xff]  }
 0x4f3   :  { %9656 = vmatmul.mubr.bf16.vlgmr.msra.gmra.mrb[52].mxu0 %v17107_v3 }
 0x4f4   :  { %9911 = vmatpush1.bf16.msra.mxu0 %v13313_v56  ;;  %9942 = vmatprep.mubr.bf16.mxu0 %v16623_v16  ;;  %v13387_v56 = vld [vmem:[%s18181_s9 + $0x2b4] ss:$28 sps:$4 sm:$0xff]  }
 0x4f5   :  { %9759 = vmatpush1.bf16.msra.mxu1 %v13310_v44  ;;  %9912 = vmatprep.subr.bf16.mxu0 %v13321_v6  ;;  %v13384_v44 = vld [vmem:[%s18181_s9 + $0x77c] ss:$28 sps:$4 sm:$0xff]   ;;  %v13385_v6 = vld [vmem:[%s18181_s9 + $0x2b0] ss:$28 sps:$4 sm:$0xff]  }
 0x4f6   :  { %9760 = vmatprep.subr.bf16.mxu1 %v13318_v13  ;;  %v13382_v13 = vld [vmem:[%s18181_s9 + $0x778] ss:$28 sps:$4 sm:$0xff]  }
 0x4f8   :  { %9913 = vmatpush1.bf16.msra.mxu0 %v13319_v7  ;;  %v13393_v7 = vld [vmem:[%s18181_s9 + $0x2ec] ss:$28 sps:$4 sm:$0xff]  }
 0x4f9   :  { %9761 = vmatpush1.bf16.msra.mxu1 %v13316_v32  ;;  %9914 = vmatprep.subr.bf16.mxu0 %v13327_v33  ;;  %v13390_v32 = vld [vmem:[%s18181_s9 + $0x7b4] ss:$28 sps:$4 sm:$0xff]   ;;  %v13391_v33 = vld [vmem:[%s18181_s9 + $0x2e8] ss:$28 sps:$4 sm:$0xff]  }
 0x4fa   :  { %9762 = vmatprep.subr.bf16.mxu1 %v13324_v8  ;;  %v13388_v8 = vld [vmem:[%s18181_s9 + $0x7b0] ss:$28 sps:$4 sm:$0xff]  }
 0x4fc   :  { %9915 = vmatpush1.bf16.msra.mxu0 %v13325_v9  ;;  %v13399_v9 = vld [vmem:[%s18181_s9 + $0x324] ss:$28 sps:$4 sm:$0xff]  }
 0x4fd   :  { %9763 = vmatpush1.bf16.msra.mxu1 %v13322_v17  ;;  %9916 = vmatprep.subr.bf16.mxu0 %v13333_v15  ;;  %v13396_v17 = vld [vmem:[%s18181_s9 + $0x7ec] ss:$28 sps:$4 sm:$0xff]   ;;  %v13397_v15 = vld [vmem:[%s18181_s9 + $0x320] ss:$28 sps:$4 sm:$0xff]  }
 0x4fe   :  { %9764 = vmatprep.subr.bf16.mxu1 %v13330_v23  ;;  %v13394_v23 = vld [vmem:[%s18181_s9 + $0x7e8] ss:$28 sps:$4 sm:$0xff]  }
 0x500   :  { %9917 = vmatpush1.bf16.msra.mxu0 %v13331_v22  ;;  %v13405_v22 = vld [vmem:[%s18181_s9 + $0x35c] ss:$28 sps:$4 sm:$0xff]  }
 0x501   :  { %9765 = vmatpush1.bf16.msra.mxu1 %v13328_v27  ;;  %9918 = vmatprep.subr.bf16.mxu0 %v13339_v26  ;;  %v13402_v27 = vld [vmem:[%s18181_s9 + $0x824] ss:$28 sps:$4 sm:$0xff]   ;;  %v13403_v26 = vld [vmem:[%s18181_s9 + $0x358] ss:$28 sps:$4 sm:$0xff]  }
 0x502   :  { %9766 = vmatprep.subr.bf16.mxu1 %v13336_v29  ;;  %v13400_v29 = vld [vmem:[%s18181_s9 + $0x820] ss:$28 sps:$4 sm:$0xff]  }
 0x504   :  { %9919 = vmatpush1.bf16.msra.mxu0 %v13337_v60  ;;  %v13411_v60 = vld [vmem:[%s18181_s9 + $0x394] ss:$28 sps:$4 sm:$0xff]  }
 0x505   :  { %9767 = vmatpush1.bf16.msra.mxu1 %v13334_v34  ;;  %9920 = vmatprep.subr.bf16.mxu0 %v13345_v36  ;;  %v13408_v34 = vld [vmem:[%s18181_s9 + $0x85c] ss:$28 sps:$4 sm:$0xff]   ;;  %v13409_v36 = vld [vmem:[%s18181_s9 + $0x390] ss:$28 sps:$4 sm:$0xff]  }
 0x506   :  { %9768 = vmatprep.subr.bf16.mxu1 %v13342_v37  ;;  %v13406_v37 = vld [vmem:[%s18181_s9 + $0x858] ss:$28 sps:$4 sm:$0xff]  }
 0x508   :  { %9921 = vmatpush1.bf16.msra.mxu0 %v13343_v41  ;;  %v13417_v41 = vld [vmem:[%s18181_s9 + $0x3cc] ss:$28 sps:$4 sm:$0xff]  }
 0x509   :  { %9769 = vmatpush1.bf16.msra.mxu1 %v13340_v38  ;;  %9922 = vmatprep.subr.bf16.mxu0 %v13351_v39  ;;  %v13414_v38 = vld [vmem:[%s18181_s9 + $0x894] ss:$28 sps:$4 sm:$0xff]   ;;  %v13415_v39 = vld [vmem:[%s18181_s9 + $0x3c8] ss:$28 sps:$4 sm:$0xff]  }
 0x50a   :  { %9770 = vmatprep.subr.bf16.mxu1 %v13348_v40  ;;  %v13412_v40 = vld [vmem:[%s18181_s9 + $0x890] ss:$28 sps:$4 sm:$0xff]  }
 0x50c   :  { %9923 = vmatpush1.bf16.msra.mxu0 %v13349_v62  ;;  %v13423_v62 = vld [vmem:[%s18181_s9 + $0x404] ss:$28 sps:$4 sm:$0xff]  }
 0x50d   :  { %9771 = vmatpush1.bf16.msra.mxu1 %v13346_v2  ;;  %9924 = vmatprep.subr.bf16.mxu0 %v13357_v42  ;;  %v13420_v2 = vld [vmem:[%s18181_s9 + $0x8cc] ss:$28 sps:$4 sm:$0xff]   ;;  %v13421_v42 = vld [vmem:[%s18181_s9 + $0x400] ss:$28 sps:$4 sm:$0xff]  }
 0x50e   :  { %9772 = vmatprep.subr.bf16.mxu1 %v13354_v58  ;;  %v13418_v58 = vld [vmem:[%s18181_s9 + $0x8c8] ss:$28 sps:$4 sm:$0xff]  }
 0x510   :  { %9925 = vmatpush1.bf16.msra.mxu0 %v13355_v63  ;;  %v13429_v63 = vld [vmem:[%s18181_s9 + $0x43c] ss:$28 sps:$4 sm:$0xff]  }
 0x511   :  { %9773 = vmatpush1.bf16.msra.mxu1 %v13352_v46  ;;  %9926 = vmatprep.subr.bf16.mxu0 %v13363_v14  ;;  %v13426_v46 = vld [vmem:[%s18181_s9 + $0x904] ss:$28 sps:$4 sm:$0xff]   ;;  %v13427_v14 = vld [vmem:[%s18181_s9 + $0x438] ss:$28 sps:$4 sm:$0xff]  }
 0x512   :  { %9774 = vmatprep.subr.bf16.mxu1 %v13360_v1  ;;  %v13424_v1 = vld [vmem:[%s18181_s9 + $0x900] ss:$28 sps:$4 sm:$0xff]  }
 0x514   :  { %9927 = vmatpush1.bf16.msra.mxu0 %v13361_v51  ;;  %v13435_v51 = vld [vmem:[%s18181_s9 + $0x474] ss:$28 sps:$4 sm:$0xff]  }
 0x515   :  { %9775 = vmatpush1.bf16.msra.mxu1 %v13358_v35  ;;  %9928 = vmatprep.subr.bf16.mxu0 %v13369_v52  ;;  %v13432_v35 = vld [vmem:[%s18181_s9 + $0x93c] ss:$28 sps:$4 sm:$0xff]   ;;  %v13433_v52 = vld [vmem:[%s18181_s9 + $0x470] ss:$28 sps:$4 sm:$0xff]  }
 0x516   :  { %9776 = vmatprep.subr.bf16.mxu1 %v13366_v18  ;;  %v13430_v18 = vld [vmem:[%s18181_s9 + $0x938] ss:$28 sps:$4 sm:$0xff]  }
 0x518   :  { %9929 = vmatpush1.bf16.msra.mxu0 %v13367_v55  ;;  %v13441_v55 = vld [vmem:[%s18181_s9 + $0x4ac] ss:$28 sps:$4 sm:$0xff]  }
 0x519   :  { %9777 = vmatpush1.bf16.msra.mxu1 %v13364_v59  ;;  %9930 = vmatprep.subr.bf16.mxu0 %v13375_v19  ;;  %v13438_v59 = vld [vmem:[%s18181_s9 + $0x974] ss:$28 sps:$4 sm:$0xff]   ;;  %v13439_v19 = vld [vmem:[%s18181_s9 + $0x4a8] ss:$28 sps:$4 sm:$0xff]  }
 0x51a   :  { %9787 = vmatprep.subr.bf16.mxu1 %v13372_v61  ;;  %v13436_v61 = vld [vmem:[%s18181_s9 + $0x970] ss:$28 sps:$4 sm:$0xff]  }
 0x51c   :  { %9779 = vmatmul.mubr.bf16.vlgmr.msra.gmra.mrb[72].mxu1 %v16751_v53  ;;  %9931 = vmatpush1.bf16.msra.mxu0 %v13373_v45  ;;  %v13447_v45 = vld [vmem:[%s18181_s9 + $0x4e4] ss:$28 sps:$4 sm:$0xff]  }
 0x51d   :  { %9788 = vmatpush1.bf16.msra.mxu1 %v13370_v28  ;;  %9819 = vmatprep.mubr.bf16.mxu1 %v16756_v50  ;;  %v13444_v28 = vld [vmem:[%s18181_s9 + $0x9ac] ss:$28 sps:$4 sm:$0xff]  }
 0x51e   :  { %9789 = vmatprep.subr.bf16.mxu1 %v13378_v0  ;;  %9932 = vmatprep.subr.bf16.mxu0 %v13381_v21  ;;  %v13445_v0 = vld [vmem:[%s18181_s9 + $0x4e0] ss:$28 sps:$4 sm:$0xff]   ;;  %v13442_v21 = vld [vmem:[%s18181_s9 + $0x9a8] ss:$28 sps:$4 sm:$0xff]  }
 0x520   :  { %9933 = vmatpush1.bf16.msra.mxu0 %v13379_v12  ;;  %v13453_v12 = vld [vmem:[%s18181_s9 + $0x51c] ss:$28 sps:$4 sm:$0xff]  }
 0x521   :  { %9790 = vmatpush1.bf16.msra.mxu1 %v13376_v10  ;;  %9934 = vmatprep.subr.bf16.mxu0 %v13387_v56  ;;  %v13450_v10 = vld [vmem:[%s18181_s9 + $0x9e4] ss:$28 sps:$4 sm:$0xff]   ;;  %v13451_v56 = vld [vmem:[%s18181_s9 + $0x518] ss:$28 sps:$4 sm:$0xff]  }
 0x522   :  { %9791 = vmatprep.subr.bf16.mxu1 %v13384_v44  ;;  %v13448_v44 = vld [vmem:[%s18181_s9 + $0x9e0] ss:$28 sps:$4 sm:$0xff]  }
 0x524   :  { %9935 = vmatpush1.bf16.msra.mxu0 %v13385_v6  ;;  %v13459_v6 = vld [vmem:[%s18181_s9 + $0x554] ss:$28 sps:$4 sm:$0xff]  }
 0x525   :  { %9792 = vmatpush1.bf16.msra.mxu1 %v13382_v13  ;;  %9936 = vmatprep.subr.bf16.mxu0 %v13393_v7  ;;  %v13456_v13 = vld [vmem:[%s18181_s9 + $0xa1c] ss:$28 sps:$4 sm:$0xff]   ;;  %v13457_v7 = vld [vmem:[%s18181_s9 + $0x550] ss:$28 sps:$4 sm:$0xff]  }
 0x526   :  { %9793 = vmatprep.subr.bf16.mxu1 %v13390_v32  ;;  %v13454_v32 = vld [vmem:[%s18181_s9 + $0xa18] ss:$28 sps:$4 sm:$0xff]  }
 0x528   :  { %9937 = vmatpush1.bf16.msra.mxu0 %v13391_v33  ;;  %v13465_v33 = vld [vmem:[%s18181_s9 + $0x58c] ss:$28 sps:$4 sm:$0xff]  }
 0x529   :  { %9794 = vmatpush1.bf16.msra.mxu1 %v13388_v8  ;;  %9938 = vmatprep.subr.bf16.mxu0 %v13399_v9  ;;  %v13462_v8 = vld [vmem:[%s18181_s9 + $0xa54] ss:$28 sps:$4 sm:$0xff]   ;;  %v13463_v9 = vld [vmem:[%s18181_s9 + $0x588] ss:$28 sps:$4 sm:$0xff]  }
 0x52a   :  { %9795 = vmatprep.subr.bf16.mxu1 %v13396_v17  ;;  %v13460_v17 = vld [vmem:[%s18181_s9 + $0xa50] ss:$28 sps:$4 sm:$0xff]  }
 0x52c   :  { %9939 = vmatpush1.bf16.msra.mxu0 %v13397_v15  ;;  %v13471_v15 = vld [vmem:[%s18181_s9 + $0x5c4] ss:$28 sps:$4 sm:$0xff]  }
 0x52d   :  { %9796 = vmatpush1.bf16.msra.mxu1 %v13394_v23  ;;  %9940 = vmatprep.subr.bf16.mxu0 %v13405_v22  ;;  %v13468_v23 = vld [vmem:[%s18181_s9 + $0xa8c] ss:$28 sps:$4 sm:$0xff]   ;;  %v13469_v22 = vld [vmem:[%s18181_s9 + $0x5c0] ss:$28 sps:$4 sm:$0xff]  }
 0x52e   :  { %9797 = vmatprep.subr.bf16.mxu1 %v13402_v27  ;;  %v13466_v27 = vld [vmem:[%s18181_s9 + $0xa88] ss:$28 sps:$4 sm:$0xff]  }
 0x530   :  { %9941 = vmatpush1.bf16.msra.mxu0 %v13403_v26  ;;  %v13474_v26 = vld [vmem:[%s18181_s9 + $0xac4] ss:$28 sps:$4 sm:$0xff]  }
 0x531   :  { %9798 = vmatpush1.bf16.msra.mxu1 %v13400_v29  ;;  %9951 = vmatprep.subr.bf16.mxu0 %v13411_v60  ;;  %v13477_v29 = vld [vmem:[%s18181_s9 + $0x5fc] ss:$28 sps:$4 sm:$0xff]  }
 0x532   :  { %9799 = vmatprep.subr.bf16.mxu1 %v13408_v34  ;;  %v13475_v60 = vld [vmem:[%s18181_s9 + $0x5f8] ss:$28 sps:$4 sm:$0xff]   ;;  %v13472_v34 = vld [vmem:[%s18181_s9 + $0xac0] ss:$28 sps:$4 sm:$0xff]  }
 0x533   :  { %9943 = vmatmul.mubr.bf16.vlgmr.msra.gmra.mrb[56].mxu0 %v16628_v20 }
 0x534   :  { %9952 = vmatpush1.bf16.msra.mxu0 %v13409_v36  ;;  %9983 = vmatprep.mubr.bf16.mxu0 %v16633_v30  ;;  %v13483_v36 = vld [vmem:[%s18181_s9 + $0x634] ss:$28 sps:$4 sm:$0xff]  }
 0x535   :  { %9800 = vmatpush1.bf16.msra.mxu1 %v13406_v37  ;;  %9953 = vmatprep.subr.bf16.mxu0 %v13417_v41  ;;  %v13480_v37 = vld [vmem:[%s18181_s9 + $0xafc] ss:$28 sps:$4 sm:$0xff]   ;;  %v13481_v41 = vld [vmem:[%s18181_s9 + $0x630] ss:$28 sps:$4 sm:$0xff]  }
 0x536   :  { %9801 = vmatprep.subr.bf16.mxu1 %v13414_v38  ;;  %v13478_v38 = vld [vmem:[%s18181_s9 + $0xaf8] ss:$28 sps:$4 sm:$0xff]  }
 0x538   :  { %9954 = vmatpush1.bf16.msra.mxu0 %v13415_v39  ;;  %v13489_v39 = vld [vmem:[%s18181_s9 + $0x66c] ss:$28 sps:$4 sm:$0xff]  }
 0x539   :  { %9802 = vmatpush1.bf16.msra.mxu1 %v13412_v40  ;;  %9955 = vmatprep.subr.bf16.mxu0 %v13423_v62  ;;  %v13486_v40 = vld [vmem:[%s18181_s9 + $0xb34] ss:$28 sps:$4 sm:$0xff]   ;;  %v13487_v62 = vld [vmem:[%s18181_s9 + $0x668] ss:$28 sps:$4 sm:$0xff]  }
 0x53a   :  { %9803 = vmatprep.subr.bf16.mxu1 %v13420_v2  ;;  %v13484_v2 = vld [vmem:[%s18181_s9 + $0xb30] ss:$28 sps:$4 sm:$0xff]  }
 0x53c   :  { %9956 = vmatpush1.bf16.msra.mxu0 %v13421_v42  ;;  %v13495_v42 = vld [vmem:[%s18181_s9 + $0x6a4] ss:$28 sps:$4 sm:$0xff]  }
 0x53d   :  { %9804 = vmatpush1.bf16.msra.mxu1 %v13418_v58  ;;  %9957 = vmatprep.subr.bf16.mxu0 %v13429_v63  ;;  %v13492_v58 = vld [vmem:[%s18181_s9 + $0xb6c] ss:$28 sps:$4 sm:$0xff]   ;;  %v13493_v63 = vld [vmem:[%s18181_s9 + $0x6a0] ss:$28 sps:$4 sm:$0xff]  }
 0x53e   :  { %9805 = vmatprep.subr.bf16.mxu1 %v13426_v46  ;;  %v13490_v46 = vld [vmem:[%s18181_s9 + $0xb68] ss:$28 sps:$4 sm:$0xff]  }
 0x540   :  { %9958 = vmatpush1.bf16.msra.mxu0 %v13427_v14  ;;  %v13501_v14 = vld [vmem:[%s18181_s9 + $0x6dc] ss:$28 sps:$4 sm:$0xff]  }
 0x541   :  { %9806 = vmatpush1.bf16.msra.mxu1 %v13424_v1  ;;  %9959 = vmatprep.subr.bf16.mxu0 %v13435_v51  ;;  %v13498_v1 = vld [vmem:[%s18181_s9 + $0xba4] ss:$28 sps:$4 sm:$0xff]   ;;  %v13499_v51 = vld [vmem:[%s18181_s9 + $0x6d8] ss:$28 sps:$4 sm:$0xff]  }
 0x542   :  { %9807 = vmatprep.subr.bf16.mxu1 %v13432_v35  ;;  %v13496_v35 = vld [vmem:[%s18181_s9 + $0xba0] ss:$28 sps:$4 sm:$0xff]  }
 0x544   :  { %9960 = vmatpush1.bf16.msra.mxu0 %v13433_v52  ;;  %v13507_v52 = vld [vmem:[%s18181_s9 + $0x714] ss:$28 sps:$4 sm:$0xff]  }
 0x545   :  { %9808 = vmatpush1.bf16.msra.mxu1 %v13430_v18  ;;  %9961 = vmatprep.subr.bf16.mxu0 %v13441_v55  ;;  %v13504_v55 = vld [vmem:[%s18181_s9 + $0xbdc] ss:$28 sps:$4 sm:$0xff]  }
 0x546   :  { %9809 = vmatprep.subr.bf16.mxu1 %v13438_v59 }
 0x548   :  { %9962 = vmatpush1.bf16.msra.mxu0 %v13439_v19 }
 0x549   :  { %9810 = vmatpush1.bf16.msra.mxu1 %v13436_v61  ;;  %9963 = vmatprep.subr.bf16.mxu0 %v13447_v45  ;;  %v13505_v61 = vld [vmem:[%s18181_s9 + $0x710] ss:$28 sps:$4 sm:$0xff]  }
 0x54a   :  { %9811 = vmatprep.subr.bf16.mxu1 %v13444_v28  ;;  %v13502_v28 = vld [vmem:[%s18181_s9 + $0xbd8] ss:$28 sps:$4 sm:$0xff]  }
 0x54c   :  { %9964 = vmatpush1.bf16.msra.mxu0 %v13445_v0  ;;  %v13513_v0 = vld [vmem:[%s18181_s9 + $0x74c] ss:$28 sps:$4 sm:$0xff]  }
 0x54d   :  { %9812 = vmatpush1.bf16.msra.mxu1 %v13442_v21  ;;  %9965 = vmatprep.subr.bf16.mxu0 %v13453_v12  ;;  %v13510_v21 = vld [vmem:[%s18181_s9 + $0xc14] ss:$28 sps:$4 sm:$0xff]   ;;  %v13511_v12 = vld [vmem:[%s18181_s9 + $0x748] ss:$28 sps:$4 sm:$0xff]  }
 0x54e   :  { %9813 = vmatprep.subr.bf16.mxu1 %v13450_v10  ;;  %v13508_v10 = vld [vmem:[%s18181_s9 + $0xc10] ss:$28 sps:$4 sm:$0xff]  }
 0x550   :  { %9966 = vmatpush1.bf16.msra.mxu0 %v13451_v56  ;;  %v13519_v56 = vld [vmem:[%s18181_s9 + $0x784] ss:$28 sps:$4 sm:$0xff]  }
 0x551   :  { %9814 = vmatpush1.bf16.msra.mxu1 %v13448_v44  ;;  %9967 = vmatprep.subr.bf16.mxu0 %v13459_v6  ;;  %v13516_v44 = vld [vmem:[%s18181_s9 + $0xc4c] ss:$28 sps:$4 sm:$0xff]   ;;  %v13517_v6 = vld [vmem:[%s18181_s9 + $0x780] ss:$28 sps:$4 sm:$0xff]  }
 0x552   :  { %9815 = vmatprep.subr.bf16.mxu1 %v13456_v13  ;;  %v13514_v13 = vld [vmem:[%s18181_s9 + $0xc48] ss:$28 sps:$4 sm:$0xff]  }
 0x554   :  { %9968 = vmatpush1.bf16.msra.mxu0 %v13457_v7  ;;  %v13525_v7 = vld [vmem:[%s18181_s9 + $0x7bc] ss:$28 sps:$4 sm:$0xff]  }
 0x555   :  { %9816 = vmatpush1.bf16.msra.mxu1 %v13454_v32  ;;  %9969 = vmatprep.subr.bf16.mxu0 %v13465_v33  ;;  %v13522_v32 = vld [vmem:[%s18181_s9 + $0xc84] ss:$28 sps:$4 sm:$0xff]   ;;  %v13523_v33 = vld [vmem:[%s18181_s9 + $0x7b8] ss:$28 sps:$4 sm:$0xff]  }
 0x556   :  { %9817 = vmatprep.subr.bf16.mxu1 %v13462_v8  ;;  %v13520_v8 = vld [vmem:[%s18181_s9 + $0xc80] ss:$28 sps:$4 sm:$0xff]  }
 0x558   :  { %9970 = vmatpush1.bf16.msra.mxu0 %v13463_v9  ;;  %v13531_v9 = vld [vmem:[%s18181_s9 + $0x7f4] ss:$28 sps:$4 sm:$0xff]  }
 0x559   :  { %9818 = vmatpush1.bf16.msra.mxu1 %v13460_v17  ;;  %9971 = vmatprep.subr.bf16.mxu0 %v13471_v15  ;;  %v13528_v17 = vld [vmem:[%s18181_s9 + $0xcbc] ss:$28 sps:$4 sm:$0xff]   ;;  %v13529_v15 = vld [vmem:[%s18181_s9 + $0x7f0] ss:$28 sps:$4 sm:$0xff]  }
 0x55a   :  { %9828 = vmatprep.subr.bf16.mxu1 %v13468_v23  ;;  %v13526_v23 = vld [vmem:[%s18181_s9 + $0xcb8] ss:$28 sps:$4 sm:$0xff]  }
 0x55c   :  { %9820 = vmatmul.mubr.bf16.vlgmr.msra.gmra.mrb[72].mxu1 %v16906_v43  ;;  %9972 = vmatpush1.bf16.msra.mxu0 %v13469_v22  ;;  %v13537_v22 = vld [vmem:[%s18181_s9 + $0x82c] ss:$28 sps:$4 sm:$0xff]  }
 0x55d   :  { %9829 = vmatpush1.bf16.msra.mxu1 %v13466_v27  ;;  %9860 = vmatprep.mubr.bf16.mxu1 %v16914_v49  ;;  %v13534_v27 = vld [vmem:[%s18181_s9 + $0xcf4] ss:$28 sps:$4 sm:$0xff]  }
 0x55e   :  { %9830 = vmatprep.subr.bf16.mxu1 %v13474_v26  ;;  %9973 = vmatprep.subr.bf16.mxu0 %v13477_v29  ;;  %v13535_v26 = vld [vmem:[%s18181_s9 + $0x828] ss:$28 sps:$4 sm:$0xff]   ;;  %v13532_v29 = vld [vmem:[%s18181_s9 + $0xcf0] ss:$28 sps:$4 sm:$0xff]  }
 0x560   :  { %9974 = vmatpush1.bf16.msra.mxu0 %v13475_v60  ;;  %v13543_v60 = vld [vmem:[%s18181_s9 + $0x864] ss:$28 sps:$4 sm:$0xff]  }
 0x561   :  { %9831 = vmatpush1.bf16.msra.mxu1 %v13472_v34  ;;  %9975 = vmatprep.subr.bf16.mxu0 %v13483_v36  ;;  %v13540_v34 = vld [vmem:[%s18181_s9 + $0xd2c] ss:$28 sps:$4 sm:$0xff]   ;;  %v13541_v36 = vld [vmem:[%s18181_s9 + $0x860] ss:$28 sps:$4 sm:$0xff]  }
 0x562   :  { %9832 = vmatprep.subr.bf16.mxu1 %v13480_v37  ;;  %v13538_v37 = vld [vmem:[%s18181_s9 + $0xd28] ss:$28 sps:$4 sm:$0xff]  }
 0x564   :  { %9976 = vmatpush1.bf16.msra.mxu0 %v13481_v41  ;;  %v13549_v41 = vld [vmem:[%s18181_s9 + $0x89c] ss:$28 sps:$4 sm:$0xff]  }
 0x565   :  { %9833 = vmatpush1.bf16.msra.mxu1 %v13478_v38  ;;  %9977 = vmatprep.subr.bf16.mxu0 %v13489_v39  ;;  %v13546_v38 = vld [vmem:[%s18181_s9 + $0xd64] ss:$28 sps:$4 sm:$0xff]   ;;  %v13547_v39 = vld [vmem:[%s18181_s9 + $0x898] ss:$28 sps:$4 sm:$0xff]  }
 0x566   :  { %9834 = vmatprep.subr.bf16.mxu1 %v13486_v40  ;;  %v13544_v40 = vld [vmem:[%s18181_s9 + $0xd60] ss:$28 sps:$4 sm:$0xff]  }
 0x568   :  { %9978 = vmatpush1.bf16.msra.mxu0 %v13487_v62  ;;  %v13555_v62 = vld [vmem:[%s18181_s9 + $0x8d4] ss:$28 sps:$4 sm:$0xff]  }
 0x569   :  { %9835 = vmatpush1.bf16.msra.mxu1 %v13484_v2  ;;  %9979 = vmatprep.subr.bf16.mxu0 %v13495_v42  ;;  %v13552_v2 = vld [vmem:[%s18181_s9 + $0xd9c] ss:$28 sps:$4 sm:$0xff]   ;;  %v13553_v42 = vld [vmem:[%s18181_s9 + $0x8d0] ss:$28 sps:$4 sm:$0xff]  }
 0x56a   :  { %9836 = vmatprep.subr.bf16.mxu1 %v13492_v58  ;;  %v13550_v58 = vld [vmem:[%s18181_s9 + $0xd98] ss:$28 sps:$4 sm:$0xff]  }
 0x56c   :  { %9980 = vmatpush1.bf16.msra.mxu0 %v13493_v63  ;;  %v13561_v63 = vld [vmem:[%s18181_s9 + $0x90c] ss:$28 sps:$4 sm:$0xff]  }
 0x56d   :  { %9837 = vmatpush1.bf16.msra.mxu1 %v13490_v46  ;;  %9981 = vmatprep.subr.bf16.mxu0 %v13501_v14  ;;  %v13558_v46 = vld [vmem:[%s18181_s9 + $0xdd4] ss:$28 sps:$4 sm:$0xff]   ;;  %v13559_v14 = vld [vmem:[%s18181_s9 + $0x908] ss:$28 sps:$4 sm:$0xff]  }
 0x56e   :  { %v17495_v18 = vpop.f32.mrb[68].mxu1  ;;  %9838 = vmatprep.subr.bf16.mxu1 %v13498_v1  ;;  %v13556_v1 = vld [vmem:[%s18181_s9 + $0xdd0] ss:$28 sps:$4 sm:$0xff]  }
 0x56f   :  { %v17500_v59 = vpop.f32.mrb[69].mxu1 }
 0x570   :  { %9982 = vmatpush1.bf16.msra.mxu0 %v13499_v51  ;;  %v9702_v19 = vpop.f32.mrb[70].mxu1  ;;  %v13567_v51 = vld [vmem:[%s18181_s9 + $0x944] ss:$28 sps:$4 sm:$0xff]  }
 0x571   :  { %9839 = vmatpush1.bf16.msra.mxu1 %v13496_v35  ;;  %v9703_v45 = vpop.f32.mrb[71].mxu1  ;;  %9992 = vmatprep.subr.bf16.mxu0 %v13507_v52  ;;  %v13564_v35 = vld [vmem:[%s18181_s9 + $0xe0c] ss:$28 sps:$4 sm:$0xff]   ;;  %v13565_v52 = vld [vmem:[%s18181_s9 + $0x940] ss:$28 sps:$4 sm:$0xff]  }
 0x572   :  { %9840 = vmatprep.subr.bf16.mxu1 %v13504_v55  ;;  %v13562_v55 = vld [vmem:[%s18181_s9 + $0xe08] ss:$28 sps:$4 sm:$0xff]   ;;  %v13571_v45 = vld [vmem:[%s18181_s9 + $0x978] ss:$28 sps:$4 sm:$0xff]  }
 0x573   :  { %9984 = vmatmul.mubr.bf16.vlgmr.msra.gmra.mrb[56].mxu0 %v16751_v53  ;;  %v13570_v19 = vld [vmem:[%s18181_s9 + $0xe44] ss:$28 sps:$4 sm:$0xff]  }
 0x574   :  { %9993 = vmatpush1.bf16.msra.mxu0 %v13505_v61  ;;  %10024 = vmatprep.mubr.bf16.mxu0 %v16756_v50  ;;  %v13573_v61 = vld [vmem:[%s18181_s9 + $0x97c] ss:$28 sps:$4 sm:$0xff]  }
 0x575   :  { %9841 = vmatpush1.bf16.msra.mxu1 %v13502_v28  ;;  %9994 = vmatprep.subr.bf16.mxu0 %v13513_v0  ;;  %v13568_v28 = vld [vmem:[%s18181_s9 + $0xe40] ss:$28 sps:$4 sm:$0xff]   ;;  %v13579_v0 = vld [vmem:[%s18181_s9 + $0x9b4] ss:$28 sps:$4 sm:$0xff]  }
 0x576   :  { %9842 = vmatprep.subr.bf16.mxu1 %v13510_v21  ;;  %v13576_v21 = vld [vmem:[%s18181_s9 + $0xe7c] ss:$28 sps:$4 sm:$0xff]  }
 0x578   :  { %9995 = vmatpush1.bf16.msra.mxu0 %v13511_v12  ;;  %v13577_v12 = vld [vmem:[%s18181_s9 + $0x9b0] ss:$28 sps:$4 sm:$0xff]  }
 0x579   :  { %9843 = vmatpush1.bf16.msra.mxu1 %v13508_v10  ;;  %9996 = vmatprep.subr.bf16.mxu0 %v13519_v56  ;;  %v13574_v10 = vld [vmem:[%s18181_s9 + $0xe78] ss:$28 sps:$4 sm:$0xff]   ;;  %v13585_v56 = vld [vmem:[%s18181_s9 + $0x9ec] ss:$28 sps:$4 sm:$0xff]  }
 0x57a   :  { %9844 = vmatprep.subr.bf16.mxu1 %v13516_v44  ;;  %v13582_v44 = vld [vmem:[%s18181_s9 + $0xeb4] ss:$28 sps:$4 sm:$0xff]  }
 0x57c   :  { %9997 = vmatpush1.bf16.msra.mxu0 %v13517_v6  ;;  %v13583_v6 = vld [vmem:[%s18181_s9 + $0x9e8] ss:$28 sps:$4 sm:$0xff]  }
 0x57d   :  { %9845 = vmatpush1.bf16.msra.mxu1 %v13514_v13  ;;  %9998 = vmatprep.subr.bf16.mxu0 %v13525_v7  ;;  %v13580_v13 = vld [vmem:[%s18181_s9 + $0xeb0] ss:$28 sps:$4 sm:$0xff]   ;;  %v13591_v7 = vld [vmem:[%s18181_s9 + $0xa24] ss:$28 sps:$4 sm:$0xff]  }
 0x57e   :  { %9846 = vmatprep.subr.bf16.mxu1 %v13522_v32  ;;  %v13588_v32 = vld [vmem:[%s18181_s9 + $0xeec] ss:$28 sps:$4 sm:$0xff]  }
 0x580   :  { %9999 = vmatpush1.bf16.msra.mxu0 %v13523_v33  ;;  %v13589_v33 = vld [vmem:[%s18181_s9 + $0xa20] ss:$28 sps:$4 sm:$0xff]  }
 0x581   :  { %9847 = vmatpush1.bf16.msra.mxu1 %v13520_v8  ;;  %10000 = vmatprep.subr.bf16.mxu0 %v13531_v9  ;;  %v13586_v8 = vld [vmem:[%s18181_s9 + $0xee8] ss:$28 sps:$4 sm:$0xff]   ;;  %v13597_v9 = vld [vmem:[%s18181_s9 + $0xa5c] ss:$28 sps:$4 sm:$0xff]  }
 0x582   :  { %9848 = vmatprep.subr.bf16.mxu1 %v13528_v17  ;;  %v13594_v17 = vld [vmem:[%s18181_s9 + $0xf24] ss:$28 sps:$4 sm:$0xff]  }
 0x584   :  { %10001 = vmatpush1.bf16.msra.mxu0 %v13529_v15  ;;  %v13595_v15 = vld [vmem:[%s18181_s9 + $0xa58] ss:$28 sps:$4 sm:$0xff]  }
 0x585   :  { %9849 = vmatpush1.bf16.msra.mxu1 %v13526_v23  ;;  %10002 = vmatprep.subr.bf16.mxu0 %v13537_v22  ;;  %v13592_v23 = vld [vmem:[%s18181_s9 + $0xf20] ss:$28 sps:$4 sm:$0xff]   ;;  %v13603_v22 = vld [vmem:[%s18181_s9 + $0xa94] ss:$28 sps:$4 sm:$0xff]  }
 0x586   :  { %9850 = vmatprep.subr.bf16.mxu1 %v13534_v27  ;;  %v13600_v27 = vld [vmem:[%s18181_s9 + $0xf5c] ss:$28 sps:$4 sm:$0xff]  }
 0x588   :  { %10003 = vmatpush1.bf16.msra.mxu0 %v13535_v26  ;;  %v13601_v26 = vld [vmem:[%s18181_s9 + $0xa90] ss:$28 sps:$4 sm:$0xff]  }
 0x589   :  { %9851 = vmatpush1.bf16.msra.mxu1 %v13532_v29  ;;  %10004 = vmatprep.subr.bf16.mxu0 %v13543_v60  ;;  %v13598_v29 = vld [vmem:[%s18181_s9 + $0xf58] ss:$28 sps:$4 sm:$0xff]   ;;  %v13609_v60 = vld [vmem:[%s18181_s9 + $0xacc] ss:$28 sps:$4 sm:$0xff]  }
 0x58a   :  { %9852 = vmatprep.subr.bf16.mxu1 %v13540_v34  ;;  %v13606_v34 = vld [vmem:[%s18181_s9 + $0xf94] ss:$28 sps:$4 sm:$0xff]  }
 0x58c   :  { %10005 = vmatpush1.bf16.msra.mxu0 %v13541_v36  ;;  %v13607_v36 = vld [vmem:[%s18181_s9 + $0xac8] ss:$28 sps:$4 sm:$0xff]  }
 0x58d   :  { %9853 = vmatpush1.bf16.msra.mxu1 %v13538_v37  ;;  %10006 = vmatprep.subr.bf16.mxu0 %v13549_v41  ;;  %v13604_v37 = vld [vmem:[%s18181_s9 + $0xf90] ss:$28 sps:$4 sm:$0xff]   ;;  %v13615_v41 = vld [vmem:[%s18181_s9 + $0xb04] ss:$28 sps:$4 sm:$0xff]  }
 0x58e   :  { %9854 = vmatprep.subr.bf16.mxu1 %v13546_v38  ;;  %v13612_v38 = vld [vmem:[%s18181_s9 + $0xfcc] ss:$28 sps:$4 sm:$0xff]  }
 0x590   :  { %10007 = vmatpush1.bf16.msra.mxu0 %v13547_v39  ;;  %v13613_v39 = vld [vmem:[%s18181_s9 + $0xb00] ss:$28 sps:$4 sm:$0xff]  }
 0x591   :  { %9855 = vmatpush1.bf16.msra.mxu1 %v13544_v40  ;;  %10008 = vmatprep.subr.bf16.mxu0 %v13555_v62  ;;  %v13610_v40 = vld [vmem:[%s18181_s9 + $0xfc8] ss:$28 sps:$4 sm:$0xff]   ;;  %v13621_v62 = vld [vmem:[%s18181_s9 + $0xb3c] ss:$28 sps:$4 sm:$0xff]  }
 0x592   :  { %9856 = vmatprep.subr.bf16.mxu1 %v13552_v2  ;;  %v13618_v2 = vld [vmem:[%s18181_s9 + $0x1004] ss:$28 sps:$4 sm:$0xff]  }
 0x594   :  { %10009 = vmatpush1.bf16.msra.mxu0 %v13553_v42  ;;  %v13619_v42 = vld [vmem:[%s18181_s9 + $0xb38] ss:$28 sps:$4 sm:$0xff]  }
 0x595   :  { %9857 = vmatpush1.bf16.msra.mxu1 %v13550_v58  ;;  %10010 = vmatprep.subr.bf16.mxu0 %v13561_v63  ;;  %v13616_v58 = vld [vmem:[%s18181_s9 + $0x1000] ss:$28 sps:$4 sm:$0xff]   ;;  %v13627_v63 = vld [vmem:[%s18181_s9 + $0xb74] ss:$28 sps:$4 sm:$0xff]  }
 0x596   :  { %9858 = vmatprep.subr.bf16.mxu1 %v13558_v46  ;;  %v13624_v46 = vld [vmem:[%s18181_s9 + $0x103c] ss:$28 sps:$4 sm:$0xff]  }
 0x598   :  { %10011 = vmatpush1.bf16.msra.mxu0 %v13559_v14  ;;  %v13625_v14 = vld [vmem:[%s18181_s9 + $0xb70] ss:$28 sps:$4 sm:$0xff]  }
 0x599   :  { %9859 = vmatpush1.bf16.msra.mxu1 %v13556_v1  ;;  %10012 = vmatprep.subr.bf16.mxu0 %v13567_v51  ;;  %v17755_v1 = vld [vmem:[%s18182_s10] sm:$0x7f]  ;;  %v13622_v51 = vld [vmem:[%s18181_s9 + $0x1038] ss:$28 sps:$4 sm:$0xff]  }
 0x59a   :  { %9869 = vmatprep.subr.bf16.mxu1 %v13564_v35  ;;  %v13630_v35 = vld [vmem:[%s18181_s9 + $0xbac] ss:$28 sps:$4 sm:$0xff]  }
 0x59c   :  { %9861 = vmatmul.mubr.bf16.vlgmr.msra.gmra.mrb[72].mxu1 %v17107_v3  ;;  %10013 = vmatpush1.bf16.msra.mxu0 %v13565_v52  ;;  %v13631_v52 = vld [vmem:[%s18181_s9 + $0x1d8] ss:$28 sps:$4 sm:$0xff]  }
 0x59d   :  { %9870 = vmatpush1.bf16.msra.mxu1 %v13562_v55  ;;  %11717 = vmatprep.mubr.msk.bf16.mxu1 %vm9496_vm7, %v16821_v4  ;;  %v6764_v55 = vrot.slane %v17755_v1, %v14181_v47  ;;  %v13635_v47 = vld [vmem:[%s18181_s9 + $0xbe4] ss:$28 sps:$4 sm:$0xff]  }
 0x59e   :  { %9871 = vmatprep.subr.bf16.mxu1 %v13570_v19  ;;  %10014 = vmatprep.subr.bf16.mxu0 %v13573_v61  ;;  %v6768_v19 = vrot.slane %v17755_v1, %v14184_v48  ;;  %v13628_v61 = vld [vmem:[%s18181_s9 + $0xba8] ss:$28 sps:$4 sm:$0xff]   ;;  %v13636_v48 = vld [vmem:[%s18181_s9 + $0x210] ss:$28 sps:$4 sm:$0xff]  }
 0x5a0   :  { %10015 = vmatpush1.bf16.msra.mxu0 %v13571_v45  ;;  %v13632_v45 = vld [vmem:[%s18181_s9 + $0x18] ss:$28 sps:$4 sm:$0xff]  }
 0x5a1   :  { %9872 = vmatpush1.bf16.msra.mxu1 %v13568_v28  ;;  %10016 = vmatprep.subr.bf16.mxu0 %v13579_v0 }
 0x5a2   :  { %9873 = vmatprep.subr.bf16.mxu1 %v13576_v21 }
 0x5a4   :  { %10017 = vmatpush1.bf16.msra.mxu0 %v13577_v12 }
 0x5a5   :  { %9874 = vmatpush1.bf16.msra.mxu1 %v13574_v10  ;;  %10018 = vmatprep.subr.bf16.mxu0 %v13585_v56  ;;  %v13633_v56 = vld [vmem:[%s18181_s9 + $0xbe0] ss:$28 sps:$4 sm:$0xff]  }
 0x5a6   :  { %9875 = vmatprep.subr.bf16.mxu1 %v13582_v44 }
 0x5a8   :  { %10019 = vmatpush1.bf16.msra.mxu0 %v13583_v6 }
 0x5a9   :  { %9876 = vmatpush1.bf16.msra.mxu1 %v13580_v13  ;;  %10020 = vmatprep.subr.bf16.mxu0 %v13591_v7  ;;  %v13637_v13 = vld [vmem:[%s18181_s9 + $0x50] ss:$28 sps:$4 sm:$0xff]   ;;  %v13640_v7 = vld [vmem:[%s18181_s9 + $0xc1c] ss:$28 sps:$4 sm:$0xff]  }
 0x5aa   :  { %9877 = vmatprep.subr.bf16.mxu1 %v13588_v32 }
 0x5ac   :  { %10021 = vmatpush1.bf16.msra.mxu0 %v13589_v33 }
 0x5ad   :  { %9878 = vmatpush1.bf16.msra.mxu1 %v13586_v8  ;;  %10022 = vmatprep.subr.bf16.mxu0 %v13597_v9  ;;  %v13645_v9 = vld [vmem:[%s18181_s9 + $0xc54] ss:$28 sps:$4 sm:$0xff]  }
 0x5ae   :  { %9879 = vmatprep.subr.bf16.mxu1 %v13594_v17  ;;  %v13646_v17 = vld [vmem:[%s18181_s9 + $0x280] ss:$28 sps:$4 sm:$0xff]  }
 0x5b0   :  { %10023 = vmatpush1.bf16.msra.mxu0 %v13595_v15  ;;  %v13643_v15 = vld [vmem:[%s18181_s9 + $0xc50] ss:$28 sps:$4 sm:$0xff]  }
 0x5b1   :  { %9880 = vmatpush1.bf16.msra.mxu1 %v13592_v23  ;;  %10033 = vmatprep.subr.bf16.mxu0 %v13603_v22  ;;  %v13647_v23 = vld [vmem:[%s18181_s9 + $0xc0] ss:$28 sps:$4 sm:$0xff]   ;;  %v13650_v22 = vld [vmem:[%s18181_s9 + $0xc8c] ss:$28 sps:$4 sm:$0xff]  }
 0x5b2   :  { %9881 = vmatprep.subr.bf16.mxu1 %v13600_v27  ;;  %v13651_v27 = vld [vmem:[%s18181_s9 + $0x2b8] ss:$28 sps:$4 sm:$0xff]  }
 0x5b3   :  { %10025 = vmatmul.mubr.bf16.vlgmr.msra.gmra.mrb[56].mxu0 %v16906_v43 }
 0x5b4   :  { %10034 = vmatpush1.bf16.msra.mxu0 %v13601_v26  ;;  %10065 = vmatprep.mubr.bf16.mxu0 %v16914_v49  ;;  %v13648_v26 = vld [vmem:[%s18181_s9 + $0xc88] ss:$28 sps:$4 sm:$0xff]  }
 0x5b5   :  { %9882 = vmatpush1.bf16.msra.mxu1 %v13598_v29  ;;  %10035 = vmatprep.subr.bf16.mxu0 %v13609_v60  ;;  %v13652_v29 = vld [vmem:[%s18181_s9 + $0xf8] ss:$28 sps:$4 sm:$0xff]   ;;  %v13655_v60 = vld [vmem:[%s18181_s9 + $0xcc4] ss:$28 sps:$4 sm:$0xff]  }
 0x5b6   :  { %9883 = vmatprep.subr.bf16.mxu1 %v13606_v34  ;;  %v13656_v34 = vld [vmem:[%s18181_s9 + $0x2f0] ss:$28 sps:$4 sm:$0xff]  }
 0x5b8   :  { %10036 = vmatpush1.bf16.msra.mxu0 %v13607_v36 }
 0x5b9   :  { %9884 = vmatpush1.bf16.msra.mxu1 %v13604_v37  ;;  %10037 = vmatprep.subr.bf16.mxu0 %v13615_v41 }
 0x5ba   :  { %9885 = vmatprep.subr.bf16.mxu1 %v13612_v38  ;;  %v13653_v38 = vld [vmem:[%s18181_s9 + $0xcc0] ss:$28 sps:$4 sm:$0xff]  }
 0x5bc   :  { %10038 = vmatpush1.bf16.msra.mxu0 %v13613_v39 }
 0x5bd   :  { %9886 = vmatpush1.bf16.msra.mxu1 %v13610_v40  ;;  %10039 = vmatprep.subr.bf16.mxu0 %v13621_v62  ;;  %v13657_v40 = vld [vmem:[%s18181_s9 + $0x130] ss:$28 sps:$4 sm:$0xff]   ;;  %v13660_v62 = vld [vmem:[%s18181_s9 + $0xcfc] ss:$28 sps:$4 sm:$0xff]  }
 0x5be   :  { %9887 = vmatprep.subr.bf16.mxu1 %v13618_v2  ;;  %v13661_v2 = vld [vmem:[%s18181_s9 + $0x328] ss:$28 sps:$4 sm:$0xff]  }
 0x5c0   :  { %10040 = vmatpush1.bf16.msra.mxu0 %v13619_v42  ;;  %v13658_v42 = vld [vmem:[%s18181_s9 + $0xcf8] ss:$28 sps:$4 sm:$0xff]  }
 0x5c1   :  { %9888 = vmatpush1.bf16.msra.mxu1 %v13616_v58  ;;  %10041 = vmatprep.subr.bf16.mxu0 %v13627_v63  ;;  %v13662_v58 = vld [vmem:[%s18181_s9 + $0x168] ss:$28 sps:$4 sm:$0xff]   ;;  %v13665_v63 = vld [vmem:[%s18181_s9 + $0xd34] ss:$28 sps:$4 sm:$0xff]  }
 0x5c2   :  { %9889 = vmatprep.subr.bf16.mxu1 %v13624_v46  ;;  %v13666_v46 = vld [vmem:[%s18181_s9 + $0x360] ss:$28 sps:$4 sm:$0xff]  }
 0x5c4   :  { %10042 = vmatpush1.bf16.msra.mxu0 %v13625_v14  ;;  %v13663_v14 = vld [vmem:[%s18181_s9 + $0xd30] ss:$28 sps:$4 sm:$0xff]  }
 0x5c5   :  { %9890 = vmatpush1.bf16.msra.mxu1 %v13622_v51  ;;  %10043 = vmatprep.subr.bf16.mxu0 %v13630_v35  ;;  %v13667_v51 = vld [vmem:[%s18181_s9 + $0x1a0] ss:$28 sps:$4 sm:$0xff]   ;;  %v13670_v35 = vld [vmem:[%s18181_s9 + $0xd6c] ss:$28 sps:$4 sm:$0xff]  }
 0x5c6   :  { %v9657_v28 = vpop.f32.mrb[52].mxu0  ;;  %11727 = vmatprep.subr.bf16.mxu1 %v13631_v52  ;;  %v13671_v52 = vld [vmem:[%s18181_s9 + $0x558] ss:$28 sps:$4 sm:$0xff]  }
 0x5c7   :  { %v11815_v0 = vadd.f32 %v9657_v28, %v6764_v55  ;;  %v9659_v21 = vpop.f32.mrb[53].mxu0  ;;  %v13675_v28 = vld [vmem:[%s18181_s9 + $0xda4] ss:$28 sps:$4 sm:$0xff]  }
 0x5c8   :  { %v11817_v12 = vadd.f32 %v9659_v21, %v6768_v19  ;;  %9902 = vmatmul.mubr.bf16.vlgmr.msra.gmra.mrb[72].mxu1 %v16829_v24  ;;  %v9661_v10 = vpop.f32.mrb[54].mxu0  ;;  %10044 = vmatpush1.bf16.msra.mxu0 %v13628_v61  ;;  %v13668_v19 = vld [vmem:[%s18181_s9 + $0xd68] ss:$28 sps:$4 sm:$0xff]   ;;  %v13680_v21 = vld [vmem:[%s18181_s9 + $0xddc] ss:$28 sps:$4 sm:$0xff]  }
 0x5c9   :  { %v11816_v44 = vadd.f32 %v11815_v0, %v17495_v18  ;;  %11728 = vmatpush3.bf16.msra.mxu1 %v13632_v45  ;;  %10147 = vmatprep.mubr.bf16.mxu1 %v16623_v16  ;;  %v9662_v6 = vpop.f32.mrb[55].mxu0  ;;  %v13641_v18 = vld [vmem:[%s18181_s9 + $0x248] ss:$28 sps:$4 sm:$0xff]   ;;  %v13638_v16 = vld [vmem:[%s18181_s9 + $0xc18] ss:$28 sps:$4 sm:$0xff]  }
 0x5ca   :  { %v11818_v32 = vadd.f32 %v11817_v12, %v17500_v59  ;;  %10045 = vmatprep.subr.bf16.mxu0 %v13635_v47  ;;  %11729 = vmatprep.subr.bf16.mxu1 %v13636_v48  ;;  %v13642_v59 = vld [vmem:[%s18181_s9 + $0x88] ss:$28 sps:$4 sm:$0xff]   ;;  %v13672_v45 = vld [vmem:[%s18181_s9 + $0x398] ss:$28 sps:$4 sm:$0xff]   ;;  %v13676_v47 = vld [vmem:[%s18181_s9 + $0x590] ss:$28 sps:$4 sm:$0xff]  }
 0x5cb   :  { %v11720_v33 = vmul.f32 -1.442695, %v11816_v44  ;;  %v13673_v48 = vld [vmem:[%s18181_s9 + $0xda0] ss:$28 sps:$4 sm:$0xff]   ;;  %v13677_v0 = vld [vmem:[%s18181_s9 + $0x3d0] ss:$28 sps:$4 sm:$0xff]  }
 0x5cc   :  { %v11721_v8 = vmul.f32 -1.442695, %v11818_v32  ;;  %10046 = vmatpush1.bf16.msra.mxu0 %v13633_v56  ;;  %v13678_v12 = vld [vmem:[%s18181_s9 + $0xdd8] ss:$28 sps:$4 sm:$0xff]   ;;  %v13686_v56 = vld [vmem:[%s18181_s9 + $0x600] ss:$28 sps:$4 sm:$0xff]  }
 0x5cd   :  { %13769 = vpow2.f32 %v11720_v33  ;;  %11730 = vmatpush3.bf16.msra.mxu1 %v13637_v13  ;;  %10047 = vmatprep.subr.bf16.mxu0 %v13640_v7  ;;  %v13685_v10 = vld [vmem:[%s18181_s9 + $0xe14] ss:$28 sps:$4 sm:$0xff]   ;;  %v13687_v6 = vld [vmem:[%s18181_s9 + $0x440] ss:$28 sps:$4 sm:$0xff]   ;;  %v13690_v13 = vld [vmem:[%s18181_s9 + $0xe4c] ss:$28 sps:$4 sm:$0xff]  }
 0x5ce   :  { %13771 = vpow2.f32 %v11721_v8  ;;  %11731 = vmatprep.subr.bf16.mxu1 %v13641_v18  ;;  %v13683_v44 = vld [vmem:[%s18181_s9 + $0xe10] ss:$28 sps:$4 sm:$0xff]   ;;  %v13691_v7 = vld [vmem:[%s18181_s9 + $0x638] ss:$28 sps:$4 sm:$0xff]   ;;  %v13688_v32 = vld [vmem:[%s18181_s9 + $0xe48] ss:$28 sps:$4 sm:$0xff]  }
 0x5cf   :  { %v13692_v18 = vld [vmem:[%s18181_s9 + $0x478] ss:$28 sps:$4 sm:$0xff]   ;;  %v13695_v33 = vld [vmem:[%s18181_s9 + $0xe84] ss:$28 sps:$4 sm:$0xff]   ;;  %v13696_v8 = vld [vmem:[%s18181_s9 + $0x670] ss:$28 sps:$4 sm:$0xff]  }
 0x5d0   :  { %10048 = vmatpush1.bf16.msra.mxu0 %v13638_v16  ;;  %v13693_v16 = vld [vmem:[%s18181_s9 + $0xe80] ss:$28 sps:$4 sm:$0xff]  }
 0x5d1   :  { %11732 = vmatpush3.bf16.msra.mxu1 %v13642_v59  ;;  %10049 = vmatprep.subr.bf16.mxu0 %v13645_v9  ;;  %v13697_v59 = vld [vmem:[%s18181_s9 + $0x4b0] ss:$28 sps:$4 sm:$0xff]   ;;  %v13700_v9 = vld [vmem:[%s18181_s9 + $0xebc] ss:$28 sps:$4 sm:$0xff]  }
 0x5d2   :  { %11733 = vmatprep.subr.bf16.mxu1 %v13646_v17  ;;  %v13701_v17 = vld [vmem:[%s18181_s9 + $0x6a8] ss:$28 sps:$4 sm:$0xff]  }
 0x5d4   :  { %10050 = vmatpush1.bf16.msra.mxu0 %v13643_v15  ;;  %v13698_v15 = vld [vmem:[%s18181_s9 + $0xeb8] ss:$28 sps:$4 sm:$0xff]  }
 0x5d5   :  { %11734 = vmatpush3.bf16.msra.mxu1 %v13647_v23  ;;  %10051 = vmatprep.subr.bf16.mxu0 %v13650_v22  ;;  %v13702_v23 = vld [vmem:[%s18181_s9 + $0x4e8] ss:$28 sps:$4 sm:$0xff]   ;;  %v13705_v22 = vld [vmem:[%s18181_s9 + $0xef4] ss:$28 sps:$4 sm:$0xff]  }
 0x5d6   :  { %11735 = vmatprep.subr.bf16.mxu1 %v13651_v27  ;;  %v13706_v27 = vld [vmem:[%s18181_s9 + $0x6e0] ss:$28 sps:$4 sm:$0xff]  }
 0x5d7   :  { %v13770_v36 = vpop.eup %13769 }
 0x5d8   :  { %v13772_v37 = vpop.eup %13771  ;;  %v10336_v41 = vadd.f32 1.0, %v13770_v36  ;;  %10052 = vmatpush1.bf16.msra.mxu0 %v13648_v26  ;;  %v13703_v26 = vld [vmem:[%s18181_s9 + $0xef0] ss:$28 sps:$4 sm:$0xff]   ;;  %v13708_v36 = vld [vmem:[%s18181_s9 + $0xf28] ss:$28 sps:$4 sm:$0xff]  }
 0x5d9   :  { %v10337_v39 = vadd.f32 1.0, %v13772_v37  ;;  %11736 = vmatpush3.bf16.msra.mxu1 %v13652_v29  ;;  %10053 = vmatprep.subr.bf16.mxu0 %v13655_v60  ;;  %v13707_v29 = vld [vmem:[%s18181_s9 + $0x520] ss:$28 sps:$4 sm:$0xff]   ;;  %v13710_v60 = vld [vmem:[%s18181_s9 + $0xf2c] ss:$28 sps:$4 sm:$0xff]  }
 0x5da   :  { %13773 = vrcp.f32 %v10336_v41  ;;  %11737 = vmatprep.subr.bf16.mxu1 %v13656_v34  ;;  %v13711_v34 = vld [vmem:[%s18181_s9 + $0x8d8] ss:$28 sps:$4 sm:$0xff]   ;;  %v13715_v41 = vld [vmem:[%s18181_s9 + $0xf64] ss:$28 sps:$4 sm:$0xff]  }
 0x5db   :  { %13775 = vrcp.f32 %v10337_v39  ;;  %v13712_v37 = vld [vmem:[%s18181_s9 + $0x718] ss:$28 sps:$4 sm:$0xff]   ;;  %v13713_v39 = vld [vmem:[%s18181_s9 + $0xf60] ss:$28 sps:$4 sm:$0xff]  }
 0x5dc   :  { %10054 = vmatpush1.bf16.msra.mxu0 %v13653_v38  ;;  %v13716_v38 = vld [vmem:[%s18181_s9 + $0x910] ss:$28 sps:$4 sm:$0xff]  }
 0x5dd   :  { %11738 = vmatpush3.bf16.msra.mxu1 %v13657_v40  ;;  %10055 = vmatprep.subr.bf16.mxu0 %v13660_v62  ;;  %v13717_v40 = vld [vmem:[%s18181_s9 + $0x750] ss:$28 sps:$4 sm:$0xff]   ;;  %v13720_v62 = vld [vmem:[%s18181_s9 + $0xf9c] ss:$28 sps:$4 sm:$0xff]  }
 0x5de   :  { %11739 = vmatprep.subr.bf16.mxu1 %v13661_v2  ;;  %v13718_v2 = vld [vmem:[%s18181_s9 + $0xf98] ss:$28 sps:$4 sm:$0xff]  }
 0x5e0   :  { %10056 = vmatpush1.bf16.msra.mxu0 %v13658_v42  ;;  %v13725_v42 = vld [vmem:[%s18181_s9 + $0xfd4] ss:$28 sps:$4 sm:$0xff]  }
 0x5e1   :  { %11740 = vmatpush3.bf16.msra.mxu1 %v13662_v58  ;;  %10057 = vmatprep.subr.bf16.mxu0 %v13665_v63  ;;  %v13726_v58 = vld [vmem:[%s18181_s9 + $0x980] ss:$28 sps:$4 sm:$0xff]   ;;  %v13723_v63 = vld [vmem:[%s18181_s9 + $0xfd0] ss:$28 sps:$4 sm:$0xff]  }
 0x5e2   :  { %11741 = vmatprep.subr.bf16.mxu1 %v13666_v46  ;;  %v13727_v46 = vld [vmem:[%s18181_s9 + $0x7c0] ss:$28 sps:$4 sm:$0xff]  }
 0x5e4   :  { %v13774_v55 = vpop.eup %13773  ;;  %10058 = vmatpush1.bf16.msra.mxu0 %v13663_v14  ;;  %v13730_v14 = vld [vmem:[%s18181_s9 + $0x100c] ss:$28 sps:$4 sm:$0xff]  }
 0x5e5   :  { %v13776_v61 = vpop.eup %13775  ;;  %10357 = vst [vmem:[#allocation2] sm:$0xff] %v13774_v55  ;;  %11742 = vmatpush3.bf16.msra.mxu1 %v13667_v51  ;;  %10059 = vmatprep.subr.bf16.mxu0 %v13670_v35  ;;  %v13731_v51 = vld [vmem:[%s18181_s9 + $0x9b8] ss:$28 sps:$4 sm:$0xff]   ;;  %v13728_v35 = vld [vmem:[%s18181_s9 + $0x1008] ss:$28 sps:$4 sm:$0xff]  }
 0x5e6   :  { %10358 = vst [vmem:[#allocation2 + $0x8] sm:$0xff] %v13776_v61  ;;  %11749 = vmatprep.subr.bf16.mxu1 %v13671_v52  ;;  %v13732_v52 = vld [vmem:[%s18181_s9 + $0x7f8] ss:$28 sps:$4 sm:$0xff]   ;;  %v13735_v55 = vld [vmem:[%s18181_s9 + $0x1044] ss:$28 sps:$4 sm:$0xff]  }
 0x5e7   :  { %v13733_v61 = vld [vmem:[%s18181_s9 + $0x1040] ss:$28 sps:$4 sm:$0xff]  }
 0x5e8   :  { %10148 = vmatmul.mubr.bf16.vlgmr.msra.gmra.mrb[76].mxu1 %v16628_v20  ;;  %10060 = vmatpush1.bf16.msra.mxu0 %v13668_v19  ;;  %v13681_v20 = vld [vmem:[%s18181_s9 + $0x5c8] ss:$28 sps:$4 sm:$0xff]   ;;  %v13736_v19 = vld [vmem:[%s18181_s9 + $0x9f0] ss:$28 sps:$4 sm:$0xff]  }
 0x5e9   :  { %11750 = vmatpush3.bf16.msra.mxu1 %v13672_v45  ;;  %10187 = vmatprep.mubr.bf16.mxu1 %v16633_v30  ;;  %v13682_v30 = vld [vmem:[%s18181_s9 + $0x408] ss:$28 sps:$4 sm:$0xff]   ;;  %v13737_v45 = vld [vmem:[%s18181_s9 + $0x830] ss:$28 sps:$4 sm:$0xff]  }
 0x5ea   :  { %10061 = vmatprep.subr.bf16.mxu0 %v13675_v28  ;;  %11751 = vmatprep.subr.bf16.mxu1 %v13676_v47  ;;  %v13738_v28 = vld [vmem:[%s18181_s9 + $0xa28] ss:$28 sps:$4 sm:$0xff]  }
 0x5eb   :  { %v13739_v47 = vld [vmem:[%s18181_s9 + $0x868] ss:$28 sps:$4 sm:$0xff]  }
 0x5ec   :  { %10062 = vmatpush1.bf16.msra.mxu0 %v13673_v48  ;;  %v13740_v48 = vld [vmem:[%s18181_s9 + $0xa60] ss:$28 sps:$4 sm:$0xff]  }
 0x5ed   :  { %11752 = vmatpush3.bf16.msra.mxu1 %v13677_v0  ;;  %10063 = vmatprep.subr.bf16.mxu0 %v13680_v21  ;;  %v13741_v0 = vld [vmem:[%s18181_s9 + $0x8a0] ss:$28 sps:$4 sm:$0xff]   ;;  %v13742_v21 = vld [vmem:[%s18181_s9 + $0xc58] ss:$28 sps:$4 sm:$0xff]  }
 0x5ee   :  { %11753 = vmatprep.subr.bf16.mxu1 %v13681_v20  ;;  %v13743_v20 = vld [vmem:[%s18181_s9 + $0xa98] ss:$28 sps:$4 sm:$0xff]  }
 0x5f0   :  { %10064 = vmatpush1.bf16.msra.mxu0 %v13678_v12  ;;  %v13744_v12 = vld [vmem:[%s18181_s9 + $0xc90] ss:$28 sps:$4 sm:$0xff]  }
 0x5f1   :  { %11754 = vmatpush3.bf16.msra.mxu1 %v13682_v30  ;;  %10074 = vmatprep.subr.bf16.mxu0 %v13685_v10  ;;  %v13745_v30 = vld [vmem:[%s18181_s9 + $0xad0] ss:$28 sps:$4 sm:$0xff]   ;;  %v13746_v10 = vld [vmem:[%s18181_s9 + $0xcc8] ss:$28 sps:$4 sm:$0xff]  }
 0x5f2   :  { %11755 = vmatprep.subr.bf16.mxu1 %v13686_v56  ;;  %v13747_v56 = vld [vmem:[%s18181_s9 + $0xb08] ss:$28 sps:$4 sm:$0xff]  }
 0x5f3   :  { %10066 = vmatmul.mubr.bf16.vlgmr.msra.gmra.mrb[56].mxu0 %v17107_v3 }
 0x5f4   :  { %10075 = vmatpush1.bf16.msra.mxu0 %v13683_v44  ;;  %11718 = vmatprep.mubr.msk.bf16.mxu0 %vm9496_vm7, %v16821_v4  ;;  %v13750_v44 = vld [vmem:[%s18181_s9 + $0xd38] ss:$28 sps:$4 sm:$0xff]  }
 0x5f5   :  { %11756 = vmatpush3.bf16.msra.mxu1 %v13687_v6  ;;  %10076 = vmatprep.subr.bf16.mxu0 %v13690_v13  ;;  %v13751_v6 = vld [vmem:[%s18181_s9 + $0xb78] ss:$28 sps:$4 sm:$0xff]   ;;  %v13752_v13 = vld [vmem:[%s18181_s9 + $0xd70] ss:$28 sps:$4 sm:$0xff]  }
 0x5f6   :  { %11757 = vmatprep.subr.bf16.mxu1 %v13691_v7  ;;  %v13753_v7 = vld [vmem:[%s18181_s9 + $0xbb0] ss:$28 sps:$4 sm:$0xff]  }
 0x5f8   :  { %10077 = vmatpush1.bf16.msra.mxu0 %v13688_v32  ;;  %v13754_v32 = vld [vmem:[%s18181_s9 + $0xda8] ss:$28 sps:$4 sm:$0xff]  }
 0x5f9   :  { %11758 = vmatpush3.bf16.msra.mxu1 %v13692_v18  ;;  %10078 = vmatprep.subr.bf16.mxu0 %v13695_v33  ;;  %v13755_v18 = vld [vmem:[%s18181_s9 + $0xbe8] ss:$28 sps:$4 sm:$0xff]   ;;  %v13756_v33 = vld [vmem:[%s18181_s9 + $0xde0] ss:$28 sps:$4 sm:$0xff]  }
 0x5fa   :  { %11759 = vmatprep.subr.bf16.mxu1 %v13696_v8  ;;  %v13757_v8 = vld [vmem:[%s18181_s9 + $0xc20] ss:$28 sps:$4 sm:$0xff]  }
 0x5fc   :  { %10079 = vmatpush1.bf16.msra.mxu0 %v13693_v16  ;;  %v13758_v16 = vld [vmem:[%s18181_s9 + $0xe18] ss:$28 sps:$4 sm:$0xff]  }
 0x5fd   :  { %11760 = vmatpush3.bf16.msra.mxu1 %v13697_v59  ;;  %10080 = vmatprep.subr.bf16.mxu0 %v13700_v9  ;;  %v13759_v59 = vld [vmem:[%s18181_s9 + $0xe50] ss:$28 sps:$4 sm:$0xff]   ;;  %v13760_v9 = vld [vmem:[%s18181_s9 + $0xe88] ss:$28 sps:$4 sm:$0xff]  }
 0x5fe   :  { %11761 = vmatprep.subr.bf16.mxu1 %v13701_v17  ;;  %v13763_v17 = vld [vmem:[%s18181_s9 + $0xf30] ss:$28 sps:$4 sm:$0xff]  }
 0x600   :  { %10081 = vmatpush1.bf16.msra.mxu0 %v13698_v15  ;;  %v13764_v15 = vld [vmem:[%s18181_s9 + $0xf68] ss:$28 sps:$4 sm:$0xff]  }
 0x601   :  { %11762 = vmatpush3.bf16.msra.mxu1 %v13702_v23  ;;  %10082 = vmatprep.subr.bf16.mxu0 %v13705_v22  ;;  %v13765_v23 = vld [vmem:[%s18181_s9 + $0xfa0] ss:$28 sps:$4 sm:$0xff]   ;;  %v13766_v22 = vld [vmem:[%s18181_s9 + $0xfd8] ss:$28 sps:$4 sm:$0xff]  }
 0x602   :  { %11763 = vmatprep.subr.bf16.mxu1 %v13706_v27  ;;  %v13767_v27 = vld [vmem:[%s18181_s9 + $0x1010] ss:$28 sps:$4 sm:$0xff]  }
 0x604   :  { %10083 = vmatpush1.bf16.msra.mxu0 %v13703_v26  ;;  %v13768_v26 = vld [vmem:[%s18181_s9 + $0x1048] ss:$28 sps:$4 sm:$0xff]  }
 0x605   :  { %11764 = vmatpush3.bf16.msra.mxu1 %v13707_v29  ;;  %10084 = vmatprep.subr.bf16.mxu0 %v13710_v60  ;;  %v6772_v29 = vrot.slane %v17755_v1, %v14191_v54  ;;  %v6776_v60 = vrot.slane %v17755_v1, %v14194_v57 }
 0x606   :  { %11771 = vmatprep.subr.bf16.mxu1 %v13711_v34 }
 0x608   :  { %10188 = vmatmul.mubr.bf16.vlgmr.msra.gmra.mrb[80].mxu1 %v16751_v53  ;;  %10085 = vmatpush1.bf16.msra.mxu0 %v13708_v36  ;;  %v13721_v53 = vld [vmem:[%s18181_s9 + $0x948] ss:$28 sps:$4 sm:$0xff]  }
 0x609   :  { %11772 = vmatpush3.bf16.msra.mxu1 %v13712_v37  ;;  %10227 = vmatprep.mubr.bf16.mxu1 %v16756_v50  ;;  %v13722_v50 = vld [vmem:[%s18181_s9 + $0x788] ss:$28 sps:$4 sm:$0xff]  }
 0x60a   :  { %10086 = vmatprep.subr.bf16.mxu0 %v13715_v41  ;;  %11773 = vmatprep.subr.bf16.mxu1 %v13716_v38 }
 0x60c   :  { %10087 = vmatpush1.bf16.msra.mxu0 %v13713_v39 }
 0x60d   :  { %11774 = vmatpush3.bf16.msra.mxu1 %v13717_v40  ;;  %10088 = vmatprep.subr.bf16.mxu0 %v13720_v62 }
 0x60e   :  { %11775 = vmatprep.subr.bf16.mxu1 %v13721_v53 }
 0x610   :  { %10089 = vmatpush1.bf16.msra.mxu0 %v13718_v2 }
 0x611   :  { %11776 = vmatpush3.bf16.msra.mxu1 %v13722_v50  ;;  %10090 = vmatprep.subr.bf16.mxu0 %v13725_v42 }
 0x612   :  { %11777 = vmatprep.subr.bf16.mxu1 %v13726_v58 }
 0x614   :  { %10091 = vmatpush1.bf16.msra.mxu0 %v13723_v63 }
 0x615   :  { %11778 = vmatpush3.bf16.msra.mxu1 %v13727_v46  ;;  %10092 = vmatprep.subr.bf16.mxu0 %v13730_v14  ;;  %v6788_v14 = vrot.slane %v17755_v1, %v14386_v31 }
 0x616   :  { %11779 = vmatprep.subr.bf16.mxu1 %v13731_v51 }
 0x618   :  { %10093 = vmatpush1.bf16.msra.mxu0 %v13728_v35 }
 0x619   :  { %11780 = vmatpush3.bf16.msra.mxu1 %v13732_v52  ;;  %10094 = vmatprep.subr.bf16.mxu0 %v13735_v55 }
 0x61a   :  { %11781 = vmatprep.subr.bf16.mxu1 %v13736_v19 }
 0x61c   :  { %10095 = vmatpush1.bf16.msra.mxu0 %v13733_v61 }
 0x61d   :  { %11782 = vmatpush3.bf16.msra.mxu1 %v13737_v45 }
 0x61e   :  { %11783 = vmatprep.subr.bf16.mxu1 %v13738_v28  ;;  %v6780_v28 = vrot.slane %v17755_v1, %v14371_v25 }
 0x61f   :  { %10107 = vmatmul.mubr.bf16.vlgmr.msra.gmra.mrb[56].mxu0 %v16829_v24 }
 0x621   :  { %11784 = vmatpush3.bf16.msra.mxu1 %v13739_v47  ;;  %v6784_v47 = vrot.slane %v17755_v1, %v14219_v11 }
 0x622   :  { %11785 = vmatprep.subr.bf16.mxu1 %v13740_v48 }
 0x625   :  { %11786 = vmatpush3.bf16.msra.mxu1 %v13741_v0 }
 0x626   :  { %11793 = vmatprep.subr.bf16.mxu1 %v13742_v21 }
 0x628   :  { %10228 = vmatmul.mubr.bf16.vlgmr.msra.gmra.mrb[84].mxu1 %v16906_v43  ;;  %v13748_v43 = vld [vmem:[%s18181_s9 + $0xd00] ss:$28 sps:$4 sm:$0xff]  }
 0x629   :  { %11794 = vmatpush3.bf16.msra.mxu1 %v13743_v20  ;;  %10267 = vmatprep.mubr.bf16.mxu1 %v16914_v49  ;;  %v13749_v49 = vld [vmem:[%s18181_s9 + $0xb40] ss:$28 sps:$4 sm:$0xff]  }
 0x62a   :  { %11795 = vmatprep.subr.bf16.mxu1 %v13744_v12 }
 0x62d   :  { %11796 = vmatpush3.bf16.msra.mxu1 %v13745_v30 }
 0x62e   :  { %11797 = vmatprep.subr.bf16.mxu1 %v13746_v10 }
 0x631   :  { %11798 = vmatpush3.bf16.msra.mxu1 %v13747_v56 }
 0x632   :  { %11799 = vmatprep.subr.bf16.mxu1 %v13748_v43 }
 0x635   :  { %11800 = vmatpush3.bf16.msra.mxu1 %v13749_v49 }
 0x636   :  { %11801 = vmatprep.subr.bf16.mxu1 %v13750_v44 }
 0x639   :  { %11802 = vmatpush3.bf16.msra.mxu1 %v13751_v6 }
 0x63a   :  { %11803 = vmatprep.subr.bf16.mxu1 %v13752_v13 }
 0x63d   :  { %11804 = vmatpush3.bf16.msra.mxu1 %v13753_v7 }
 0x63e   :  { %11805 = vmatprep.subr.bf16.mxu1 %v13754_v32 }
 0x641   :  { %11806 = vmatpush3.bf16.msra.mxu1 %v13755_v18 }
 0x642   :  { %11807 = vmatprep.subr.bf16.mxu1 %v13756_v33 }
 0x645   :  { %11808 = vmatpush3.bf16.msra.mxu1 %v13757_v8 }
 0x646   :  { %10275 = vmatprep.subr.bf16.mxu1 %v13821_v5 }
 0x648   :  { %10268 = vmatmul.mubr.bf16.vlgmr.msra.gmra.mrb[88].mxu1 %v17107_v3  ;;  %v13761_v3 = vld [vmem:[%s18181_s9 + $0xec0] ss:$28 sps:$4 sm:$0xff]  }
 0x649   :  { %10276 = vmatpush1.bf16.msra.mxu1 %v13758_v16  ;;  %11719 = vmatprep.mubr.msk.bf16.mxu1 %vm9496_vm7, %v16821_v4  ;;  %v13762_v4 = vld [vmem:[%s18181_s9 + $0xef8] ss:$28 sps:$4 sm:$0xff]   ;;  %s13822_s9 = smov [#allocation2]  }
 0x64a   :  { %10277 = vmatprep.subr.bf16.mxu1 %v13821_v5  ;;  %s10371_s17 = sshll.u32 %s13822_s9, 4  ;;  %s10372_s17 = int_to_ptr.vmem [resolvable:$true] %s10371_s17 }
 0x64b   :  { %s13797_s5 = scalar_lea.vmem %s10372_s17, 896  ;;  %p13802_p1 = scmp.lt.s32.totalorder %s10372_s17, %s10372_s17 }
 0x64c   :  { %p13798_p0 = scmp.ne.s32.totalorder %s10372_s17, %s13797_s5  ;;  %p13803_p2 = scmp.lt.s32.totalorder %s13797_s5, %s13797_s5 }
 0x64d   :  { %10278 = vmatpush1.bf16.msra.mxu1 %v13759_v59 }
 0x64e   :  { %10279 = vmatprep.subr.bf16.mxu1 %v13821_v5  ;;  %p13804_p3 = por %p13803_p2, %p13802_p1 }
 0x650   :  { %p13805_p4 = pnand %p13804_p3, %p13798_p0 }
 0x651   :  { %10280 = vmatpush1.bf16.msra.mxu1 %v13760_v9 }
 0x652   :  { %10281 = vmatprep.subr.bf16.mxu1 %v13821_v5 }
 0x655   :  { %10282 = vmatpush1.bf16.msra.mxu1 %v13761_v3 }
 0x656   :  { %10283 = vmatprep.subr.bf16.mxu1 %v13821_v5 }
 0x659   :  { %10284 = vmatpush1.bf16.msra.mxu1 %v13762_v4 }
 0x65a   :  { %10285 = vmatprep.subr.bf16.mxu1 %v13821_v5 }
 0x65d   :  { %10286 = vmatpush1.bf16.msra.mxu1 %v13763_v17 }
 0x65e   :  { %10287 = vmatprep.subr.bf16.mxu1 %v13821_v5 }
 0x661   :  { %10288 = vmatpush1.bf16.msra.mxu1 %v13764_v15 }
 0x662   :  { %10289 = vmatprep.subr.bf16.mxu1 %v13821_v5 }
 0x665   :  { %10290 = vmatpush1.bf16.msra.mxu1 %v13765_v23 }
 0x666   :  { %10291 = vmatprep.subr.bf16.mxu1 %v13821_v5 }
 0x669   :  { %10292 = vmatpush1.bf16.msra.mxu1 %v13766_v22 }
 0x66a   :  { %10293 = vmatprep.subr.bf16.mxu1 %v13821_v5 }
 0x66d   :  { %10294 = vmatpush1.bf16.msra.mxu1 %v13767_v27 }
 0x66e   :  { %10295 = vmatprep.subr.bf16.mxu1 %v13821_v5 }
 0x671   :  { %10296 = vmatpush1.bf16.msra.mxu1 %v13768_v26 }
 0x674   :  { %10308 = vmatmul.mubr.bf16.vlgmr.msra.gmra.mrb[92].mxu1 %v16829_v24 }
 0x69b   :  { %v9903_v34 = vpop.f32.mrb[72].mxu1 }
 0x69c   :  { %v11819_v36 = vadd.f32 %v9903_v34, %v6772_v29  ;;  %v9905_v37 = vpop.f32.mrb[73].mxu1 }
 0x69d   :  { %v11820_v41 = vadd.f32 %v9905_v37, %v6776_v60  ;;  %v9907_v38 = vpop.f32.mrb[74].mxu1 }
 0x69e   :  { %v11722_v39 = vmul.f32 -1.442695, %v11819_v36  ;;  %v9908_v40 = vpop.f32.mrb[75].mxu1 }
 0x69f   :  { %v11723_v62 = vmul.f32 -1.442695, %v11820_v41 }
 0x6a0   :  { %13777 = vpow2.f32 %v11722_v39 }
 0x6a1   :  { %13779 = vpow2.f32 %v11723_v62 }
 0x6aa   :  { %v13778_v5 = vpop.eup %13777 }
 0x6ab   :  { %v13780_v53 = vpop.eup %13779  ;;  %v10338_v2 = vadd.f32 1.0, %v13778_v5 }
 0x6ac   :  { %v10339_v24 = vadd.f32 1.0, %v13780_v53 }
 0x6ad   :  { %13781 = vrcp.f32 %v10338_v2 }
 0x6ae   :  { %13783 = vrcp.f32 %v10339_v24 }
 0x6b7   :  { %v13782_v54 = vpop.eup %13781 }
 0x6b8   :  { %v13784_v50 = vpop.eup %13783  ;;  %10359 = vst [vmem:[#allocation2 + $0x10] sm:$0xff] %v13782_v54 }
 0x6b9   :  { %10360 = vst [vmem:[#allocation2 + $0x18] sm:$0xff] %v13784_v50 }
 0x6bb   :  { %v11743_v57 = vpop.f32.mrb[76].mxu1 }
 0x6bc   :  { %v11744_v42 = vpop.f32.mrb[77].mxu1 }
 0x6bd   :  { %v11745_v58 = vadd.f32 %v11744_v42, %v11743_v57  ;;  %v11746_v63 = vpop.f32.mrb[78].mxu1 }
 0x6be   :  { %v11747_v46 = vpop.f32.mrb[79].mxu1 }
 0x6bf   :  { %v10150_v52 = vadd.f32 %v11745_v58, %v6788_v14 }
 0x6db   :  { %v11765_v51 = vpop.f32.mrb[80].mxu1 }
 0x6dc   :  { %v11766_v35 = vpop.f32.mrb[81].mxu1 }
 0x6dd   :  { %v11767_v55 = vadd.f32 %v11766_v35, %v11765_v51  ;;  %v11768_v19 = vpop.f32.mrb[82].mxu1 }
 0x6de   :  { %v11769_v61 = vpop.f32.mrb[83].mxu1 }
 0x6df   :  { %v10190_v45 = vadd.f32 %v11767_v55, %v10150_v52 }
 0x6f2   :  { %v10108_v48 = vpop.f32.mrb[56].mxu0 }
 0x6f3   :  { %v11821_v0 = vadd.f32 %v10108_v48, %v6780_v28  ;;  %v10110_v21 = vpop.f32.mrb[57].mxu0 }
 0x6f4   :  { %v11822_v20 = vadd.f32 %v10110_v21, %v6784_v47  ;;  %v10112_v12 = vpop.f32.mrb[58].mxu0 }
 0x6f5   :  { %v11724_v30 = vmul.f32 -1.442695, %v11821_v0  ;;  %v10113_v31 = vpop.f32.mrb[59].mxu0 }
 0x6f6   :  { %v11725_v10 = vmul.f32 -1.442695, %v11822_v20 }
 0x6f7   :  { %13785 = vpow2.f32 %v11724_v30 }
 0x6f8   :  { %13787 = vpow2.f32 %v11725_v10 }
 0x6fb   :  { %v11787_v56 = vpop.f32.mrb[84].mxu1 }
 0x6fc   :  { %v11788_v43 = vpop.f32.mrb[85].mxu1 }
 0x6fd   :  { %v11789_v49 = vadd.f32 %v11788_v43, %v11787_v56  ;;  %v11790_v44 = vpop.f32.mrb[86].mxu1 }
 0x6fe   :  { %v11791_v6 = vpop.f32.mrb[87].mxu1 }
 0x6ff   :  { %v10230_v13 = vadd.f32 %v11789_v49, %v10190_v45 }
 0x701   :  { %v13786_v25 = vpop.eup %13785 }
 0x702   :  { %v13788_v7 = vpop.eup %13787  ;;  %v10340_v32 = vadd.f32 1.0, %v13786_v25 }
 0x703   :  { %v10341_v11 = vadd.f32 1.0, %v13788_v7 }
 0x704   :  { %13789 = vrcp.f32 %v10340_v32 }
 0x705   :  { %13791 = vrcp.f32 %v10341_v11 }
 0x70e   :  { %v13790_v1 = vpop.eup %13789 }
 0x70f   :  { %v13792_v18 = vpop.eup %13791  ;;  %10361 = vst [vmem:[#allocation2 + $0x20] sm:$0xff] %v13790_v1 }
 0x710   :  { %10362 = vst [vmem:[#allocation2 + $0x28] sm:$0xff] %v13792_v18 }
 0x71b   :  { %v11809_v33 = vpop.f32.mrb[88].mxu1 }
 0x71c   :  { %v11810_v8 = vpop.f32.mrb[89].mxu1 }
 0x71d   :  { %v11811_v16 = vadd.f32 %v11810_v8, %v11809_v33  ;;  %v11812_v59 = vpop.f32.mrb[90].mxu1 }
 0x71e   :  { %v11813_v9 = vpop.f32.mrb[91].mxu1 }
 0x71f   :  { %v10270_v3 = vadd.f32 %v11811_v16, %v10230_v13 }
 0x747   :  { %v10309_v4 = vpop.f32.mrb[92].mxu1 }
 0x748   :  { %v10310_v17 = vadd.f32 %v10309_v4, %v10270_v3  ;;  %v10311_v15 = vpop.f32.mrb[93].mxu1 }
 0x749   :  { %v10312_v23 = vpop.f32.mrb[94].mxu1 }
 0x74a   :  { %v11726_v22 = vmul.f32 -1.442695, %v10310_v17  ;;  %v10313_v27 = vpop.f32.mrb[95].mxu1 }
 0x74c   :  { %13793 = vpow2.f32 %v11726_v22 }
 0x756   :  { %v13794_v26 = vpop.eup %13793 }
 0x757   :  { %v10342_v29 = vadd.f32 1.0, %v13794_v26 }
 0x759   :  { %13795 = vrcp.f32 %v10342_v29 }
 0x763   :  { %v13796_v60 = vpop.eup %13795 }
 0x764   :  { %10364 = vst.msk [vmem:[#allocation2 + $0x30] sm:$0xff] %vm10363_vm8, %v13796_v60 }
 0x765   :  { %13808 = shalt.err (!%p13805_p4)
}
 0x766   :  { %s13809_s19 = scalar_lea.hbm %s18183_s11, 896 }
 0x767   :  { %p13810_p5 = scmp.ne.s32.totalorder %s18183_s11, %s13809_s19  ;;  %p13813_p6 = scmp.lt.u32.totalorder %s13809_s19, %s18183_s11 }
 0x769   :  { %p13815_p7 = pnand %p13813_p6, %p13810_p5 }
 0x76b   :  { %13818 = shalt.err (!%p13815_p7)
}
 0x76c   :  { %10374 = dma.vmem_to_hbm [thread:$0]  %s10372_s17, 896, %s18183_s11, [#allocation3]  }
 0x76d   :  { %13819 = dma.done.wait [#allocation3], 896  }
 0x76e   :  { %13820 = vsyncadd [#allocation3], 4294966400 }
 0x76f   :  { %10378 = vsyncpa [#allocation3], 1 }

</bundles_post_ra>
